<compile_context>
chip_gen: v5e
topology: v5e:2x2
jax: 0.10.0
libtpu: 0.0.40
codegen_flags: <defaults>
</compile_context>

<pallas_src>
import jax
import jax.numpy as jnp
import numpy as np
from jax.experimental import pallas as pl
from jax.experimental.pallas import tpu as pltpu

# ----------------------------- config ---------------------------------------
IN_CHANS = 3                    # module default in_chans=3
FEAT = 32                       # encoder "in_features"
OUT_DIV = 2                     # out_feature_divide
HID = FEAT // OUT_DIV           # 16, LSTM hidden per direction
VIEW_SLICES = (2, 2, 4)         # shrunk from default (10, 10, 20) for the demo
VIEW_OFFS = (0, VIEW_SLICES[0], VIEW_SLICES[0] + VIEW_SLICES[1])
HEAD_OUT = (15, 30, 30)
HEAD_OFFS = (0, HEAD_OUT[0], HEAD_OUT[0] + HEAD_OUT[1])
OUT_TOTAL = sum(HEAD_OUT)       # 75
OUT_PAD = 128                   # lane-dense padded output width
IMG = 16                        # spatial size
IMGP = IMG + 2                  # zero-padded spatial size
SEQ = sum(VIEW_SLICES)          # 8 slices per batch element
SMAX = max(VIEW_SLICES)         # 4 recurrence steps
NGRP = 2 * 3                    # 3 views x 2 directions
GH = NGRP * HID                 # 96  (all chains' hidden, chain-major lanes)
G4H = 4 * GH                    # 384 (gate-major columns: [i|f|g|o] x 96)
WBAND_K = IMGP * IN_CHANS       # 54  (padded width x channels), one kh tap
KBAND = 3 * WBAND_K             # 162 = fused contraction depth of the conv
CONV_N = IMG * FEAT             # 512 (output width x features)

MXU_DTYPE = jnp.bfloat16        # matmul-operand dtype (f32 acc); jnp.float32 for exact checks
ENC_CHUNK = 8                   # encoder slab: (8*128, 512) f32 intermediate ~= 2 MiB
BBLK_MAX = 64                   # batch elements per grid step (sized for v7x 64 MiB VMEM)

# packed gate column d = gate*GH + g*HID + k  <-  natural column g*4H + gate*HID + k
_d = np.arange(G4H)
_gate, _r = _d // GH, _d % GH
_g, _k = _r // HID, _r % HID
GATE_PERM = jnp.asarray(_g * (4 * HID) + _gate * HID + _k, dtype=jnp.int32)


# ----------------------------- fused kernel ----------------------------------
def _three_view_kernel(x_ref, wband_ref, cb_ref, ph_ref, rr_ref, wih_ref,
                       lb_ref, whh_ref, gmask_ref, wstep_ref, hb_ref,
                       out_ref, feats_ref):
    # x_ref:     (BBLK*SEQ*IMG, 162)    pre-packed conv-band LHS rows (b, s, h)
    # wband_ref: (162, 512)             K-fused banded conv weight (3 kh taps)
    # cb_ref:    (1, 512)               conv bias tiled over the 16 out columns
    # ph_ref:    (CHUNK*8, CHUNK*128)   h-pool matrix, (slice, element)-ordered rows
    # rr_ref:    (512, 32)              w-pool matrix
    # wih_ref:   (32, 384)              packed input->gate weights, all 6 chains
    # lb_ref:    (1, 384)               packed gate bias
    # whh_ref:   (96, 384)              block-diagonal recurrent weights
    # gmask_ref: (6, 384)               lane mask selecting chain g's gate columns
    # wstep_ref: (384, 128)             fused per-step head weights (tau-major rows)
    # hb_ref:    (1, 128)               fused head bias (zero past col 75)
    # out_ref:   (BBLK, 128)
    # feats_ref: (SEQ*BBLK, 32)         slice-major pooled-feature scratch
    bblk = out_ref.shape[0]
    chunk = ph_ref.shape[0] // SEQ
    nchunk = bblk // chunk
    rows_c = chunk * SEQ * IMG
    mxu = wband_ref.dtype

    # ---- encoder stub: conv3x3(pad=1) + ReLU + global average pool ----------
    # Processed in CHUNK-element slabs so the (rows, 512) f32 intermediate stays
    # small while BBLK can be large enough to fill the MXU in the recurrence.
    feats = None
    for j in range(nchunk):                               # static, nchunk <= 8
        r0 = j * rows_c
        lhs = x_ref[r0:r0 + rows_c, :]                    # (chunk*128, 162)
        y = jnp.dot(lhs, wband_ref[...], preferred_element_type=jnp.float32)
        y = jnp.maximum(y + cb_ref[...], 0.0)             # (chunk*128, 512)
        yr = jnp.dot(y.astype(mxu), rr_ref[...],
                     preferred_element_type=jnp.float32)  # mean over w: (chunk*128, 32)
        fc = jnp.dot(ph_ref[...], yr.astype(mxu),
                     preferred_element_type=jnp.float32)  # mean over h: (chunk*8, 32)
        if nchunk == 1:
            feats = fc                 # single slab == whole block, already (s, b) order
        else:
            for s in range(SEQ):       # scatter into slice-major feats scratch
                dst = s * bblk + j * chunk
                feats_ref[dst:dst + chunk, :] = fc[s * chunk:(s + 1) * chunk, :]
    if nchunk != 1:
        feats = feats_ref[...]                            # (SEQ*bblk, 32)

    # ---- all 6 bi-LSTM chains, batched over the BBLK block ------------------
    xg = jnp.dot(feats.astype(mxu), wih_ref[...],
                 preferred_element_type=jnp.float32) + lb_ref[...]   # (SEQ*bblk, 384)
    gm = gmask_ref[...]                                              # (6, 384)

    # chain routing hoisted out of the recurrence: per-step packed gate inputs
    gx_steps = []
    for tau in range(SMAX):
        gx = jnp.zeros((bblk, G4H), jnp.float32)
        for g in range(NGRP):
            v, d = g // 2, g % 2
            sv, off = VIEW_SLICES[v], VIEW_OFFS[v]
            if tau < sv:                                  # chain g active at step tau
                src = off + (tau if d == 0 else sv - 1 - tau)
                gx = gx + xg[src * bblk:(src + 1) * bblk, :] * gm[g:g + 1, :]
        gx_steps.append(gx)

    h = jnp.zeros((bblk, GH), jnp.float32)
    c = jnp.zeros((bblk, GH), jnp.float32)
    h_steps = []
    for tau in range(SMAX):                               # static unroll (SMAX = 4)
        pre = gx_steps[tau]
        if tau > 0:                                       # h == 0 at tau == 0
            pre = pre + jnp.dot(h.astype(mxu), whh_ref[...],
                                preferred_element_type=jnp.float32)
        gi = jax.nn.sigmoid(pre[:, 0:GH])                 # PyTorch gate order i, f, g, o
        gf = jax.nn.sigmoid(pre[:, GH:2 * GH])
        gg = jnp.tanh(pre[:, 2 * GH:3 * GH])
        go = jax.nn.sigmoid(pre[:, 3 * GH:4 * GH])
        c = gf * c + gi * gg
        h = go * jnp.tanh(c)
        h_steps.append(h)

    # fused heads: one (BBLK, 384) x (384, 128) matmul after the recurrence.
    # Dead (chain, tau >= view length) rows of wstep are zero, so the garbage
    # h of finished chains never reaches the output.
    h_all = jnp.concatenate(h_steps, axis=1)              # (bblk, SMAX*GH)
    out_ref[...] = jnp.dot(h_all.astype(mxu), wstep_ref[...],
                           preferred_element_type=jnp.float32) + hb_ref[...]


# ----------------------------- weight packing --------------------------------
def _pack_params(p, chunk):
    f32 = jnp.float32

    # encoder: K-fused banded conv weight (kw & channel contraction folded in,
    # three kh taps concatenated along K -> (162, 512))
    cw = p["conv_w"].reshape(3, 3, IN_CHANS, FEAT)        # (kh, kw, c, f)
    bands = []
    for kh in range(3):
        m = jnp.zeros((WBAND_K, CONV_N), f32)
        for kw in range(3):
            shift = jnp.eye(IMGP, IMG, k=-kw, dtype=f32)  # w_in = w_out + kw
            m = m + jnp.kron(shift, cw[kh, kw])
        bands.append(m)
    wband = jnp.concatenate(bands, axis=0).astype(MXU_DTYPE)            # (162, 512)
    cbb = jnp.tile(p["conv_b"], (1, IMG)).astype(f32)                   # (1, 512)
    rr = (jnp.tile(jnp.eye(FEAT, dtype=f32), (IMG, 1)) / IMG).astype(MXU_DTYPE)

    # chunk-sized h-pool matrix producing rows in (slice, element) order
    ph_np = np.zeros((chunk * SEQ, chunk * SEQ * IMG), np.float32)
    for e in range(chunk):
        for s in range(SEQ):
            c0 = e * SEQ * IMG + s * IMG
            ph_np[s * chunk + e, c0:c0 + IMG] = 1.0 / IMG
    ph = jnp.asarray(ph_np, dtype=MXU_DTYPE)                            # (chunk*8, chunk*128)

    # LSTM: 6 chains (3 views x 2 dirs), chain-major rows, gate-major columns
    wih_nat, b_nat, gmask_nat = [], [], []
    whh_bd = jnp.zeros((GH, NGRP * 4 * HID), f32)
    for v in range(3):
        wih, whh, bb = p["lstm"][v]                       # (2,F,4H) (2,H,4H) (2,1,4H)
        for d in range(2):
            g = 2 * v + d
            wih_nat.append(wih[d])
            b_nat.append(bb[d])
            whh_bd = whh_bd.at[g * HID:(g + 1) * HID,
                               g * 4 * HID:(g + 1) * 4 * HID].set(whh[d])
            row = jnp.zeros((1, NGRP * 4 * HID), f32)
            gmask_nat.append(row.at[:, g * 4 * HID:(g + 1) * 4 * HID].set(1.0))
    wih_h = jnp.concatenate(wih_nat, axis=1)[:, GATE_PERM].astype(MXU_DTYPE)   # (32, 384)
    lb = jnp.concatenate(b_nat, axis=1)[:, GATE_PERM].astype(f32)              # (1, 384)
    whh_p = whh_bd[:, GATE_PERM].astype(MXU_DTYPE)                             # (96, 384)
    gmask = jnp.concatenate(gmask_nat, axis=0)[:, GATE_PERM].astype(f32)       # (6, 384)

    # heads: flatten + 3 Linear layers folded into one (SMAX*GH, 128) matrix
    wstep = jnp.zeros((SMAX, GH, OUT_PAD), f32)
    hb = jnp.zeros((1, OUT_PAD), f32)
    for v in range(3):
        hw, hbv = p["heads"][v]                           # (sv*2H, out_v), (1, out_v)
        sv, co, ov = VIEW_SLICES[v], HEAD_OFFS[v], HEAD_OUT[v]
        hb = hb.at[:, co:co + ov].set(hbv)
        gf_, gb_ = 2 * v, 2 * v + 1                       # fwd / bwd chain ids
        for tau in range(sv):
            wstep = wstep.at[tau, gf_ * HID:(gf_ + 1) * HID, co:co + ov].set(
                hw[tau * 2 * HID: tau * 2 * HID + HID, :])
            t0 = sv - 1 - tau                             # bwd hidden time at step tau
            wstep = wstep.at[tau, gb_ * HID:(gb_ + 1) * HID, co:co + ov].set(
                hw[t0 * 2 * HID + HID: t0 * 2 * HID + 2 * HID, :])
    # rows for (chain, tau >= view length) stay zero -> required by the fused head matmul
    wstep_flat = wstep.reshape(SMAX * GH, OUT_PAD).astype(MXU_DTYPE)           # (384, 128)

    return dict(wband=wband, cbb=cbb, ph=ph, rr=rr, wih=wih_h, lb=lb,
                whh=whh_p, gmask=gmask, wstep=wstep_flat, hb=hb)


# ----------------------------- forward ---------------------------------------
def _block_sizes(batch):
    """(batch elements per grid step, encoder slab size)."""
    if batch >= ENC_CHUNK:
        bblk = min(BBLK_MAX, (batch // ENC_CHUNK) * ENC_CHUNK)  # multiple of ENC_CHUNK
        return bblk, ENC_CHUNK
    return batch, batch


def three_view_forward(params, x):
    """x: (B, S, C, X, Y) with S == sum(VIEW_SLICES); returns (B, 75)."""
    B, S, C, X, Y = x.shape
    assert S == SEQ and C == IN_CHANS and X == IMG and Y == IMG
    bblk, chunk = _block_sizes(B)
    b_pad = pl.cdiv(B, bblk) * bblk
    pk = _pack_params(params, chunk)

    # Pre-pack the conv-band LHS in the wrapper: 'b s c x y -> (b s) x y c',
    # zero-pad spatially, stack the 3 kh-shifted row views along lanes (K=162).
    xs = jnp.transpose(x.reshape(B * S, C, X, Y), (0, 2, 3, 1))
    xpad = jnp.pad(xs, ((0, 0), (1, 1), (1, 1), (0, 0)))
    xrow = xpad.reshape(B * S, IMGP, IMGP * C)                         # (BS, 18, 54)
    lhs = jnp.concatenate([xrow[:, kh:kh + IMG, :] for kh in range(3)], axis=-1)
    xlhs = lhs.reshape(B * S * IMG, KBAND).astype(MXU_DTYPE)           # (BS*16, 162)
    if b_pad != B:
        xlhs = jnp.pad(xlhs, ((0, (b_pad - B) * SEQ * IMG), (0, 0)))

    rows_blk = bblk * SEQ * IMG
    out = pl.pallas_call(
        _three_view_kernel,
        out_shape=jax.ShapeDtypeStruct((b_pad, OUT_PAD), jnp.float32),
        grid=(b_pad // bblk,),
        in_specs=[
            pl.BlockSpec((rows_blk, KBAND), lambda i: (i, 0)),
            # weight operands: constant index maps -> resident across grid steps
            pl.BlockSpec((KBAND, CONV_N), lambda i: (0, 0)),
            pl.BlockSpec((1, CONV_N), lambda i: (0, 0)),
            pl.BlockSpec((chunk * SEQ, chunk * SEQ * IMG), lambda i: (0, 0)),
            pl.BlockSpec((CONV_N, FEAT), lambda i: (0, 0)),
            pl.BlockSpec((FEAT, G4H), lambda i: (0, 0)),
            pl.BlockSpec((1, G4H), lambda i: (0, 0)),
            pl.BlockSpec((GH, G4H), lambda i: (0, 0)),
            pl.BlockSpec((NGRP, G4H), lambda i: (0, 0)),
            pl.BlockSpec((SMAX * GH, OUT_PAD), lambda i: (0, 0)),
            pl.BlockSpec((1, OUT_PAD), lambda i: (0, 0)),
        ],
        out_specs=pl.BlockSpec((bblk, OUT_PAD), lambda i: (i, 0)),
        scratch_shapes=[pltpu.VMEM((SEQ * bblk, FEAT), jnp.float32)],
        compiler_params=pltpu.CompilerParams(
            dimension_semantics=("parallel",),
            vmem_limit_bytes=40 * 1024 * 1024),   # sized within v7x's 64 MiB VMEM
    )(xlhs, pk["wband"], pk["cbb"], pk["ph"], pk["rr"], pk["wih"],
      pk["lb"], pk["whh"], pk["gmask"], pk["wstep"], pk["hb"])

    return out[:B, :OUT_TOTAL]


# ----------------------------- params ----------------------------------------
def init_params(key):
    keys = iter(jax.random.split(key, 20))
    p = {
        "conv_w": 0.1 * jax.random.normal(next(keys), (9 * IN_CHANS, FEAT), jnp.float32),
        "conv_b": 0.1 * jax.random.normal(next(keys), (1, FEAT), jnp.float32),
        "lstm": [],
        "heads": [],
    }
    for i in range(3):
        wih = 0.1 * jax.random.normal(next(keys), (2, FEAT, 4 * HID), jnp.float32)
        whh = 0.1 * jax.random.normal(next(keys), (2, HID, 4 * HID), jnp.float32)
        bb = 0.1 * jax.random.normal(next(keys), (2, 1, 4 * HID), jnp.float32)
        p["lstm"].append((wih, whh, bb))
        din = 2 * HID * VIEW_SLICES[i]
        hw = 0.1 * jax.random.normal(next(keys), (din, HEAD_OUT[i]), jnp.float32)
        hb = 0.1 * jax.random.normal(next(keys), (1, HEAD_OUT[i]), jnp.float32)
        p["heads"].append((hw, hb))
    return p


# ----------------------------- pure-JAX reference ----------------------------
def _ref_bilstm(x, wih, whh, b):
    B, S, F = x.shape
    H = whh.shape[1]
    outs = []
    for d in range(2):
        xg = jnp.einsum("bsf,fg->bsg", x, wih[d]) + b[d]
        order = range(S) if d == 0 else range(S - 1, -1, -1)
        h = jnp.zeros((B, H)); c = jnp.zeros((B, H))
        hd = [None] * S
        for t in order:
            g = xg[:, t, :] + h @ whh[d]
            i_g = jax.nn.sigmoid(g[:, :H]); f_g = jax.nn.sigmoid(g[:, H:2 * H])
            g_g = jnp.tanh(g[:, 2 * H:3 * H]); o_g = jax.nn.sigmoid(g[:, 3 * H:])
            c = f_g * c + i_g * g_g
            h = o_g * jnp.tanh(c)
            hd[t] = h
        outs.append(jnp.stack(hd, axis=1))
    return jnp.concatenate(outs, axis=-1)


def reference_forward(params, x):
    B, S, C, X, Y = x.shape
    xs = x.reshape(B * S, C, X, Y)
    xh = jnp.transpose(xs, (0, 2, 3, 1))
    xp = jnp.pad(xh, ((0, 0), (1, 1), (1, 1), (0, 0)))
    cols = [xp[:, kh:kh + X, kw:kw + Y, :] for kh in range(3) for kw in range(3)]
    patches = jnp.concatenate(cols, -1).reshape(B * S, X * Y, 9 * C)
    y = jnp.maximum(jnp.einsum("npk,kf->npf", patches, params["conv_w"])
                    + params["conv_b"][None], 0.0)
    feats = y.mean(axis=1).reshape(B, S, FEAT)
    cur, outs = 0, []
    for i in range(3):
        v = feats[:, cur:cur + VIEW_SLICES[i], :]
        wih, whh, bb = params["lstm"][i]
        v = _ref_bilstm(v, wih, whh, bb).reshape(B, -1)
        hw, hb = params["heads"][i]
        outs.append(v @ hw + hb)
        cur += VIEW_SLICES[i]
    return jnp.concatenate(outs, axis=-1)


# ----------------------------- main ------------------------------------------
if __name__ == "__main__":
    key = jax.random.PRNGKey(0)
    pkey, xkey = jax.random.split(key)
    params = init_params(pkey)

    B = 2
    x = jax.random.normal(xkey, (B, SEQ, IN_CHANS, IMG, IMG), jnp.float32)

    out = jax.jit(three_view_forward)(params, x)
    out = jax.block_until_ready(out)
    assert out.shape == (B, OUT_TOTAL), out.shape

    ref = reference_forward(params, x)
    max_err = float(jnp.max(jnp.abs(out - ref)))
    # bf16 MXU operands (per perf review) vs f32 reference -> looser tolerance.
    tol = 2e-3 if MXU_DTYPE == jnp.float32 else 2e-2
    assert max_err < tol, f"mismatch vs reference: {max_err}"

    print("KERNEL_OK")
</pallas_src>

<mosaic_0001>
module attributes {stable_mosaic.version = 11 : i64} {
  func.func @_three_view_kernel(%arg0: i32, %arg1: memref<256x162xbf16, #tpu.memory_space<vmem>>, %arg2: memref<162x512xbf16, #tpu.memory_space<vmem>>, %arg3: memref<1x512xf32, #tpu.memory_space<vmem>>, %arg4: memref<16x256xbf16, #tpu.memory_space<vmem>>, %arg5: memref<512x32xbf16, #tpu.memory_space<vmem>>, %arg6: memref<32x384xbf16, #tpu.memory_space<vmem>>, %arg7: memref<1x384xf32, #tpu.memory_space<vmem>>, %arg8: memref<96x384xbf16, #tpu.memory_space<vmem>>, %arg9: memref<6x384xf32, #tpu.memory_space<vmem>>, %arg10: memref<384x128xbf16, #tpu.memory_space<vmem>>, %arg11: memref<1x128xf32, #tpu.memory_space<vmem>>, %arg12: memref<2x128xf32, #tpu.memory_space<vmem>>, %arg13: memref<16x32xf32, #tpu.memory_space<vmem>>) attributes {dimension_semantics = [#tpu.dimension_semantics<parallel>], iteration_bounds = array<i64: 1>, scalar_prefetch = 0 : i64, scratch_operands = 1 : i64, tpu.core_type = #tpu.core_type<tc>, window_params = [{transform_indices = @transform_0, window_bounds = array<i64: 256, 162>}, {pipeline_mode = #tpu.pipeline_mode<synchronous>, transform_indices = @transform_1, window_bounds = array<i64: 162, 512>}, {pipeline_mode = #tpu.pipeline_mode<synchronous>, transform_indices = @transform_2, window_bounds = array<i64: 1, 512>}, {pipeline_mode = #tpu.pipeline_mode<synchronous>, transform_indices = @transform_3, window_bounds = array<i64: 16, 256>}, {pipeline_mode = #tpu.pipeline_mode<synchronous>, transform_indices = @transform_4, window_bounds = array<i64: 512, 32>}, {pipeline_mode = #tpu.pipeline_mode<synchronous>, transform_indices = @transform_5, window_bounds = array<i64: 32, 384>}, {pipeline_mode = #tpu.pipeline_mode<synchronous>, transform_indices = @transform_6, window_bounds = array<i64: 1, 384>}, {pipeline_mode = #tpu.pipeline_mode<synchronous>, transform_indices = @transform_7, window_bounds = array<i64: 96, 384>}, {pipeline_mode = #tpu.pipeline_mode<synchronous>, transform_indices = @transform_8, window_bounds = array<i64: 6, 384>}, {pipeline_mode = #tpu.pipeline_mode<synchronous>, transform_indices = @transform_9, window_bounds = array<i64: 384, 128>}, {pipeline_mode = #tpu.pipeline_mode<synchronous>, transform_indices = @transform_10, window_bounds = array<i64: 1, 128>}, {transform_indices = @transform_11, window_bounds = array<i64: 2, 128>}]} {
    %c0 = arith.constant 0 : index
    %c0_0 = arith.constant 0 : index
    %0 = vector.load %arg1[%c0, %c0_0] : memref<256x162xbf16, #tpu.memory_space<vmem>>, vector<256x162xbf16>
    %c0_1 = arith.constant 0 : index
    %c0_2 = arith.constant 0 : index
    %1 = vector.load %arg2[%c0_1, %c0_2] : memref<162x512xbf16, #tpu.memory_space<vmem>>, vector<162x512xbf16>
    %cst = arith.constant dense<0.000000e+00> : vector<256x512xf32>
    %2 = tpu.matmul %0, %1, %cst {dimension_numbers = #tpu.dot_dimension_numbers<[1], [0], [0], [1], [0, 0, 1, 1], [], []>} : vector<256x162xbf16>, vector<162x512xbf16>, vector<256x512xf32> -> vector<256x512xf32>
    %c0_3 = arith.constant 0 : index
    %c0_4 = arith.constant 0 : index
    %3 = vector.load %arg3[%c0_3, %c0_4] : memref<1x512xf32, #tpu.memory_space<vmem>>, vector<1x512xf32>
    %4 = vector.broadcast %3 : vector<1x512xf32> to vector<256x512xf32>
    %5 = arith.addf %2, %4 : vector<256x512xf32>
    %cst_5 = arith.constant 0.000000e+00 : f32
    %6 = vector.broadcast %cst_5 : f32 to vector<256x512xf32>
    %7 = arith.maximumf %5, %6 : vector<256x512xf32>
    %8 = arith.truncf %7 : vector<256x512xf32> to vector<256x512xbf16>
    %c0_6 = arith.constant 0 : index
    %c0_7 = arith.constant 0 : index
    %9 = vector.load %arg5[%c0_6, %c0_7] : memref<512x32xbf16, #tpu.memory_space<vmem>>, vector<512x32xbf16>
    %cst_8 = arith.constant dense<0.000000e+00> : vector<256x32xf32>
    %10 = tpu.matmul %8, %9, %cst_8 {dimension_numbers = #tpu.dot_dimension_numbers<[1], [0], [0], [1], [0, 0, 1, 1], [], []>} : vector<256x512xbf16>, vector<512x32xbf16>, vector<256x32xf32> -> vector<256x32xf32>
    %c0_9 = arith.constant 0 : index
    %c0_10 = arith.constant 0 : index
    %11 = vector.load %arg4[%c0_9, %c0_10] : memref<16x256xbf16, #tpu.memory_space<vmem>>, vector<16x256xbf16>
    %12 = arith.truncf %10 : vector<256x32xf32> to vector<256x32xbf16>
    %cst_11 = arith.constant dense<0.000000e+00> : vector<16x32xf32>
    %13 = tpu.matmul %11, %12, %cst_11 {dimension_numbers = #tpu.dot_dimension_numbers<[1], [0], [0], [1], [0, 0, 1, 1], [], []>} : vector<16x256xbf16>, vector<256x32xbf16>, vector<16x32xf32> -> vector<16x32xf32>
    %14 = arith.truncf %13 : vector<16x32xf32> to vector<16x32xbf16>
    %c0_12 = arith.constant 0 : index
    %c0_13 = arith.constant 0 : index
    %15 = vector.load %arg6[%c0_12, %c0_13] : memref<32x384xbf16, #tpu.memory_space<vmem>>, vector<32x384xbf16>
    %cst_14 = arith.constant dense<0.000000e+00> : vector<16x384xf32>
    %16 = tpu.matmul %14, %15, %cst_14 {dimension_numbers = #tpu.dot_dimension_numbers<[1], [0], [0], [1], [0, 0, 1, 1], [], []>} : vector<16x32xbf16>, vector<32x384xbf16>, vector<16x384xf32> -> vector<16x384xf32>
    %c0_15 = arith.constant 0 : index
    %c0_16 = arith.constant 0 : index
    %17 = vector.load %arg7[%c0_15, %c0_16] : memref<1x384xf32, #tpu.memory_space<vmem>>, vector<1x384xf32>
    %18 = vector.broadcast %17 : vector<1x384xf32> to vector<16x384xf32>
    %19 = arith.addf %16, %18 : vector<16x384xf32>
    %c0_17 = arith.constant 0 : index
    %c0_18 = arith.constant 0 : index
    %20 = vector.load %arg9[%c0_17, %c0_18] : memref<6x384xf32, #tpu.memory_space<vmem>>, vector<6x384xf32>
    %cst_19 = arith.constant 0.000000e+00 : f32
    %21 = vector.broadcast %cst_19 : f32 to vector<2x384xf32>
    %22 = vector.extract_strided_slice %19 {offsets = [0, 0], sizes = [2, 384], strides = [1, 1]} : vector<16x384xf32> to vector<2x384xf32>
    %23 = vector.extract_strided_slice %20 {offsets = [0, 0], sizes = [1, 384], strides = [1, 1]} : vector<6x384xf32> to vector<1x384xf32>
    %24 = vector.broadcast %23 : vector<1x384xf32> to vector<2x384xf32>
    %25 = arith.mulf %22, %24 : vector<2x384xf32>
    %26 = arith.addf %21, %25 : vector<2x384xf32>
    %27 = vector.extract_strided_slice %19 {offsets = [2, 0], sizes = [2, 384], strides = [1, 1]} : vector<16x384xf32> to vector<2x384xf32>
    %28 = vector.extract_strided_slice %20 {offsets = [1, 0], sizes = [1, 384], strides = [1, 1]} : vector<6x384xf32> to vector<1x384xf32>
    %29 = vector.broadcast %28 : vector<1x384xf32> to vector<2x384xf32>
    %30 = arith.mulf %27, %29 : vector<2x384xf32>
    %31 = arith.addf %26, %30 : vector<2x384xf32>
    %32 = vector.extract_strided_slice %19 {offsets = [4, 0], sizes = [2, 384], strides = [1, 1]} : vector<16x384xf32> to vector<2x384xf32>
    %33 = vector.extract_strided_slice %20 {offsets = [2, 0], sizes = [1, 384], strides = [1, 1]} : vector<6x384xf32> to vector<1x384xf32>
    %34 = vector.broadcast %33 : vector<1x384xf32> to vector<2x384xf32>
    %35 = arith.mulf %32, %34 : vector<2x384xf32>
    %36 = arith.addf %31, %35 : vector<2x384xf32>
    %37 = vector.extract_strided_slice %19 {offsets = [6, 0], sizes = [2, 384], strides = [1, 1]} : vector<16x384xf32> to vector<2x384xf32>
    %38 = vector.extract_strided_slice %20 {offsets = [3, 0], sizes = [1, 384], strides = [1, 1]} : vector<6x384xf32> to vector<1x384xf32>
    %39 = vector.broadcast %38 : vector<1x384xf32> to vector<2x384xf32>
    %40 = arith.mulf %37, %39 : vector<2x384xf32>
    %41 = arith.addf %36, %40 : vector<2x384xf32>
    %42 = vector.extract_strided_slice %19 {offsets = [8, 0], sizes = [2, 384], strides = [1, 1]} : vector<16x384xf32> to vector<2x384xf32>
    %43 = vector.extract_strided_slice %20 {offsets = [4, 0], sizes = [1, 384], strides = [1, 1]} : vector<6x384xf32> to vector<1x384xf32>
    %44 = vector.broadcast %43 : vector<1x384xf32> to vector<2x384xf32>
    %45 = arith.mulf %42, %44 : vector<2x384xf32>
    %46 = arith.addf %41, %45 : vector<2x384xf32>
    %47 = vector.extract_strided_slice %19 {offsets = [14, 0], sizes = [2, 384], strides = [1, 1]} : vector<16x384xf32> to vector<2x384xf32>
    %48 = vector.extract_strided_slice %20 {offsets = [5, 0], sizes = [1, 384], strides = [1, 1]} : vector<6x384xf32> to vector<1x384xf32>
    %49 = vector.broadcast %48 : vector<1x384xf32> to vector<2x384xf32>
    %50 = arith.mulf %47, %49 : vector<2x384xf32>
    %51 = arith.addf %46, %50 : vector<2x384xf32>
    %cst_20 = arith.constant 0.000000e+00 : f32
    %52 = vector.broadcast %cst_20 : f32 to vector<2x384xf32>
    %53 = vector.extract_strided_slice %19 {offsets = [2, 0], sizes = [2, 384], strides = [1, 1]} : vector<16x384xf32> to vector<2x384xf32>
    %54 = vector.extract_strided_slice %20 {offsets = [0, 0], sizes = [1, 384], strides = [1, 1]} : vector<6x384xf32> to vector<1x384xf32>
    %55 = vector.broadcast %54 : vector<1x384xf32> to vector<2x384xf32>
    %56 = arith.mulf %53, %55 : vector<2x384xf32>
    %57 = arith.addf %52, %56 : vector<2x384xf32>
    %58 = vector.extract_strided_slice %19 {offsets = [0, 0], sizes = [2, 384], strides = [1, 1]} : vector<16x384xf32> to vector<2x384xf32>
    %59 = vector.extract_strided_slice %20 {offsets = [1, 0], sizes = [1, 384], strides = [1, 1]} : vector<6x384xf32> to vector<1x384xf32>
    %60 = vector.broadcast %59 : vector<1x384xf32> to vector<2x384xf32>
    %61 = arith.mulf %58, %60 : vector<2x384xf32>
    %62 = arith.addf %57, %61 : vector<2x384xf32>
    %63 = vector.extract_strided_slice %19 {offsets = [6, 0], sizes = [2, 384], strides = [1, 1]} : vector<16x384xf32> to vector<2x384xf32>
    %64 = vector.extract_strided_slice %20 {offsets = [2, 0], sizes = [1, 384], strides = [1, 1]} : vector<6x384xf32> to vector<1x384xf32>
    %65 = vector.broadcast %64 : vector<1x384xf32> to vector<2x384xf32>
    %66 = arith.mulf %63, %65 : vector<2x384xf32>
    %67 = arith.addf %62, %66 : vector<2x384xf32>
    %68 = vector.extract_strided_slice %19 {offsets = [4, 0], sizes = [2, 384], strides = [1, 1]} : vector<16x384xf32> to vector<2x384xf32>
    %69 = vector.extract_strided_slice %20 {offsets = [3, 0], sizes = [1, 384], strides = [1, 1]} : vector<6x384xf32> to vector<1x384xf32>
    %70 = vector.broadcast %69 : vector<1x384xf32> to vector<2x384xf32>
    %71 = arith.mulf %68, %70 : vector<2x384xf32>
    %72 = arith.addf %67, %71 : vector<2x384xf32>
    %73 = vector.extract_strided_slice %19 {offsets = [10, 0], sizes = [2, 384], strides = [1, 1]} : vector<16x384xf32> to vector<2x384xf32>
    %74 = vector.extract_strided_slice %20 {offsets = [4, 0], sizes = [1, 384], strides = [1, 1]} : vector<6x384xf32> to vector<1x384xf32>
    %75 = vector.broadcast %74 : vector<1x384xf32> to vector<2x384xf32>
    %76 = arith.mulf %73, %75 : vector<2x384xf32>
    %77 = arith.addf %72, %76 : vector<2x384xf32>
    %78 = vector.extract_strided_slice %19 {offsets = [12, 0], sizes = [2, 384], strides = [1, 1]} : vector<16x384xf32> to vector<2x384xf32>
    %79 = vector.extract_strided_slice %20 {offsets = [5, 0], sizes = [1, 384], strides = [1, 1]} : vector<6x384xf32> to vector<1x384xf32>
    %80 = vector.broadcast %79 : vector<1x384xf32> to vector<2x384xf32>
    %81 = arith.mulf %78, %80 : vector<2x384xf32>
    %82 = arith.addf %77, %81 : vector<2x384xf32>
    %cst_21 = arith.constant 0.000000e+00 : f32
    %83 = vector.broadcast %cst_21 : f32 to vector<2x384xf32>
    %84 = vector.extract_strided_slice %19 {offsets = [12, 0], sizes = [2, 384], strides = [1, 1]} : vector<16x384xf32> to vector<2x384xf32>
    %85 = vector.extract_strided_slice %20 {offsets = [4, 0], sizes = [1, 384], strides = [1, 1]} : vector<6x384xf32> to vector<1x384xf32>
    %86 = vector.broadcast %85 : vector<1x384xf32> to vector<2x384xf32>
    %87 = arith.mulf %84, %86 : vector<2x384xf32>
    %88 = arith.addf %83, %87 : vector<2x384xf32>
    %89 = vector.extract_strided_slice %19 {offsets = [10, 0], sizes = [2, 384], strides = [1, 1]} : vector<16x384xf32> to vector<2x384xf32>
    %90 = vector.extract_strided_slice %20 {offsets = [5, 0], sizes = [1, 384], strides = [1, 1]} : vector<6x384xf32> to vector<1x384xf32>
    %91 = vector.broadcast %90 : vector<1x384xf32> to vector<2x384xf32>
    %92 = arith.mulf %89, %91 : vector<2x384xf32>
    %93 = arith.addf %88, %92 : vector<2x384xf32>
    %cst_22 = arith.constant 0.000000e+00 : f32
    %94 = vector.broadcast %cst_22 : f32 to vector<2x384xf32>
    %95 = vector.extract_strided_slice %19 {offsets = [14, 0], sizes = [2, 384], strides = [1, 1]} : vector<16x384xf32> to vector<2x384xf32>
    %96 = vector.extract_strided_slice %20 {offsets = [4, 0], sizes = [1, 384], strides = [1, 1]} : vector<6x384xf32> to vector<1x384xf32>
    %97 = vector.broadcast %96 : vector<1x384xf32> to vector<2x384xf32>
    %98 = arith.mulf %95, %97 : vector<2x384xf32>
    %99 = arith.addf %94, %98 : vector<2x384xf32>
    %100 = vector.extract_strided_slice %19 {offsets = [8, 0], sizes = [2, 384], strides = [1, 1]} : vector<16x384xf32> to vector<2x384xf32>
    %101 = vector.extract_strided_slice %20 {offsets = [5, 0], sizes = [1, 384], strides = [1, 1]} : vector<6x384xf32> to vector<1x384xf32>
    %102 = vector.broadcast %101 : vector<1x384xf32> to vector<2x384xf32>
    %103 = arith.mulf %100, %102 : vector<2x384xf32>
    %104 = arith.addf %99, %103 : vector<2x384xf32>
    %cst_23 = arith.constant 0.000000e+00 : f32
    %105 = vector.broadcast %cst_23 : f32 to vector<2x96xf32>
    %106 = vector.extract_strided_slice %51 {offsets = [0, 0], sizes = [2, 96], strides = [1, 1]} : vector<2x384xf32> to vector<2x96xf32>
    %107 = arith.negf %106 : vector<2x96xf32>
    %108 = math.exp %107 : vector<2x96xf32>
    %cst_24 = arith.constant 1.000000e+00 : f32
    %109 = vector.broadcast %cst_24 : f32 to vector<2x96xf32>
    %110 = arith.addf %109, %108 : vector<2x96xf32>
    %111 = arith.divf %109, %110 : vector<2x96xf32>
    %112 = vector.extract_strided_slice %51 {offsets = [0, 96], sizes = [2, 96], strides = [1, 1]} : vector<2x384xf32> to vector<2x96xf32>
    %113 = arith.negf %112 : vector<2x96xf32>
    %114 = math.exp %113 : vector<2x96xf32>
    %cst_25 = arith.constant 1.000000e+00 : f32
    %115 = vector.broadcast %cst_25 : f32 to vector<2x96xf32>
    %116 = arith.addf %115, %114 : vector<2x96xf32>
    %117 = arith.divf %115, %116 : vector<2x96xf32>
    %118 = vector.extract_strided_slice %51 {offsets = [0, 192], sizes = [2, 96], strides = [1, 1]} : vector<2x384xf32> to vector<2x96xf32>
    %119 = math.tanh %118 : vector<2x96xf32>
    %120 = vector.extract_strided_slice %51 {offsets = [0, 288], sizes = [2, 96], strides = [1, 1]} : vector<2x384xf32> to vector<2x96xf32>
    %121 = arith.negf %120 : vector<2x96xf32>
    %122 = math.exp %121 : vector<2x96xf32>
    %cst_26 = arith.constant 1.000000e+00 : f32
    %123 = vector.broadcast %cst_26 : f32 to vector<2x96xf32>
    %124 = arith.addf %123, %122 : vector<2x96xf32>
    %125 = arith.divf %123, %124 : vector<2x96xf32>
    %126 = arith.mulf %117, %105 : vector<2x96xf32>
    %127 = arith.mulf %111, %119 : vector<2x96xf32>
    %128 = arith.addf %126, %127 : vector<2x96xf32>
    %129 = math.tanh %128 : vector<2x96xf32>
    %130 = arith.mulf %125, %129 : vector<2x96xf32>
    %131 = arith.truncf %130 : vector<2x96xf32> to vector<2x96xbf16>
    %c0_27 = arith.constant 0 : index
    %c0_28 = arith.constant 0 : index
    %132 = vector.load %arg8[%c0_27, %c0_28] : memref<96x384xbf16, #tpu.memory_space<vmem>>, vector<96x384xbf16>
    %cst_29 = arith.constant dense<0.000000e+00> : vector<2x384xf32>
    %133 = tpu.matmul %131, %132, %cst_29 {dimension_numbers = #tpu.dot_dimension_numbers<[1], [0], [0], [1], [0, 0, 1, 1], [], []>} : vector<2x96xbf16>, vector<96x384xbf16>, vector<2x384xf32> -> vector<2x384xf32>
    %134 = arith.addf %82, %133 : vector<2x384xf32>
    %135 = vector.extract_strided_slice %134 {offsets = [0, 0], sizes = [2, 96], strides = [1, 1]} : vector<2x384xf32> to vector<2x96xf32>
    %136 = arith.negf %135 : vector<2x96xf32>
    %137 = math.exp %136 : vector<2x96xf32>
    %cst_30 = arith.constant 1.000000e+00 : f32
    %138 = vector.broadcast %cst_30 : f32 to vector<2x96xf32>
    %139 = arith.addf %138, %137 : vector<2x96xf32>
    %140 = arith.divf %138, %139 : vector<2x96xf32>
    %141 = vector.extract_strided_slice %134 {offsets = [0, 96], sizes = [2, 96], strides = [1, 1]} : vector<2x384xf32> to vector<2x96xf32>
    %142 = arith.negf %141 : vector<2x96xf32>
    %143 = math.exp %142 : vector<2x96xf32>
    %cst_31 = arith.constant 1.000000e+00 : f32
    %144 = vector.broadcast %cst_31 : f32 to vector<2x96xf32>
    %145 = arith.addf %144, %143 : vector<2x96xf32>
    %146 = arith.divf %144, %145 : vector<2x96xf32>
    %147 = vector.extract_strided_slice %134 {offsets = [0, 192], sizes = [2, 96], strides = [1, 1]} : vector<2x384xf32> to vector<2x96xf32>
    %148 = math.tanh %147 : vector<2x96xf32>
    %149 = vector.extract_strided_slice %134 {offsets = [0, 288], sizes = [2, 96], strides = [1, 1]} : vector<2x384xf32> to vector<2x96xf32>
    %150 = arith.negf %149 : vector<2x96xf32>
    %151 = math.exp %150 : vector<2x96xf32>
    %cst_32 = arith.constant 1.000000e+00 : f32
    %152 = vector.broadcast %cst_32 : f32 to vector<2x96xf32>
    %153 = arith.addf %152, %151 : vector<2x96xf32>
    %154 = arith.divf %152, %153 : vector<2x96xf32>
    %155 = arith.mulf %146, %128 : vector<2x96xf32>
    %156 = arith.mulf %140, %148 : vector<2x96xf32>
    %157 = arith.addf %155, %156 : vector<2x96xf32>
    %158 = math.tanh %157 : vector<2x96xf32>
    %159 = arith.mulf %154, %158 : vector<2x96xf32>
    %160 = arith.truncf %159 : vector<2x96xf32> to vector<2x96xbf16>
    %c0_33 = arith.constant 0 : index
    %c0_34 = arith.constant 0 : index
    %161 = vector.load %arg8[%c0_33, %c0_34] : memref<96x384xbf16, #tpu.memory_space<vmem>>, vector<96x384xbf16>
    %cst_35 = arith.constant dense<0.000000e+00> : vector<2x384xf32>
    %162 = tpu.matmul %160, %161, %cst_35 {dimension_numbers = #tpu.dot_dimension_numbers<[1], [0], [0], [1], [0, 0, 1, 1], [], []>} : vector<2x96xbf16>, vector<96x384xbf16>, vector<2x384xf32> -> vector<2x384xf32>
    %163 = arith.addf %93, %162 : vector<2x384xf32>
    %164 = vector.extract_strided_slice %163 {offsets = [0, 0], sizes = [2, 96], strides = [1, 1]} : vector<2x384xf32> to vector<2x96xf32>
    %165 = arith.negf %164 : vector<2x96xf32>
    %166 = math.exp %165 : vector<2x96xf32>
    %cst_36 = arith.constant 1.000000e+00 : f32
    %167 = vector.broadcast %cst_36 : f32 to vector<2x96xf32>
    %168 = arith.addf %167, %166 : vector<2x96xf32>
    %169 = arith.divf %167, %168 : vector<2x96xf32>
    %170 = vector.extract_strided_slice %163 {offsets = [0, 96], sizes = [2, 96], strides = [1, 1]} : vector<2x384xf32> to vector<2x96xf32>
    %171 = arith.negf %170 : vector<2x96xf32>
    %172 = math.exp %171 : vector<2x96xf32>
    %cst_37 = arith.constant 1.000000e+00 : f32
    %173 = vector.broadcast %cst_37 : f32 to vector<2x96xf32>
    %174 = arith.addf %173, %172 : vector<2x96xf32>
    %175 = arith.divf %173, %174 : vector<2x96xf32>
    %176 = vector.extract_strided_slice %163 {offsets = [0, 192], sizes = [2, 96], strides = [1, 1]} : vector<2x384xf32> to vector<2x96xf32>
    %177 = math.tanh %176 : vector<2x96xf32>
    %178 = vector.extract_strided_slice %163 {offsets = [0, 288], sizes = [2, 96], strides = [1, 1]} : vector<2x384xf32> to vector<2x96xf32>
    %179 = arith.negf %178 : vector<2x96xf32>
    %180 = math.exp %179 : vector<2x96xf32>
    %cst_38 = arith.constant 1.000000e+00 : f32
    %181 = vector.broadcast %cst_38 : f32 to vector<2x96xf32>
    %182 = arith.addf %181, %180 : vector<2x96xf32>
    %183 = arith.divf %181, %182 : vector<2x96xf32>
    %184 = arith.mulf %175, %157 : vector<2x96xf32>
    %185 = arith.mulf %169, %177 : vector<2x96xf32>
    %186 = arith.addf %184, %185 : vector<2x96xf32>
    %187 = math.tanh %186 : vector<2x96xf32>
    %188 = arith.mulf %183, %187 : vector<2x96xf32>
    %189 = arith.truncf %188 : vector<2x96xf32> to vector<2x96xbf16>
    %c0_39 = arith.constant 0 : index
    %c0_40 = arith.constant 0 : index
    %190 = vector.load %arg8[%c0_39, %c0_40] : memref<96x384xbf16, #tpu.memory_space<vmem>>, vector<96x384xbf16>
    %cst_41 = arith.constant dense<0.000000e+00> : vector<2x384xf32>
    %191 = tpu.matmul %189, %190, %cst_41 {dimension_numbers = #tpu.dot_dimension_numbers<[1], [0], [0], [1], [0, 0, 1, 1], [], []>} : vector<2x96xbf16>, vector<96x384xbf16>, vector<2x384xf32> -> vector<2x384xf32>
    %192 = arith.addf %104, %191 : vector<2x384xf32>
    %193 = vector.extract_strided_slice %192 {offsets = [0, 0], sizes = [2, 96], strides = [1, 1]} : vector<2x384xf32> to vector<2x96xf32>
    %194 = arith.negf %193 : vector<2x96xf32>
    %195 = math.exp %194 : vector<2x96xf32>
    %cst_42 = arith.constant 1.000000e+00 : f32
    %196 = vector.broadcast %cst_42 : f32 to vector<2x96xf32>
    %197 = arith.addf %196, %195 : vector<2x96xf32>
    %198 = arith.divf %196, %197 : vector<2x96xf32>
    %199 = vector.extract_strided_slice %192 {offsets = [0, 96], sizes = [2, 96], strides = [1, 1]} : vector<2x384xf32> to vector<2x96xf32>
    %200 = arith.negf %199 : vector<2x96xf32>
    %201 = math.exp %200 : vector<2x96xf32>
    %cst_43 = arith.constant 1.000000e+00 : f32
    %202 = vector.broadcast %cst_43 : f32 to vector<2x96xf32>
    %203 = arith.addf %202, %201 : vector<2x96xf32>
    %204 = arith.divf %202, %203 : vector<2x96xf32>
    %205 = vector.extract_strided_slice %192 {offsets = [0, 192], sizes = [2, 96], strides = [1, 1]} : vector<2x384xf32> to vector<2x96xf32>
    %206 = math.tanh %205 : vector<2x96xf32>
    %207 = vector.extract_strided_slice %192 {offsets = [0, 288], sizes = [2, 96], strides = [1, 1]} : vector<2x384xf32> to vector<2x96xf32>
    %208 = arith.negf %207 : vector<2x96xf32>
    %209 = math.exp %208 : vector<2x96xf32>
    %cst_44 = arith.constant 1.000000e+00 : f32
    %210 = vector.broadcast %cst_44 : f32 to vector<2x96xf32>
    %211 = arith.addf %210, %209 : vector<2x96xf32>
    %212 = arith.divf %210, %211 : vector<2x96xf32>
    %213 = arith.mulf %204, %186 : vector<2x96xf32>
    %214 = arith.mulf %198, %206 : vector<2x96xf32>
    %215 = arith.addf %213, %214 : vector<2x96xf32>
    %216 = math.tanh %215 : vector<2x96xf32>
    %217 = arith.mulf %212, %216 : vector<2x96xf32>
    %218 = tpu.concatenate %130, %159, %188, %217 in 1 : vector<2x96xf32>, vector<2x96xf32>, vector<2x96xf32>, vector<2x96xf32> -> vector<2x384xf32>
    %219 = arith.truncf %218 : vector<2x384xf32> to vector<2x384xbf16>
    %c0_45 = arith.constant 0 : index
    %c0_46 = arith.constant 0 : index
    %220 = vector.load %arg10[%c0_45, %c0_46] : memref<384x128xbf16, #tpu.memory_space<vmem>>, vector<384x128xbf16>
    %cst_47 = arith.constant dense<0.000000e+00> : vector<2x128xf32>
    %221 = tpu.matmul %219, %220, %cst_47 {dimension_numbers = #tpu.dot_dimension_numbers<[1], [0], [0], [1], [0, 0, 1, 1], [], []>} : vector<2x384xbf16>, vector<384x128xbf16>, vector<2x128xf32> -> vector<2x128xf32>
    %c0_48 = arith.constant 0 : index
    %c0_49 = arith.constant 0 : index
    %222 = vector.load %arg11[%c0_48, %c0_49] : memref<1x128xf32, #tpu.memory_space<vmem>>, vector<1x128xf32>
    %223 = vector.broadcast %222 : vector<1x128xf32> to vector<2x128xf32>
    %224 = arith.addf %221, %223 : vector<2x128xf32>
    %c0_50 = arith.constant 0 : index
    %c0_51 = arith.constant 0 : index
    %225 = vector.load %arg12[%c0_50, %c0_51] : memref<2x128xf32, #tpu.memory_space<vmem>>, vector<2x128xf32>
    tpu.vector_store %arg12[%c0_50, %c0_51], %224 {strides = array<i32>} : memref<2x128xf32, #tpu.memory_space<vmem>>, vector<2x128xf32>,
    return
  }
  func.func @transform_0(%arg0: i32) -> (i32, i32) {
    %c0_i32 = arith.constant 0 : i32
    %c0_i32_0 = arith.constant 0 : i32
    return %arg0, %c0_i32 : i32, i32
  }
  func.func @transform_1(%arg0: i32) -> (i32, i32) {
    %c0_i32 = arith.constant 0 : i32
    %c0_i32_0 = arith.constant 0 : i32
    %c0_i32_1 = arith.constant 0 : i32
    return %c0_i32, %c0_i32_0 : i32, i32
  }
  func.func @transform_2(%arg0: i32) -> (i32, i32) {
    %c0_i32 = arith.constant 0 : i32
    %c0_i32_0 = arith.constant 0 : i32
    %c0_i32_1 = arith.constant 0 : i32
    return %c0_i32, %c0_i32_0 : i32, i32
  }
  func.func @transform_3(%arg0: i32) -> (i32, i32) {
    %c0_i32 = arith.constant 0 : i32
    %c0_i32_0 = arith.constant 0 : i32
    %c0_i32_1 = arith.constant 0 : i32
    return %c0_i32, %c0_i32_0 : i32, i32
  }
  func.func @transform_4(%arg0: i32) -> (i32, i32) {
    %c0_i32 = arith.constant 0 : i32
    %c0_i32_0 = arith.constant 0 : i32
    %c0_i32_1 = arith.constant 0 : i32
    return %c0_i32, %c0_i32_0 : i32, i32
  }
  func.func @transform_5(%arg0: i32) -> (i32, i32) {
    %c0_i32 = arith.constant 0 : i32
    %c0_i32_0 = arith.constant 0 : i32
    %c0_i32_1 = arith.constant 0 : i32
    return %c0_i32, %c0_i32_0 : i32, i32
  }
  func.func @transform_6(%arg0: i32) -> (i32, i32) {
    %c0_i32 = arith.constant 0 : i32
    %c0_i32_0 = arith.constant 0 : i32
    %c0_i32_1 = arith.constant 0 : i32
    return %c0_i32, %c0_i32_0 : i32, i32
  }
  func.func @transform_7(%arg0: i32) -> (i32, i32) {
    %c0_i32 = arith.constant 0 : i32
    %c0_i32_0 = arith.constant 0 : i32
    %c0_i32_1 = arith.constant 0 : i32
    return %c0_i32, %c0_i32_0 : i32, i32
  }
  func.func @transform_8(%arg0: i32) -> (i32, i32) {
    %c0_i32 = arith.constant 0 : i32
    %c0_i32_0 = arith.constant 0 : i32
    %c0_i32_1 = arith.constant 0 : i32
    return %c0_i32, %c0_i32_0 : i32, i32
  }
  func.func @transform_9(%arg0: i32) -> (i32, i32) {
    %c0_i32 = arith.constant 0 : i32
    %c0_i32_0 = arith.constant 0 : i32
    %c0_i32_1 = arith.constant 0 : i32
    return %c0_i32, %c0_i32_0 : i32, i32
  }
  func.func @transform_10(%arg0: i32) -> (i32, i32) {
    %c0_i32 = arith.constant 0 : i32
    %c0_i32_0 = arith.constant 0 : i32
    %c0_i32_1 = arith.constant 0 : i32
    return %c0_i32, %c0_i32_0 : i32, i32
  }
  func.func @transform_11(%arg0: i32) -> (i32, i32) {
    %c0_i32 = arith.constant 0 : i32
    %c0_i32_0 = arith.constant 0 : i32
    return %arg0, %c0_i32 : i32, i32
  }
}

</mosaic_0001>

<bundles_post_ra>
// kernel: three_view_forward.1
= control target key start
LH: loop header
LB: loop body
LE: loop exit
PB: predicated region body
PF: predicated region fallthrough
CT: control target
= control target key end

     0   :  { %vm527_vm0 = vcmask 1040384   ;;  %vm478_vm1 = vcmask 277504   ;;  %s6061_s0 = inlined_call_operand.vmem [shape: bf16[256,162], index: 0, kind: input, shape index: {}]   ;;  %s6062_s1 = inlined_call_operand.vmem [shape: bf16[162,512], index: 1, kind: input, shape index: {}]   ;;  %s6063_s2 = inlined_call_operand.vmem [shape: f32[1,512], index: 2, kind: input, shape index: {}]   ;;  %s6064_s3 = inlined_call_operand.vmem [shape: bf16[16,256], index: 3, kind: input, shape index: {}]   ;;  %s6065_s4 = inlined_call_operand.vmem [shape: bf16[512,32], index: 4, kind: input, shape index: {}]   ;;  %s6066_s5 = inlined_call_operand.vmem [shape: bf16[32,384], index: 5, kind: input, shape index: {}]   ;;  %s6067_s6 = inlined_call_operand.vmem [shape: f32[1,384], index: 6, kind: input, shape index: {}]   ;;  %s6068_s7 = inlined_call_operand.vmem [shape: bf16[96,384], index: 7, kind: input, shape index: {}]   ;;  %s6069_s8 = inlined_call_operand.vmem [shape: f32[6,384], index: 8, kind: input, shape index: {}]   ;;  %s6070_s9 = inlined_call_operand.vmem [shape: bf16[384,128], index: 9, kind: input, shape index: {}]   ;;  %s6071_s10 = inlined_call_operand.vmem [shape: f32[1,128], index: 10, kind: input, shape index: {}]   ;;  %s6072_s11 = inlined_call_operand.hbm [shape: f32[2,128], index: 11, kind: output, shape index: {}]  }
   0x1   :  { %v3523_v0 = vld [vmem:[%s6062_s1 + $0xe0] sm:$0xf]  ;;  %v4047_v1 = vld [vmem:[%s6062_s1 + $0xec] sm:$0xf0]  ;;  %v4045_v2 = vld [vmem:[%s6062_s1 + $0xe4] sm:$0xf] }
   0x2   :  { %v3524_v3 = vor.u32 %v4047_v1, %v3523_v0  ;;  %v3525_v4 = vld [vmem:[%s6062_s1 + $0xf0] sm:$0xf0]  ;;  %v112_v5 = vld [vmem:[%s6062_s1 + $0x140] sm:$0x11]  ;;  %v4043_v10 = vld [vmem:[%s6062_s1 + $0xcc] sm:$0xf0] }
   0x3   :  { %v3528_v6 = vor.u32 %v4045_v2, %v3525_v4  ;;  %v390_v7 = vunpack.c.l.b16 %v112_v5  ;;  %v391_v8 = vunpack.c.h.b16 %v112_v5  ;;  %v3507_v9 = vld [vmem:[%s6062_s1 + $0xc0] sm:$0xf]  ;;  %v4041_v11 = vld [vmem:[%s6062_s1 + $0xc4] sm:$0xf]  ;;  %v3509_v12 = vld [vmem:[%s6062_s1 + $0xd0] sm:$0xf0] }
   0x4   :  { %540 = vmatpush.bf16.msra.mxu0 %v3524_v3  ;;  %v3555_v13 = vld [vmem:[%s6062_s1 + $0x120] sm:$0xf]  ;;  %v4055_v14 = vld [vmem:[%s6062_s1 + $0x12c] sm:$0xf0]  ;;  %v3508_v17 = vor.u32 %v4043_v10, %v3507_v9  ;;  %v3512_v18 = vor.u32 %v4041_v11, %v3509_v12  ;;  %v4053_v19 = vld [vmem:[%s6062_s1 + $0x124] sm:$0xf] }
   0x5   :  { %718 = vmatpush.bf16.msra.mxu2 %v3528_v6  ;;  %v434_v15 = vpack.c.b16 %v390_v7, %v390_v7  ;;  %v435_v16 = vpack.c.b16 %v391_v8, %v391_v8  ;;  %v3557_v20 = vld [vmem:[%s6062_s1 + $0x130] sm:$0xf0]  ;;  %v3491_v21 = vld [vmem:[%s6062_s1 + $0xa0] sm:$0xf]  ;;  %v4039_v22 = vld [vmem:[%s6062_s1 + $0xac] sm:$0xf0]  ;;  %v3556_v27 = vor.u32 %v4055_v14, %v3555_v13 }
   0x6   :  { %v4037_v23 = vld [vmem:[%s6062_s1 + $0xa4] sm:$0xf]  ;;  %v3493_v24 = vld [vmem:[%s6062_s1 + $0xb0] sm:$0xf0]  ;;  %v3560_v28 = vor.u32 %v4053_v19, %v3557_v20  ;;  %v3539_v29 = vld [vmem:[%s6062_s1 + $0x100] sm:$0xf]  ;;  %v3492_v31 = vor.u32 %v4039_v22, %v3491_v21 }
   0x7   :  { %v529_v25 = vsel %vm527_vm0, %v434_v15, 0  ;;  %v532_v26 = vsel %vm527_vm0, %v435_v16, 0  ;;  %v4051_v30 = vld [vmem:[%s6062_s1 + $0x10c] sm:$0xf0]  ;;  %v3496_v32 = vor.u32 %v4037_v23, %v3493_v24  ;;  %v4049_v33 = vld [vmem:[%s6062_s1 + $0x104] sm:$0xf] }
   0x8   :  { %634 = vmatpush.bf16.msra.mxu1 %v529_v25  ;;  %812 = vmatpush.bf16.msra.mxu3 %v532_v26  ;;  %v3541_v34 = vld [vmem:[%s6062_s1 + $0x110] sm:$0xf0]  ;;  %v3475_v35 = vld [vmem:[%s6062_s1 + $0x80] sm:$0xf]  ;;  %v4035_v36 = vld [vmem:[%s6062_s1 + $0x8c] sm:$0xf0]  ;;  %v3540_v39 = vor.u32 %v4051_v30, %v3539_v29 }
   0x9   :  { %541 = vmatpush.bf16.msra.mxu0 %v3508_v17  ;;  %719 = vmatpush.bf16.msra.mxu2 %v3512_v18  ;;  %v4033_v37 = vld [vmem:[%s6062_s1 + $0x84] sm:$0xf]  ;;  %v3477_v38 = vld [vmem:[%s6062_s1 + $0x90] sm:$0xf0]  ;;  %v3544_v40 = vor.u32 %v4049_v33, %v3541_v34  ;;  %v3285_v42 = vld [vmem:[%s6061_s0 + $0x8] sm:$0xf0]  ;;  %v3476_v43 = vor.u32 %v4035_v36, %v3475_v35 }
   0xa   :  { %v3985_v41 = vld [vmem:[%s6061_s0 + $0x4] sm:$0xf]  ;;  %v3480_v44 = vor.u32 %v4033_v37, %v3477_v38  ;;  %v3459_v45 = vld [vmem:[%s6062_s1 + $0x60] sm:$0xf]  ;;  %v4031_v46 = vld [vmem:[%s6062_s1 + $0x6c] sm:$0xf0] }
   0xb   :  { %v4029_v47 = vld [vmem:[%s6062_s1 + $0x64] sm:$0xf]  ;;  %v3461_v48 = vld [vmem:[%s6062_s1 + $0x70] sm:$0xf0]  ;;  %v4410_v49 = vor.u32 %v3985_v41, %v3285_v42  ;;  %v3460_v50 = vor.u32 %v4031_v46, %v3459_v45  ;;  %v3443_v52 = vld [vmem:[%s6062_s1 + $0x40] sm:$0xf] }
   0xc   :  { %635 = vmatpush.bf16.msra.mxu1 %v3556_v27  ;;  %813 = vmatpush.bf16.msra.mxu3 %v3560_v28  ;;  %v3464_v51 = vor.u32 %v4029_v47, %v3461_v48  ;;  %v4027_v53 = vld [vmem:[%s6062_s1 + $0x4c] sm:$0xf0]  ;;  %v4025_v54 = vld [vmem:[%s6062_s1 + $0x44] sm:$0xf]  ;;  %v3445_v55 = vld [vmem:[%s6062_s1 + $0x50] sm:$0xf0] }
   0xd   :  { %542 = vmatpush.bf16.msra.mxu0 %v3492_v31  ;;  %720 = vmatpush.bf16.msra.mxu2 %v3496_v32 }
  0x10   :  { %636 = vmatpush.bf16.msra.mxu1 %v3540_v39  ;;  %814 = vmatpush.bf16.msra.mxu3 %v3544_v40 }
  0x11   :  { %543 = vmatpush.bf16.msra.mxu0 %v3476_v43  ;;  %721 = vmatpush.bf16.msra.mxu2 %v3480_v44 }
  0x13   :  { %3569 = vmatmul.msk.bf16.vlgmr.msra.gmra.mxu1 %vm478_vm1, %v4410_v49  ;;  %3585 = vmatmul.msk.bf16.vlgmr.msra.gmra.mxu3 %vm478_vm1, %v4410_v49 }
  0x14   :  { %16 = vsyncpa [#allocation4], 0  ;;  %v3444_v56 = vor.u32 %v4027_v53, %v3443_v52  ;;  %v3448_v57 = vor.u32 %v4025_v54, %v3445_v55  ;;  %v3427_v58 = vld [vmem:[%s6062_s1 + $0x20] sm:$0xf]  ;;  %v4023_v59 = vld [vmem:[%s6062_s1 + $0x2c] sm:$0xf0] }
  0x15   :  { %544 = vmatpush.bf16.msra.mxu0 %v3460_v50  ;;  %722 = vmatpush.bf16.msra.mxu2 %v3464_v51  ;;  %v4021_v60 = vld [vmem:[%s6062_s1 + $0x24] sm:$0xf]  ;;  %v3429_v61 = vld [vmem:[%s6062_s1 + $0x30] sm:$0xf0]  ;;  %v3428_v62 = vor.u32 %v4023_v59, %v3427_v58  ;;  %v3411_v0 = vld [vmem:[%s6062_s1] sm:$0xf] }
  0x16   :  { %v3432_v63 = vor.u32 %v4021_v60, %v3429_v61  ;;  %v4019_v1 = vld [vmem:[%s6062_s1 + $0xc] sm:$0xf0]  ;;  %v4017_v2 = vld [vmem:[%s6062_s1 + $0x4] sm:$0xf]  ;;  %v3413_v3 = vld [vmem:[%s6062_s1 + $0x10] sm:$0xf0] }
  0x17   :  { %v3987_v4 = vld [vmem:[%s6061_s0 + $0x14] sm:$0xf]  ;;  %v3293_v5 = vld [vmem:[%s6061_s0 + $0x18] sm:$0xf0]  ;;  %v3412_v6 = vor.u32 %v4019_v1, %v3411_v0  ;;  %v3416_v7 = vor.u32 %v4017_v2, %v3413_v3  ;;  %v3283_v8 = vld [vmem:[%s6061_s0] sm:$0xf] }
  0x18   :  { %v3986_v9 = vld [vmem:[%s6061_s0 + $0x4] sm:$0xf0]  ;;  %v4464_v10 = vor.u32 %v3987_v4, %v3293_v5  ;;  %v3989_v12 = vld [vmem:[%s6061_s0 + $0x24] sm:$0xf]  ;;  %v3301_v13 = vld [vmem:[%s6061_s0 + $0x28] sm:$0xf0] }
  0x19   :  { %545 = vmatpush.bf16.msra.mxu0 %v3444_v56  ;;  %723 = vmatpush.bf16.msra.mxu2 %v3448_v57  ;;  %v4466_v11 = vor.u32 %v3986_v9, %v3283_v8  ;;  %v3291_v14 = vld [vmem:[%s6061_s0 + $0x10] sm:$0xf]  ;;  %v3988_v15 = vld [vmem:[%s6061_s0 + $0x14] sm:$0xf0]  ;;  %v4486_v16 = vor.u32 %v3989_v12, %v3301_v13  ;;  %v3991_v18 = vld [vmem:[%s6061_s0 + $0x34] sm:$0xf] }
  0x1a   :  { %v4488_v17 = vor.u32 %v3988_v15, %v3291_v14  ;;  %v3309_v19 = vld [vmem:[%s6061_s0 + $0x38] sm:$0xf0]  ;;  %v3299_v20 = vld [vmem:[%s6061_s0 + $0x20] sm:$0xf]  ;;  %v3990_v21 = vld [vmem:[%s6061_s0 + $0x24] sm:$0xf0] }
  0x1b   :  { %v4508_v22 = vor.u32 %v3991_v18, %v3309_v19  ;;  %v4510_v23 = vor.u32 %v3990_v21, %v3299_v20  ;;  %v3993_v24 = vld [vmem:[%s6061_s0 + $0x44] sm:$0xf]  ;;  %v3317_v25 = vld [vmem:[%s6061_s0 + $0x48] sm:$0xf0]  ;;  %v3307_v26 = vld [vmem:[%s6061_s0 + $0x30] sm:$0xf] }
  0x1c   :  { %v3992_v27 = vld [vmem:[%s6061_s0 + $0x34] sm:$0xf0]  ;;  %v4530_v28 = vor.u32 %v3993_v24, %v3317_v25  ;;  %v3995_v30 = vld [vmem:[%s6061_s0 + $0x54] sm:$0xf]  ;;  %v3325_v31 = vld [vmem:[%s6061_s0 + $0x58] sm:$0xf0] }
  0x1d   :  { %546 = vmatpush.bf16.msra.mxu0 %v3428_v62  ;;  %724 = vmatpush.bf16.msra.mxu2 %v3432_v63  ;;  %v4532_v29 = vor.u32 %v3992_v27, %v3307_v26  ;;  %v3315_v32 = vld [vmem:[%s6061_s0 + $0x40] sm:$0xf]  ;;  %v3994_v33 = vld [vmem:[%s6061_s0 + $0x44] sm:$0xf0]  ;;  %v4552_v34 = vor.u32 %v3995_v30, %v3325_v31  ;;  %v3997_v36 = vld [vmem:[%s6061_s0 + $0x64] sm:$0xf] }
  0x1e   :  { %v4554_v35 = vor.u32 %v3994_v33, %v3315_v32  ;;  %v3333_v37 = vld [vmem:[%s6061_s0 + $0x68] sm:$0xf0]  ;;  %v3323_v38 = vld [vmem:[%s6061_s0 + $0x50] sm:$0xf]  ;;  %v3996_v39 = vld [vmem:[%s6061_s0 + $0x54] sm:$0xf0] }
  0x1f   :  { %v4574_v40 = vor.u32 %v3997_v36, %v3333_v37  ;;  %v4576_v41 = vor.u32 %v3996_v39, %v3323_v38  ;;  %v3999_v42 = vld [vmem:[%s6061_s0 + $0x74] sm:$0xf]  ;;  %v3341_v43 = vld [vmem:[%s6061_s0 + $0x78] sm:$0xf0]  ;;  %v3331_v44 = vld [vmem:[%s6061_s0 + $0x60] sm:$0xf] }
  0x20   :  { %v3998_v45 = vld [vmem:[%s6061_s0 + $0x64] sm:$0xf0]  ;;  %v4596_v46 = vor.u32 %v3999_v42, %v3341_v43  ;;  %v4001_v48 = vld [vmem:[%s6061_s0 + $0x84] sm:$0xf]  ;;  %v3349_v50 = vld [vmem:[%s6061_s0 + $0x88] sm:$0xf0] }
  0x21   :  { %547 = vmatpush.bf16.msra.mxu0 %v3412_v6  ;;  %725 = vmatpush.bf16.msra.mxu2 %v3416_v7  ;;  %v4598_v47 = vor.u32 %v3998_v45, %v3331_v44  ;;  %v3339_v51 = vld [vmem:[%s6061_s0 + $0x70] sm:$0xf]  ;;  %v4000_v52 = vld [vmem:[%s6061_s0 + $0x74] sm:$0xf0]  ;;  %v4618_v53 = vor.u32 %v4001_v48, %v3349_v50  ;;  %v114_v58 = vld [vmem:[%s6063_s2] sm:$0xf] }
  0x22   :  { %v4620_v55 = vor.u32 %v4000_v52, %v3339_v51  ;;  %v4003_v59 = vld [vmem:[%s6061_s0 + $0x94] sm:$0xf]  ;;  %v3357_v60 = vld [vmem:[%s6061_s0 + $0x98] sm:$0xf0]  ;;  %v3347_v61 = vld [vmem:[%s6061_s0 + $0x80] sm:$0xf] }
  0x23   :  { %3570 = vmatmul.msk.bf16.gmra.mxu1 %vm478_vm1, %v4464_v10  ;;  %3586 = vmatmul.msk.bf16.gmra.mxu3 %vm478_vm1, %v4464_v10  ;;  %v4002_v62 = vld [vmem:[%s6061_s0 + $0x84] sm:$0xf0]  ;;  %v4643_v0 = vperm.slane %v114_v58, 0  ;;  %v4645_v1 = vor.u32 %v4003_v59, %v3357_v60  ;;  %v4656_v7 = vperm.slane %v114_v58, 1  ;;  %v4005_v20 = vld [vmem:[%s6061_s0 + $0xa4] sm:$0xf] }
  0x24   :  { %548 = vmatmul.bf16.vlgmr.msra.gmra.mxu0 %v4466_v11  ;;  %726 = vmatmul.bf16.vlgmr.msra.gmra.mxu2 %v4466_v11  ;;  %v4647_v3 = vor.u32 %v4002_v62, %v3347_v61  ;;  %v3365_v21 = vld [vmem:[%s6061_s0 + $0xa8] sm:$0xf0]  ;;  %v3355_v24 = vld [vmem:[%s6061_s0 + $0x90] sm:$0xf]  ;;  %v4004_v25 = vld [vmem:[%s6061_s0 + $0x94] sm:$0xf0] }
  0x25   :  { %v4672_v32 = vor.u32 %v4005_v20, %v3365_v21  ;;  %v4677_v38 = vor.u32 %v4004_v25, %v3355_v24  ;;  %v4007_v61 = vld [vmem:[%s6061_s0 + $0xb4] sm:$0xf]  ;;  %v3373_v62 = vld [vmem:[%s6061_s0 + $0xb8] sm:$0xf0]  ;;  %vm2161_vm2 = vcmask 261120   ;;  %vm2409_vm6 = vcmask 523264  }
  0x26   :  { %s4253_s24 = smov 32   ;;  %s3272_s14 = sshll.u32 %s6072_s11, 4  ;;  %s3273_s14 = int_to_ptr.hbm [resolvable:$true] %s3272_s14 }
  0x33   :  { %3571 = vmatmul.msk.bf16.gmra.mxu1 %vm478_vm1, %v4486_v16  ;;  %3587 = vmatmul.msk.bf16.gmra.mxu3 %vm478_vm1, %v4486_v16 }
  0x34   :  { %553 = vmatmul.bf16.gmra.mxu0 %v4488_v17  ;;  %731 = vmatmul.bf16.gmra.mxu2 %v4488_v17 }
  0x43   :  { %3572 = vmatmul.msk.bf16.gmra.mxu1 %vm478_vm1, %v4508_v22  ;;  %3588 = vmatmul.msk.bf16.gmra.mxu3 %vm478_vm1, %v4508_v22 }
  0x44   :  { %558 = vmatmul.bf16.gmra.mxu0 %v4510_v23  ;;  %736 = vmatmul.bf16.gmra.mxu2 %v4510_v23 }
  0x53   :  { %3573 = vmatmul.msk.bf16.gmra.mxu1 %vm478_vm1, %v4530_v28  ;;  %3589 = vmatmul.msk.bf16.gmra.mxu3 %vm478_vm1, %v4530_v28 }
  0x54   :  { %563 = vmatmul.bf16.gmra.mxu0 %v4532_v29  ;;  %741 = vmatmul.bf16.gmra.mxu2 %v4532_v29 }
  0x63   :  { %3574 = vmatmul.msk.bf16.gmra.mxu1 %vm478_vm1, %v4552_v34  ;;  %3590 = vmatmul.msk.bf16.gmra.mxu3 %vm478_vm1, %v4552_v34 }
  0x64   :  { %568 = vmatmul.bf16.gmra.mxu0 %v4554_v35  ;;  %746 = vmatmul.bf16.gmra.mxu2 %v4554_v35 }
  0x73   :  { %3575 = vmatmul.msk.bf16.gmra.mxu1 %vm478_vm1, %v4574_v40  ;;  %3591 = vmatmul.msk.bf16.gmra.mxu3 %vm478_vm1, %v4574_v40 }
  0x74   :  { %573 = vmatmul.bf16.gmra.mxu0 %v4576_v41  ;;  %751 = vmatmul.bf16.gmra.mxu2 %v4576_v41 }
  0x83   :  { %3576 = vmatmul.msk.bf16.gmra.mxu1 %vm478_vm1, %v4596_v46  ;;  %3592 = vmatmul.msk.bf16.gmra.mxu3 %vm478_vm1, %v4596_v46 }
  0x84   :  { %578 = vmatmul.bf16.gmra.mxu0 %v4598_v47  ;;  %756 = vmatmul.bf16.gmra.mxu2 %v4598_v47 }
  0x90   :  { %v638_v54 = vpop.f32.mrf.mxu1 }
  0x93   :  { %3577 = vmatmul.msk.bf16.gmra.mxu1 %vm478_vm1, %v4618_v53  ;;  %3593 = vmatmul.msk.bf16.gmra.mxu3 %vm478_vm1, %v4618_v53 }
  0x94   :  { %583 = vmatmul.bf16.gmra.mxu0 %v4620_v55  ;;  %761 = vmatmul.bf16.gmra.mxu2 %v4620_v55 }
  0x96   :  { %v816_v56 = vpop.f32.mrf.mxu3 }
  0x98   :  { %v640_v57 = vpop.f32.mrf.mxu1 }
  0x9e   :  { %v818_v63 = vpop.f32.mrf.mxu3 }
  0xa0   :  { %v643_v2 = vpop.f32.mrf.mxu1 }
  0xa1   :  { %v549_v4 = vpop.f32.mrf.mxu0 }
  0xa2   :  { %v550_v5 = vadd.f32 %v549_v4, %v4643_v0 }
  0xa3   :  { %3578 = vmatmul.msk.bf16.gmra.mxu1 %vm478_vm1, %v4645_v1  ;;  %3594 = vmatmul.msk.bf16.gmra.mxu3 %vm478_vm1, %v4645_v1 }
  0xa4   :  { %v639_v6 = vadd.f32 %v638_v54, %v550_v5  ;;  %588 = vmatmul.bf16.gmra.mxu0 %v4647_v3  ;;  %766 = vmatmul.bf16.gmra.mxu2 %v4647_v3 }
  0xa6   :  { %v821_v8 = vpop.f32.mrf.mxu3  ;;  %v1252_v26 = vmax.f32 %v639_v6, 0.0 }
  0xa7   :  { %v727_v9 = vpop.f32.mrf.mxu2 }
  0xa8   :  { %v728_v12 = vadd.f32 %v727_v9, %v4656_v7  ;;  %v645_v13 = vpop.f32.mrf.mxu1  ;;  %v4702_v9 = vor.u32 %v4007_v61, %v3373_v62 }
  0xa9   :  { %v551_v14 = vpop.f32.mrf.mxu0 }
  0xaa   :  { %v817_v15 = vadd.f32 %v816_v56, %v728_v12  ;;  %v552_v18 = vadd.f32 %v551_v14, %v4643_v0 }
  0xac   :  { %v641_v19 = vadd.f32 %v640_v57, %v552_v18  ;;  %v1253_v44 = vmax.f32 %v817_v15, 0.0 }
  0xae   :  { %v1256_v27 = vmax.f32 %v641_v19, 0.0  ;;  %v823_v30 = vpop.f32.mrf.mxu3 }
  0xaf   :  { %v729_v31 = vpop.f32.mrf.mxu2 }
  0xb0   :  { %v4674_v33 = vpack.c.bf16 %v1256_v27, %v1252_v26  ;;  %v730_v36 = vadd.f32 %v729_v31, %v4656_v7  ;;  %v648_v37 = vpop.f32.mrf.mxu1 }
  0xb1   :  { %v554_v39 = vpop.f32.mrf.mxu0 }
  0xb2   :  { %v819_v42 = vadd.f32 %v818_v63, %v730_v36  ;;  %v555_v43 = vadd.f32 %v554_v39, %v4643_v0  ;;  %v3363_v63 = vld [vmem:[%s6061_s0 + $0xa0] sm:$0xf] }
  0xb3   :  { %3579 = vmatmul.msk.bf16.gmra.mxu1 %vm478_vm1, %v4672_v32  ;;  %3595 = vmatmul.msk.bf16.gmra.mxu3 %vm478_vm1, %v4672_v32 }
  0xb4   :  { %v1257_v45 = vmax.f32 %v819_v42, 0.0  ;;  %v644_v48 = vadd.f32 %v643_v2, %v555_v43  ;;  %593 = vmatmul.bf16.gmra.mxu0 %v4677_v38  ;;  %771 = vmatmul.bf16.gmra.mxu2 %v4677_v38  ;;  %v4006_v2 = vld [vmem:[%s6061_s0 + $0xa4] sm:$0xf0] }
  0xb5   :  { %v4705_v14 = vor.u32 %v4006_v2, %v3363_v63  ;;  %v3531_v2 = vld [vmem:[%s6062_s1 + $0xe8] sm:$0xf] }
  0xb6   :  { %v4686_v50 = vpack.c.bf16 %v1257_v45, %v1253_v44  ;;  %v826_v51 = vpop.f32.mrf.mxu3  ;;  %v1260_v4 = vmax.f32 %v644_v48, 0.0  ;;  %v3381_v45 = vld [vmem:[%s6061_s0 + $0xc8] sm:$0xf0]  ;;  %v3371_v48 = vld [vmem:[%s6061_s0 + $0xb0] sm:$0xf] }
  0xb7   :  { %v732_v52 = vpop.f32.mrf.mxu2 }
  0xb8   :  { %v733_v54 = vadd.f32 %v732_v52, %v4656_v7  ;;  %v650_v56 = vpop.f32.mrf.mxu1  ;;  %v4008_v52 = vld [vmem:[%s6061_s0 + $0xb4] sm:$0xf0] }
  0xb9   :  { %v556_v57 = vpop.f32.mrf.mxu0  ;;  %v4737_v61 = vor.u32 %v4008_v52, %v3371_v48 }
  0xba   :  { %v822_v58 = vadd.f32 %v821_v8, %v733_v54  ;;  %v557_v59 = vadd.f32 %v556_v57, %v4643_v0 }
  0xbc   :  { %v646_v60 = vadd.f32 %v645_v13, %v557_v59  ;;  %v1261_v21 = vmax.f32 %v822_v58, 0.0 }
  0xbe   :  { %v1264_v5 = vmax.f32 %v646_v60, 0.0  ;;  %v828_v6 = vpop.f32.mrf.mxu3 }
  0xbf   :  { %v734_v8 = vpop.f32.mrf.mxu2 }
  0xc0   :  { %v735_v12 = vadd.f32 %v734_v8, %v4656_v7  ;;  %v653_v13 = vpop.f32.mrf.mxu1  ;;  %v4707_v15 = vpack.c.bf16 %v1264_v5, %v1260_v4  ;;  %v4048_v8 = vld [vmem:[%s6062_s1 + $0xf4] sm:$0xf0] }
  0xc1   :  { %v559_v18 = vpop.f32.mrf.mxu0 }
  0xc2   :  { %v824_v19 = vadd.f32 %v823_v30, %v735_v12  ;;  %v560_v20 = vadd.f32 %v559_v18, %v4643_v0  ;;  %v3532_v12 = vor.u32 %v4048_v8, %v3531_v2 }
  0xc3   :  { %3580 = vmatmul.msk.bf16.gmra.mxu1 %vm478_vm1, %v4702_v9  ;;  %3596 = vmatmul.msk.bf16.gmra.mxu3 %vm478_vm1, %v4702_v9 }
  0xc4   :  { %v1265_v24 = vmax.f32 %v824_v19, 0.0  ;;  %v649_v25 = vadd.f32 %v648_v37, %v560_v20  ;;  %598 = vmatmul.bf16.gmra.mxu0 %v4705_v14  ;;  %776 = vmatmul.bf16.gmra.mxu2 %v4705_v14  ;;  %v4009_v37 = vld [vmem:[%s6061_s0 + $0xc4] sm:$0xf] }
  0xc5   :  { %v4732_v58 = vor.u32 %v4009_v37, %v3381_v45  ;;  %896 = vmatpush.bf16.msrb.mxu1 %v3532_v12 }
  0xc6   :  { %v831_v26 = vpop.f32.mrf.mxu3  ;;  %v4716_v27 = vpack.c.bf16 %v1265_v24, %v1261_v21  ;;  %v4044_v21 = vld [vmem:[%s6062_s1 + $0xd4] sm:$0xf0] }
  0xc7   :  { %v737_v31 = vpop.f32.mrf.mxu2 }
  0xc8   :  { %v738_v30 = vadd.f32 %v737_v31, %v4656_v7  ;;  %v655_v36 = vpop.f32.mrf.mxu1 }
  0xc9   :  { %v561_v39 = vpop.f32.mrf.mxu0 }
  0xca   :  { %v827_v42 = vadd.f32 %v826_v51, %v738_v30  ;;  %v562_v43 = vadd.f32 %v561_v39, %v4643_v0  ;;  %v1268_v51 = vmax.f32 %v649_v25, 0.0 }
  0xcc   :  { %v651_v44 = vadd.f32 %v650_v56, %v562_v43  ;;  %v1269_v18 = vmax.f32 %v827_v42, 0.0  ;;  %v3499_v43 = vld [vmem:[%s6062_s1 + $0xa8] sm:$0xf] }
  0xce   :  { %v1272_v54 = vmax.f32 %v651_v44, 0.0  ;;  %v833_v57 = vpop.f32.mrf.mxu3  ;;  %v4040_v44 = vld [vmem:[%s6062_s1 + $0xb4] sm:$0xf0] }
  0xcf   :  { %v739_v56 = vpop.f32.mrf.mxu2  ;;  %v3500_v48 = vor.u32 %v4040_v44, %v3499_v43  ;;  %v4032_v43 = vld [vmem:[%s6062_s1 + $0x74] sm:$0xf0]  ;;  %v4046_v44 = vld [vmem:[%s6062_s1 + $0xec] sm:$0xf] }
  0xd0   :  { %v740_v59 = vadd.f32 %v739_v56, %v4656_v7  ;;  %v4735_v60 = vpop.f32.mrf.mxu1  ;;  %v4739_v62 = vpack.c.bf16 %v1272_v54, %v1268_v51  ;;  %v4011_v51 = vld [vmem:[%s6061_s0 + $0xd4] sm:$0xf]  ;;  %v3389_v54 = vld [vmem:[%s6061_s0 + $0xd8] sm:$0xf0]  ;;  %v3379_v56 = vld [vmem:[%s6061_s0 + $0xc0] sm:$0xf] }
  0xd1   :  { %v564_v63 = vpop.f32.mrf.mxu0  ;;  %v4794_v12 = vor.u32 %v4011_v51, %v3389_v54 }
  0xd2   :  { %v829_v4 = vadd.f32 %v828_v6, %v740_v59  ;;  %v565_v5 = vadd.f32 %v564_v63, %v4643_v0  ;;  %v3515_v6 = vld [vmem:[%s6062_s1 + $0xc8] sm:$0xf]  ;;  %v4036_v59 = vld [vmem:[%s6062_s1 + $0x94] sm:$0xf0] }
  0xd3   :  { %3581 = vmatmul.msk.bf16.gmra.mxu1 %vm478_vm1, %v4732_v58  ;;  %3597 = vmatmul.msk.bf16.gmra.mxu3 %vm478_vm1, %v4732_v58  ;;  %v3516_v25 = vor.u32 %v4044_v21, %v3515_v6 }
  0xd4   :  { %v1273_v19 = vmax.f32 %v829_v4, 0.0  ;;  %v654_v20 = vadd.f32 %v653_v13, %v565_v5  ;;  %603 = vmatmul.bf16.gmra.mxu0 %v4737_v61  ;;  %781 = vmatmul.bf16.gmra.mxu2 %v4737_v61 }
  0xd5   :  { %897 = vmatpush.bf16.msrb.mxu1 %v3516_v25 }
  0xd6   :  { %v4760_v24 = vpop.f32.mrf.mxu3  ;;  %v4762_v31 = vpack.c.bf16 %v1273_v19, %v1269_v18  ;;  %v1276_v63 = vmax.f32 %v654_v20, 0.0  ;;  %v3467_v20 = vld [vmem:[%s6062_s1 + $0x68] sm:$0xf] }
  0xd7   :  { %v742_v30 = vpop.f32.mrf.mxu2 }
  0xd8   :  { %v743_v13 = vadd.f32 %v742_v30, %v4656_v7  ;;  %v4765_v39 = vpop.f32.mrf.mxu1 }
  0xd9   :  { %v566_v42 = vpop.f32.mrf.mxu0  ;;  %898 = vmatpush.bf16.msrb.mxu1 %v3500_v48  ;;  %v3533_v48 = vld [vmem:[%s6062_s1 + $0xf8] sm:$0xf0] }
  0xda   :  { %v832_v37 = vadd.f32 %v831_v26, %v743_v13  ;;  %v567_v45 = vadd.f32 %v566_v42, %v4643_v0  ;;  %v4010_v26 = vld [vmem:[%s6061_s0 + $0xc4] sm:$0xf0] }
  0xdb   :  { %v4799_v6 = vor.u32 %v4010_v26, %v3379_v56  ;;  %v113_v42 = vld [vmem:[%s6062_s1 + $0x148] sm:$0x11]  ;;  %v3536_v56 = vor.u32 %v4046_v44, %v3533_v48 }
  0xdc   :  { %v656_v52 = vadd.f32 %v655_v36, %v567_v45  ;;  %v3483_v36 = vld [vmem:[%s6062_s1 + $0x88] sm:$0xf]  ;;  %v3468_v45 = vor.u32 %v4032_v43, %v3467_v20 }
  0xdd   :  { %v3484_v5 = vor.u32 %v4036_v59, %v3483_v36  ;;  %v3451_v36 = vld [vmem:[%s6062_s1 + $0x48] sm:$0xf]  ;;  %v4028_v59 = vld [vmem:[%s6062_s1 + $0x54] sm:$0xf0]  ;;  %1074 = vmatpush.bf16.msrb.mxu0 %v3536_v56 }
  0xde   :  { %v1280_v2 = vmax.f32 %v656_v52, 0.0  ;;  %v4792_v4 = vpop.f32.mrf.mxu3  ;;  %v1277_v52 = vmax.f32 %v832_v37, 0.0  ;;  %v3435_v44 = vld [vmem:[%s6062_s1 + $0x28] sm:$0xf] }
  0xdf   :  { %v744_v8 = vpop.f32.mrf.mxu2  ;;  %899 = vmatpush.bf16.msrb.mxu1 %v3484_v5  ;;  %v3517_v5 = vld [vmem:[%s6062_s1 + $0xd8] sm:$0xf0] }
  0xe0   :  { %v745_v18 = vadd.f32 %v744_v8, %v4656_v7  ;;  %v4797_v19 = vpop.f32.mrf.mxu1  ;;  %v4801_v21 = vpack.c.bf16 %v1280_v2, %v1276_v63  ;;  %v3452_v63 = vor.u32 %v4028_v59, %v3451_v36  ;;  %v4042_v2 = vld [vmem:[%s6062_s1 + $0xcc] sm:$0xf]  ;;  %v4013_v59 = vld [vmem:[%s6061_s0 + $0xe4] sm:$0xf] }
  0xe1   :  { %v569_v25 = vpop.f32.mrf.mxu0  ;;  %v3520_v20 = vor.u32 %v4042_v2, %v3517_v5  ;;  %v4038_v36 = vld [vmem:[%s6062_s1 + $0xac] sm:$0xf]  ;;  %v3387_v5 = vld [vmem:[%s6061_s0 + $0xd0] sm:$0xf] }
  0xe2   :  { %v834_v30 = vadd.f32 %v833_v57, %v745_v18  ;;  %v570_v13 = vadd.f32 %v569_v25, %v4643_v0  ;;  %v392_v57 = vunpack.c.l.b16 %v113_v42  ;;  %v3397_v2 = vld [vmem:[%s6061_s0 + $0xe8] sm:$0xf0] }
  0xe3   :  { %3582 = vmatmul.msk.bf16.gmra.mxu1 %vm478_vm1, %v4794_v12  ;;  %3598 = vmatmul.msk.bf16.gmra.mxu3 %vm478_vm1, %v4794_v12 }
  0xe4   :  { %v1281_v51 = vmax.f32 %v834_v30, 0.0  ;;  %v4824_v54 = vadd.f32 %v4735_v60, %v570_v13  ;;  %608 = vmatmul.bf16.gmra.mxu0 %v4799_v6  ;;  %786 = vmatmul.bf16.gmra.mxu2 %v4799_v6  ;;  %v436_v26 = vpack.c.b16 %v392_v57, %v392_v57  ;;  %v393_v60 = vunpack.c.h.b16 %v113_v42  ;;  %v4024_v57 = vld [vmem:[%s6062_s1 + $0x34] sm:$0xf0] }
  0xe5   :  { %900 = vmatpush.bf16.msrb.mxu1 %v3468_v45  ;;  %v3563_v45 = vld [vmem:[%s6062_s1 + $0x128] sm:$0xf]  ;;  %1075 = vmatpush.bf16.msrb.mxu0 %v3520_v20  ;;  %v3436_v56 = vor.u32 %v4024_v57, %v3435_v44 }
  0xe6   :  { %v4834_v37 = vpop.f32.mrf.mxu3  ;;  %v4842_v8 = vpack.c.bf16 %v1281_v51, %v1277_v52  ;;  %v535_v25 = vsel %vm527_vm0, %v436_v26, 0  ;;  %v437_v42 = vpack.c.b16 %v393_v60, %v393_v60  ;;  %v4056_v26 = vld [vmem:[%s6062_s1 + $0x134] sm:$0xf0]  ;;  %v3501_v60 = vld [vmem:[%s6062_s1 + $0xb8] sm:$0xf0] }
  0xe7   :  { %v747_v18 = vpop.f32.mrf.mxu2  ;;  %990 = vmatpush.bf16.msrb.mxu3 %v535_v25  ;;  %v3504_v25 = vor.u32 %v4038_v36, %v3501_v60  ;;  %v3419_v20 = vld [vmem:[%s6062_s1 + $0x8] sm:$0xf] }
  0xe8   :  { %6073 = vst [vmem:[#allocation6_spill] sm:$0xff] %v4842_v8  ;;  %v748_v30 = vadd.f32 %v747_v18, %v4656_v7  ;;  %v4846_v13 = vpop.f32.mrf.mxu1  ;;  %v538_v51 = vsel %vm527_vm0, %v437_v42, 0  ;;  %v4012_v18 = vld [vmem:[%s6061_s0 + $0xd4] sm:$0xf0]  ;;  %v1284_v42 = vmax.f32 %v4824_v54, 0.0  ;;  %vm2554_vm0 = vcmask 785408  }
  0xe9   :  { %v571_v43 = vpop.f32.mrf.mxu0  ;;  %901 = vmatpush.bf16.msrb.mxu1 %v3452_v63  ;;  %1168 = vmatpush.bf16.msrb.mxu2 %v538_v51  ;;  %v3485_v54 = vld [vmem:[%s6062_s1 + $0x98] sm:$0xf0]  ;;  %v4908_v60 = vor.u32 %v4012_v18, %v3387_v5 }
  0xea   :  { %v837_v48 = vadd.f32 %v4760_v24, %v748_v30  ;;  %v572_v52 = vadd.f32 %v571_v43, %v4643_v0  ;;  %v3564_v24 = vor.u32 %v4056_v26, %v3563_v45  ;;  %v3547_v30 = vld [vmem:[%s6062_s1 + $0x108] sm:$0xf]  ;;  %1076 = vmatpush.bf16.msrb.mxu0 %v3504_v25  ;;  %v4052_v45 = vld [vmem:[%s6062_s1 + $0x114] sm:$0xf0]  ;;  %v3469_v5 = vld [vmem:[%s6062_s1 + $0x78] sm:$0xf0] }
  0xeb   :  { %v3548_v26 = vor.u32 %v4052_v45, %v3547_v30  ;;  %v3453_v45 = vld [vmem:[%s6062_s1 + $0x58] sm:$0xf0] }
  0xec   :  { %v661_v63 = vadd.f32 %v4765_v39, %v572_v52  ;;  %991 = vmatpush.bf16.msrb.mxu3 %v3564_v24  ;;  %v4020_v39 = vld [vmem:[%s6062_s1 + $0x14] sm:$0xf0]  ;;  %v4034_v52 = vld [vmem:[%s6062_s1 + $0x8c] sm:$0xf]  ;;  %v1285_v30 = vmax.f32 %v837_v48, 0.0 }
  0xed   :  { %902 = vmatpush.bf16.msrb.mxu1 %v3436_v56  ;;  %v3420_v57 = vor.u32 %v4020_v39, %v3419_v20  ;;  %v4900_v56 = vor.u32 %v4013_v59, %v3397_v2  ;;  %v4030_v39 = vld [vmem:[%s6062_s1 + $0x6c] sm:$0xf] }
  0xee   :  { %v1288_v43 = vmax.f32 %v661_v63, 0.0  ;;  %v4892_v44 = vpop.f32.mrf.mxu3  ;;  %v3488_v63 = vor.u32 %v4034_v52, %v3485_v54  ;;  %v3472_v18 = vor.u32 %v4030_v39, %v3469_v5 }
  0xef   :  { %v749_v51 = vpop.f32.mrf.mxu2 }
  0xf0   :  { %v750_v36 = vadd.f32 %v749_v51, %v4656_v7  ;;  %v4906_v24 = vpop.f32.mrf.mxu1  ;;  %v4910_v25 = vpack.c.bf16 %v1288_v43, %v1284_v42  ;;  %992 = vmatpush.bf16.msrb.mxu3 %v3548_v26  ;;  %1077 = vmatpush.bf16.msrb.mxu0 %v3488_v63 }
  0xf1   :  { %v574_v20 = vpop.f32.mrf.mxu0  ;;  %903 = vmatpush.bf16.msrb.mxu1 %v3420_v57  ;;  %v4026_v57 = vld [vmem:[%s6062_s1 + $0x4c] sm:$0xf] }
  0xf2   :  { %6074 = vst [vmem:[#allocation7_spill] sm:$0xff] %v4910_v25  ;;  %v839_v59 = vadd.f32 %v4792_v4, %v750_v36  ;;  %v575_v2 = vadd.f32 %v574_v20, %v4643_v0  ;;  %v3456_v51 = vor.u32 %v4026_v57, %v3453_v45  ;;  %v4022_v20 = vld [vmem:[%s6062_s1 + $0x2c] sm:$0xf]  ;;  %v3395_v57 = vld [vmem:[%s6061_s0 + $0xe0] sm:$0xf] }
  0xf3   :  { %3583 = vmatmul.msk.bf16.gmra.mxu1 %vm478_vm1, %v4900_v56  ;;  %3599 = vmatmul.msk.bf16.gmra.mxu3 %vm478_vm1, %v4900_v56  ;;  %v4014_v45 = vld [vmem:[%s6061_s0 + $0xe4] sm:$0xf0] }
  0xf4   :  { %v1289_v4 = vmax.f32 %v839_v59, 0.0  ;;  %v664_v42 = vadd.f32 %v4797_v19, %v575_v2  ;;  %613 = vmatmul.bf16.gmra.mxu0 %v4908_v60  ;;  %791 = vmatmul.bf16.gmra.mxu2 %v4908_v60  ;;  %v3437_v59 = vld [vmem:[%s6062_s1 + $0x38] sm:$0xf0]  ;;  %v4054_v2 = vld [vmem:[%s6062_s1 + $0x12c] sm:$0xf] }
  0xf5   :  { %1078 = vmatpush.bf16.msrb.mxu0 %v3472_v18  ;;  %v3440_v39 = vor.u32 %v4022_v20, %v3437_v59  ;;  %v4015_v18 = vld [vmem:[%s6061_s0 + $0xf4] sm:$0xf] }
  0xf6   :  { %v846_v43 = vpop.f32.mrf.mxu3  ;;  %v4933_v52 = vpack.c.bf16 %v1289_v4, %v1285_v30  ;;  %v3405_v30 = vld [vmem:[%s6061_s0 + $0xf8] sm:$0xf0] }
  0xf7   :  { %v752_v48 = vpop.f32.mrf.mxu2  ;;  %v4969_v20 = vor.u32 %v4015_v18, %v3405_v30 }
  0xf8   :  { %6075 = vst [vmem:[#allocation8_spill] sm:$0xff] %v4933_v52  ;;  %v753_v19 = vadd.f32 %v752_v48, %v4656_v7  ;;  %v670_v26 = vpop.f32.mrf.mxu1  ;;  %v1292_v48 = vmax.f32 %v664_v42, 0.0  ;;  %v4050_v42 = vld [vmem:[%s6062_s1 + $0x10c] sm:$0xf] }
  0xf9   :  { %v576_v54 = vpop.f32.mrf.mxu0  ;;  %1079 = vmatpush.bf16.msrb.mxu0 %v3456_v51 }
  0xfa   :  { %v842_v36 = vadd.f32 %v4834_v37, %v753_v19  ;;  %v577_v63 = vadd.f32 %v576_v54, %v4643_v0  ;;  %v3565_v37 = vld [vmem:[%s6062_s1 + $0x138] sm:$0xf0]  ;;  %v4018_v19 = vld [vmem:[%s6062_s1 + $0xc] sm:$0xf] }
  0xfb   :  { %v3568_v4 = vor.u32 %v4054_v2, %v3565_v37  ;;  %v3421_v54 = vld [vmem:[%s6062_s1 + $0x18] sm:$0xf0] }
  0xfc   :  { %v666_v5 = vadd.f32 %v4846_v13, %v577_v63  ;;  %v3424_v59 = vor.u32 %v4018_v19, %v3421_v54  ;;  %v3549_v2 = vld [vmem:[%s6062_s1 + $0x118] sm:$0xf0]  ;;  %v1293_v19 = vmax.f32 %v842_v36, 0.0  ;;  %v4016_v36 = vld [vmem:[%s6061_s0 + $0xf4] sm:$0xf0] }
  0xfd   :  { %1080 = vmatpush.bf16.msrb.mxu0 %v3440_v39  ;;  %1169 = vmatpush.bf16.msrb.mxu2 %v3568_v4  ;;  %v3552_v4 = vor.u32 %v4050_v42, %v3549_v2 }
  0xfe   :  { %v1296_v51 = vmax.f32 %v666_v5, 0.0  ;;  %v848_v13 = vpop.f32.mrf.mxu3  ;;  %v4978_v5 = vor.u32 %v4014_v45, %v3395_v57 }
  0xff   :  { %v754_v63 = vpop.f32.mrf.mxu2 }
 0x100   :  { %v755_v39 = vadd.f32 %v754_v63, %v4656_v7  ;;  %v673_v37 = vpop.f32.mrf.mxu1  ;;  %v4980_v52 = vpack.c.bf16 %v1296_v51, %v1292_v48 }
 0x101   :  { %v579_v25 = vpop.f32.mrf.mxu0  ;;  %1081 = vmatpush.bf16.msrb.mxu0 %v3424_v59  ;;  %1170 = vmatpush.bf16.msrb.mxu2 %v3552_v4 }
 0x102   :  { %6076 = vst [vmem:[#allocation9_spill] sm:$0xff] %v4980_v52  ;;  %v844_v18 = vadd.f32 %v4892_v44, %v755_v39  ;;  %v580_v30 = vadd.f32 %v579_v25, %v4643_v0 }
 0x103   :  { %3584 = vmatmul.msk.bf16.gmra.mxu1 %vm478_vm1, %v4969_v20  ;;  %3600 = vmatmul.msk.bf16.gmra.mxu3 %vm478_vm1, %v4969_v20 }
 0x104   :  { %v1297_v54 = vmax.f32 %v844_v18, 0.0  ;;  %v669_v57 = vadd.f32 %v4906_v24, %v580_v30  ;;  %618 = vmatmul.bf16.gmra.mxu0 %v4978_v5  ;;  %796 = vmatmul.bf16.gmra.mxu2 %v4978_v5  ;;  %v3403_v24 = vld [vmem:[%s6061_s0 + $0xf0] sm:$0xf] }
 0x106   :  { %v851_v45 = vpop.f32.mrf.mxu3  ;;  %v4991_v44 = vpack.c.bf16 %v1297_v54, %v1293_v19  ;;  %v1300_v39 = vmax.f32 %v669_v57, 0.0 }
 0x107   :  { %v757_v25 = vpop.f32.mrf.mxu2 }
 0x108   :  { %6077 = vst [vmem:[#allocation10_spill] sm:$0xff] %v4991_v44  ;;  %v758_v48 = vadd.f32 %v757_v25, %v4656_v7  ;;  %v675_v51 = vpop.f32.mrf.mxu1  ;;  %v5002_v25 = vor.u32 %v4016_v36, %v3403_v24 }
 0x109   :  { %v581_v63 = vpop.f32.mrf.mxu0 }
 0x10a   :  { %v847_v59 = vadd.f32 %v846_v43, %v758_v48  ;;  %v582_v42 = vadd.f32 %v581_v63, %v4643_v0 }
 0x10c   :  { %v671_v2 = vadd.f32 %v670_v26, %v582_v42  ;;  %v1301_v57 = vmax.f32 %v847_v59, 0.0 }
 0x10e   :  { %v1304_v4 = vmax.f32 %v671_v2, 0.0  ;;  %v853_v18 = vpop.f32.mrf.mxu3 }
 0x10f   :  { %v759_v30 = vpop.f32.mrf.mxu2 }
 0x110   :  { %v760_v19 = vadd.f32 %v759_v30, %v4656_v7  ;;  %v678_v54 = vpop.f32.mrf.mxu1  ;;  %v5004_v43 = vpack.c.bf16 %v1304_v4, %v1300_v39 }
 0x111   :  { %v584_v26 = vpop.f32.mrf.mxu0 }
 0x112   :  { %6078 = vst [vmem:[#allocation11_spill] sm:$0xff] %v5004_v43  ;;  %v849_v48 = vadd.f32 %v848_v13, %v760_v19  ;;  %v585_v63 = vadd.f32 %v584_v26, %v4643_v0 }
 0x113   :  { %904 = vmatmul.bf16.vlgmr.msrb.gmra.mxu1 %v4466_v11  ;;  %3601 = vmatmul.msk.bf16.vlgmr.msrb.gmra.mxu3 %vm478_vm1, %v4410_v49 }
 0x114   :  { %v1305_v42 = vmax.f32 %v849_v48, 0.0  ;;  %v674_v2 = vadd.f32 %v673_v37, %v585_v63  ;;  %623 = vmatmul.bf16.gmra.mxu0 %v5002_v25  ;;  %801 = vmatmul.bf16.gmra.mxu2 %v5002_v25 }
 0x116   :  { %v856_v24 = vpop.f32.mrf.mxu3  ;;  %v5012_v36 = vpack.c.bf16 %v1305_v42, %v1301_v57  ;;  %v1308_v44 = vmax.f32 %v674_v2, 0.0 }
 0x117   :  { %v762_v39 = vpop.f32.mrf.mxu2 }
 0x118   :  { %6079 = vst [vmem:[#allocation12_spill] sm:$0xff] %v5012_v36  ;;  %v763_v13 = vadd.f32 %v762_v39, %v4656_v7  ;;  %v680_v4 = vpop.f32.mrf.mxu1 }
 0x119   :  { %v586_v30 = vpop.f32.mrf.mxu0 }
 0x11a   :  { %v852_v19 = vadd.f32 %v851_v45, %v763_v13  ;;  %v587_v26 = vadd.f32 %v586_v30, %v4643_v0 }
 0x11c   :  { %v676_v43 = vadd.f32 %v675_v51, %v587_v26  ;;  %v1309_v45 = vmax.f32 %v852_v19, 0.0 }
 0x11e   :  { %v1312_v59 = vmax.f32 %v676_v43, 0.0  ;;  %v858_v48 = vpop.f32.mrf.mxu3 }
 0x11f   :  { %v764_v37 = vpop.f32.mrf.mxu2 }
 0x120   :  { %v765_v63 = vadd.f32 %v764_v37, %v4656_v7  ;;  %v683_v52 = vpop.f32.mrf.mxu1  ;;  %v5017_v8 = vpack.c.bf16 %v1312_v59, %v1308_v44 }
 0x121   :  { %v589_v57 = vpop.f32.mrf.mxu0 }
 0x122   :  { %v854_v42 = vadd.f32 %v853_v18, %v765_v63  ;;  %v590_v36 = vadd.f32 %v589_v57, %v4643_v0 }
 0x123   :  { %909 = vmatmul.bf16.gmra.mxu1 %v4488_v17  ;;  %3602 = vmatmul.msk.bf16.gmra.mxu3 %vm478_vm1, %v4464_v10 }
 0x124   :  { %v1313_v51 = vmax.f32 %v854_v42, 0.0  ;;  %v679_v2 = vadd.f32 %v678_v54, %v590_v36  ;;  %1082 = vmatmul.bf16.vlgmr.msrb.gmra.mxu0 %v4466_v11  ;;  %3617 = vmatmul.msk.bf16.vlgmr.msrb.gmra.mxu2 %vm478_vm1, %v4410_v49 }
 0x126   :  { %v861_v43 = vpop.f32.mrf.mxu3  ;;  %v5026_v44 = vpack.c.bf16 %v1313_v51, %v1309_v45  ;;  %v1316_v19 = vmax.f32 %v679_v2, 0.0 }
 0x127   :  { %v767_v39 = vpop.f32.mrf.mxu2 }
 0x128   :  { %v768_v18 = vadd.f32 %v767_v39, %v4656_v7  ;;  %v685_v13 = vpop.f32.mrf.mxu1 }
 0x129   :  { %v591_v30 = vpop.f32.mrf.mxu0 }
 0x12a   :  { %v857_v26 = vadd.f32 %v856_v24, %v768_v18  ;;  %v592_v59 = vadd.f32 %v591_v30, %v4643_v0 }
 0x12c   :  { %v681_v37 = vadd.f32 %v680_v4, %v592_v59  ;;  %v1317_v24 = vmax.f32 %v857_v26, 0.0 }
 0x12e   :  { %v1320_v63 = vmax.f32 %v681_v37, 0.0  ;;  %v863_v54 = vpop.f32.mrf.mxu3 }
 0x12f   :  { %v769_v36 = vpop.f32.mrf.mxu2 }
 0x130   :  { %v770_v11 = vadd.f32 %v769_v36, %v4656_v7  ;;  %v688_v57 = vpop.f32.mrf.mxu1  ;;  %v5031_v49 = vpack.c.bf16 %v1320_v63, %v1316_v19 }
 0x131   :  { %v594_v42 = vpop.f32.mrf.mxu0 }
 0x132   :  { %v859_v45 = vadd.f32 %v858_v48, %v770_v11  ;;  %v595_v51 = vadd.f32 %v594_v42, %v4643_v0 }
 0x133   :  { %914 = vmatmul.bf16.gmra.mxu1 %v4510_v23  ;;  %3603 = vmatmul.msk.bf16.gmra.mxu3 %vm478_vm1, %v4486_v16 }
 0x134   :  { %v1321_v4 = vmax.f32 %v859_v45, 0.0  ;;  %v684_v2 = vadd.f32 %v683_v52, %v595_v51  ;;  %1087 = vmatmul.bf16.gmra.mxu0 %v4488_v17  ;;  %3618 = vmatmul.msk.bf16.gmra.mxu2 %vm478_vm1, %v4464_v10 }
 0x136   :  { %v866_v39 = vpop.f32.mrf.mxu3  ;;  %v5040_v18 = vpack.c.bf16 %v1321_v4, %v1317_v24  ;;  %v1324_v26 = vmax.f32 %v684_v2, 0.0 }
 0x137   :  { %v772_v30 = vpop.f32.mrf.mxu2 }
 0x138   :  { %v773_v48 = vadd.f32 %v772_v30, %v4656_v7  ;;  %v690_v59 = vpop.f32.mrf.mxu1 }
 0x139   :  { %v596_v37 = vpop.f32.mrf.mxu0 }
 0x13a   :  { %v862_v19 = vadd.f32 %v861_v43, %v773_v48  ;;  %v597_v63 = vadd.f32 %v596_v37, %v4643_v0 }
 0x13c   :  { %v686_v36 = vadd.f32 %v685_v13, %v597_v63  ;;  %v1325_v43 = vmax.f32 %v862_v19, 0.0 }
 0x13e   :  { %v1328_v11 = vmax.f32 %v686_v36, 0.0  ;;  %v868_v52 = vpop.f32.mrf.mxu3 }
 0x13f   :  { %v774_v42 = vpop.f32.mrf.mxu2 }
 0x140   :  { %v775_v17 = vadd.f32 %v774_v42, %v4656_v7  ;;  %v693_v45 = vpop.f32.mrf.mxu1  ;;  %v5045_v10 = vpack.c.bf16 %v1328_v11, %v1324_v26 }
 0x141   :  { %v599_v51 = vpop.f32.mrf.mxu0 }
 0x142   :  { %v864_v24 = vadd.f32 %v863_v54, %v775_v17  ;;  %v600_v4 = vadd.f32 %v599_v51, %v4643_v0 }
 0x143   :  { %919 = vmatmul.bf16.gmra.mxu1 %v4532_v29  ;;  %3604 = vmatmul.msk.bf16.gmra.mxu3 %vm478_vm1, %v4508_v22 }
 0x144   :  { %v1329_v13 = vmax.f32 %v864_v24, 0.0  ;;  %v689_v2 = vadd.f32 %v688_v57, %v600_v4  ;;  %1092 = vmatmul.bf16.gmra.mxu0 %v4510_v23  ;;  %3619 = vmatmul.msk.bf16.gmra.mxu2 %vm478_vm1, %v4486_v16 }
 0x146   :  { %v871_v30 = vpop.f32.mrf.mxu3  ;;  %v5054_v48 = vpack.c.bf16 %v1329_v13, %v1325_v43  ;;  %v1332_v19 = vmax.f32 %v689_v2, 0.0 }
 0x147   :  { %v777_v37 = vpop.f32.mrf.mxu2 }
 0x148   :  { %v778_v54 = vadd.f32 %v777_v37, %v4656_v7  ;;  %v695_v63 = vpop.f32.mrf.mxu1 }
 0x149   :  { %v601_v36 = vpop.f32.mrf.mxu0 }
 0x14a   :  { %v867_v26 = vadd.f32 %v866_v39, %v778_v54  ;;  %v602_v11 = vadd.f32 %v601_v36, %v4643_v0 }
 0x14c   :  { %v691_v42 = vadd.f32 %v690_v59, %v602_v11  ;;  %v1333_v39 = vmax.f32 %v867_v26, 0.0 }
 0x14e   :  { %v1336_v17 = vmax.f32 %v691_v42, 0.0  ;;  %v873_v57 = vpop.f32.mrf.mxu3 }
 0x14f   :  { %v779_v51 = vpop.f32.mrf.mxu2 }
 0x150   :  { %v780_v23 = vadd.f32 %v779_v51, %v4656_v7  ;;  %v698_v24 = vpop.f32.mrf.mxu1  ;;  %v5059_v16 = vpack.c.bf16 %v1336_v17, %v1332_v19 }
 0x151   :  { %v604_v4 = vpop.f32.mrf.mxu0 }
 0x152   :  { %v869_v43 = vadd.f32 %v868_v52, %v780_v23  ;;  %v605_v13 = vadd.f32 %v604_v4, %v4643_v0 }
 0x153   :  { %924 = vmatmul.bf16.gmra.mxu1 %v4554_v35  ;;  %3605 = vmatmul.msk.bf16.gmra.mxu3 %vm478_vm1, %v4530_v28 }
 0x154   :  { %v1337_v59 = vmax.f32 %v869_v43, 0.0  ;;  %v694_v2 = vadd.f32 %v693_v45, %v605_v13  ;;  %1097 = vmatmul.bf16.gmra.mxu0 %v4532_v29  ;;  %3620 = vmatmul.msk.bf16.gmra.mxu2 %vm478_vm1, %v4508_v22 }
 0x156   :  { %v876_v37 = vpop.f32.mrf.mxu3  ;;  %v5068_v54 = vpack.c.bf16 %v1337_v59, %v1333_v39  ;;  %v1340_v26 = vmax.f32 %v694_v2, 0.0 }
 0x157   :  { %v782_v36 = vpop.f32.mrf.mxu2 }
 0x158   :  { %v783_v52 = vadd.f32 %v782_v36, %v4656_v7  ;;  %v700_v11 = vpop.f32.mrf.mxu1 }
 0x159   :  { %v606_v42 = vpop.f32.mrf.mxu0 }
 0x15a   :  { %v872_v19 = vadd.f32 %v871_v30, %v783_v52  ;;  %v607_v17 = vadd.f32 %v606_v42, %v4643_v0 }
 0x15c   :  { %v696_v51 = vadd.f32 %v695_v63, %v607_v17  ;;  %v1341_v30 = vmax.f32 %v872_v19, 0.0 }
 0x15e   :  { %v1344_v23 = vmax.f32 %v696_v51, 0.0  ;;  %v878_v45 = vpop.f32.mrf.mxu3 }
 0x15f   :  { %v784_v4 = vpop.f32.mrf.mxu2 }
 0x160   :  { %v785_v29 = vadd.f32 %v784_v4, %v4656_v7  ;;  %v703_v43 = vpop.f32.mrf.mxu1  ;;  %v5073_v22 = vpack.c.bf16 %v1344_v23, %v1340_v26 }
 0x161   :  { %v609_v13 = vpop.f32.mrf.mxu0 }
 0x162   :  { %v874_v39 = vadd.f32 %v873_v57, %v785_v29  ;;  %v610_v59 = vadd.f32 %v609_v13, %v4643_v0 }
 0x163   :  { %929 = vmatmul.bf16.gmra.mxu1 %v4576_v41  ;;  %3606 = vmatmul.msk.bf16.gmra.mxu3 %vm478_vm1, %v4552_v34 }
 0x164   :  { %v1345_v63 = vmax.f32 %v874_v39, 0.0  ;;  %v699_v2 = vadd.f32 %v698_v24, %v610_v59  ;;  %1102 = vmatmul.bf16.gmra.mxu0 %v4554_v35  ;;  %3621 = vmatmul.msk.bf16.gmra.mxu2 %vm478_vm1, %v4530_v28 }
 0x166   :  { %v881_v36 = vpop.f32.mrf.mxu3  ;;  %v5082_v52 = vpack.c.bf16 %v1345_v63, %v1341_v30  ;;  %v1348_v19 = vmax.f32 %v699_v2, 0.0 }
 0x167   :  { %v787_v42 = vpop.f32.mrf.mxu2 }
 0x168   :  { %v788_v57 = vadd.f32 %v787_v42, %v4656_v7  ;;  %v705_v17 = vpop.f32.mrf.mxu1 }
 0x169   :  { %v611_v51 = vpop.f32.mrf.mxu0 }
 0x16a   :  { %v877_v26 = vadd.f32 %v876_v37, %v788_v57  ;;  %v612_v23 = vadd.f32 %v611_v51, %v4643_v0 }
 0x16c   :  { %v701_v4 = vadd.f32 %v700_v11, %v612_v23  ;;  %v1349_v37 = vmax.f32 %v877_v26, 0.0 }
 0x16e   :  { %v1352_v29 = vmax.f32 %v701_v4, 0.0  ;;  %v883_v24 = vpop.f32.mrf.mxu3 }
 0x16f   :  { %v789_v13 = vpop.f32.mrf.mxu2 }
 0x170   :  { %v790_v35 = vadd.f32 %v789_v13, %v4656_v7  ;;  %v708_v39 = vpop.f32.mrf.mxu1  ;;  %v5087_v28 = vpack.c.bf16 %v1352_v29, %v1348_v19 }
 0x171   :  { %v614_v59 = vpop.f32.mrf.mxu0 }
 0x172   :  { %v879_v30 = vadd.f32 %v878_v45, %v790_v35  ;;  %v615_v63 = vadd.f32 %v614_v59, %v4643_v0 }
 0x173   :  { %934 = vmatmul.bf16.gmra.mxu1 %v4598_v47  ;;  %3607 = vmatmul.msk.bf16.gmra.mxu3 %vm478_vm1, %v4574_v40 }
 0x174   :  { %v1353_v11 = vmax.f32 %v879_v30, 0.0  ;;  %v704_v2 = vadd.f32 %v703_v43, %v615_v63  ;;  %1107 = vmatmul.bf16.gmra.mxu0 %v4576_v41  ;;  %3622 = vmatmul.msk.bf16.gmra.mxu2 %vm478_vm1, %v4552_v34 }
 0x176   :  { %v886_v42 = vpop.f32.mrf.mxu3  ;;  %v5096_v57 = vpack.c.bf16 %v1353_v11, %v1349_v37  ;;  %v1356_v26 = vmax.f32 %v704_v2, 0.0 }
 0x177   :  { %v792_v51 = vpop.f32.mrf.mxu2 }
 0x178   :  { %v793_v45 = vadd.f32 %v792_v51, %v4656_v7  ;;  %v710_v23 = vpop.f32.mrf.mxu1 }
 0x179   :  { %v616_v4 = vpop.f32.mrf.mxu0 }
 0x17a   :  { %v882_v19 = vadd.f32 %v881_v36, %v793_v45  ;;  %v617_v29 = vadd.f32 %v616_v4, %v4643_v0 }
 0x17c   :  { %v706_v13 = vadd.f32 %v705_v17, %v617_v29  ;;  %v1357_v36 = vmax.f32 %v882_v19, 0.0 }
 0x17e   :  { %v1360_v35 = vmax.f32 %v706_v13, 0.0  ;;  %v888_v43 = vpop.f32.mrf.mxu3 }
 0x17f   :  { %v794_v59 = vpop.f32.mrf.mxu2 }
 0x180   :  { %v795_v41 = vadd.f32 %v794_v59, %v4656_v7  ;;  %v713_v30 = vpop.f32.mrf.mxu1  ;;  %v5101_v34 = vpack.c.bf16 %v1360_v35, %v1356_v26 }
 0x181   :  { %v619_v63 = vpop.f32.mrf.mxu0 }
 0x182   :  { %v884_v37 = vadd.f32 %v883_v24, %v795_v41  ;;  %v620_v11 = vadd.f32 %v619_v63, %v4643_v0 }
 0x183   :  { %939 = vmatmul.bf16.gmra.mxu1 %v4620_v55  ;;  %3608 = vmatmul.msk.bf16.gmra.mxu3 %vm478_vm1, %v4596_v46 }
 0x184   :  { %v1361_v17 = vmax.f32 %v884_v37, 0.0  ;;  %v709_v2 = vadd.f32 %v708_v39, %v620_v11  ;;  %1112 = vmatmul.bf16.gmra.mxu0 %v4598_v47  ;;  %3623 = vmatmul.msk.bf16.gmra.mxu2 %vm478_vm1, %v4574_v40  ;;  %v4224_v40 = vld [vmem:[%s6063_s2] sm:$0xf] }
 0x185   :  { %v5117_v47 = vperm.slane %v4224_v40, 2 }
 0x186   :  { %v891_v51 = vpop.f32.mrf.mxu3  ;;  %v5110_v45 = vpack.c.bf16 %v1361_v17, %v1357_v36  ;;  %v1364_v19 = vmax.f32 %v709_v2, 0.0 }
 0x187   :  { %v797_v4 = vpop.f32.mrf.mxu2 }
 0x188   :  { %6080 = vst [vmem:[#allocation13_spill] sm:$0xff] %v5110_v45  ;;  %v798_v24 = vadd.f32 %v797_v4, %v4656_v7  ;;  %v715_v29 = vpop.f32.mrf.mxu1 }
 0x189   :  { %v621_v13 = vpop.f32.mrf.mxu0 }
 0x18a   :  { %v887_v26 = vadd.f32 %v886_v42, %v798_v24  ;;  %v622_v35 = vadd.f32 %v621_v13, %v4643_v0 }
 0x18c   :  { %v711_v59 = vadd.f32 %v710_v23, %v622_v35  ;;  %v1365_v2 = vmax.f32 %v887_v26, 0.0 }
 0x18e   :  { %v1368_v41 = vmax.f32 %v711_v59, 0.0  ;;  %v893_v39 = vpop.f32.mrf.mxu3 }
 0x18f   :  { %v799_v63 = vpop.f32.mrf.mxu2 }
 0x190   :  { %v800_v37 = vadd.f32 %v799_v63, %v4656_v7  ;;  %v905_v11 = vpop.f32.mrf.mxu1  ;;  %v5120_v36 = vpack.c.bf16 %v1368_v41, %v1364_v19 }
 0x191   :  { %v624_v17 = vpop.f32.mrf.mxu0  ;;  %v906_v23 = vadd.f32 %v905_v11, %v5117_v47 }
 0x192   :  { %6081 = vst [vmem:[#allocation14_spill] sm:$0xff] %v5120_v36  ;;  %v889_v42 = vadd.f32 %v888_v43, %v800_v37  ;;  %v625_v4 = vadd.f32 %v624_v17, %v4643_v0 }
 0x193   :  { %944 = vmatmul.bf16.gmra.mxu1 %v4647_v3  ;;  %3609 = vmatmul.msk.bf16.gmra.mxu3 %vm478_vm1, %v4618_v53 }
 0x194   :  { %v1369_v24 = vmax.f32 %v889_v42, 0.0  ;;  %v714_v13 = vadd.f32 %v713_v30, %v625_v4  ;;  %1117 = vmatmul.bf16.gmra.mxu0 %v4620_v55  ;;  %3624 = vmatmul.msk.bf16.gmra.mxu2 %vm478_vm1, %v4596_v46 }
 0x196   :  { %v994_v35 = vpop.f32.mrf.mxu3  ;;  %v5130_v59 = vpack.c.bf16 %v1369_v24, %v1365_v2  ;;  %v1372_v42 = vmax.f32 %v714_v13, 0.0  ;;  %v5136_v24 = vperm.slane %v4224_v40, 3 }
 0x197   :  { %v995_v43 = vadd.f32 %v994_v35, %v906_v23  ;;  %v802_v19 = vpop.f32.mrf.mxu2 }
 0x198   :  { %v803_v41 = vadd.f32 %v802_v19, %v4656_v7  ;;  %v907_v63 = vpop.f32.mrf.mxu1 }
 0x199   :  { %v626_v37 = vpop.f32.mrf.mxu0  ;;  %v908_v26 = vadd.f32 %v907_v63, %v5117_v47  ;;  %v1254_v36 = vmax.f32 %v995_v43, 0.0 }
 0x19a   :  { %v892_v11 = vadd.f32 %v891_v51, %v803_v41  ;;  %v627_v17 = vadd.f32 %v626_v37, %v4643_v0 }
 0x19c   :  { %v716_v30 = vadd.f32 %v715_v29, %v627_v17  ;;  %v1373_v13 = vmax.f32 %v892_v11, 0.0 }
 0x19e   :  { %v1376_v55 = vmax.f32 %v716_v30, 0.0  ;;  %v996_v4 = vpop.f32.mrf.mxu3 }
 0x19f   :  { %v997_v46 = vadd.f32 %v996_v4, %v908_v26  ;;  %v804_v45 = vpop.f32.mrf.mxu2 }
 0x1a0   :  { %v805_v2 = vadd.f32 %v804_v45, %v4656_v7  ;;  %v910_v23 = vpop.f32.mrf.mxu1  ;;  %v5138_v35 = vpack.c.bf16 %v1376_v55, %v1372_v42 }
 0x1a1   :  { %v1258_v19 = vmax.f32 %v997_v46, 0.0  ;;  %v1083_v51 = vpop.f32.mrf.mxu0  ;;  %v911_v29 = vadd.f32 %v910_v23, %v5117_v47 }
 0x1a2   :  { %v894_v41 = vadd.f32 %v893_v39, %v805_v2  ;;  %v1084_v7 = vadd.f32 %v1083_v51, %v5136_v24 }
 0x1a3   :  { %v5140_v0 = vpack.c.bf16 %v1258_v19, %v1254_v36  ;;  %949 = vmatmul.bf16.gmra.mxu1 %v4677_v38  ;;  %3610 = vmatmul.msk.bf16.gmra.mxu3 %vm478_vm1, %v4645_v1 }
 0x1a4   :  { %v1377_v43 = vmax.f32 %v894_v41, 0.0  ;;  %1122 = vmatmul.bf16.gmra.mxu0 %v4647_v3  ;;  %3625 = vmatmul.msk.bf16.gmra.mxu2 %vm478_vm1, %v4618_v53 }
 0x1a6   :  { %v999_v45 = vpop.f32.mrf.mxu3  ;;  %v5150_v39 = vpack.c.bf16 %v1377_v43, %v1373_v13 }
 0x1a7   :  { %v1000_v40 = vadd.f32 %v999_v45, %v911_v29  ;;  %v1172_v36 = vpop.f32.mrf.mxu2 }
 0x1a8   :  { %v1173_v63 = vadd.f32 %v1172_v36, %v1084_v7  ;;  %v912_v37 = vpop.f32.mrf.mxu1 }
 0x1a9   :  { %v1085_v17 = vpop.f32.mrf.mxu0  ;;  %v913_v26 = vadd.f32 %v912_v37, %v5117_v47  ;;  %v1262_v42 = vmax.f32 %v1000_v40, 0.0 }
 0x1aa   :  { %v1086_v11 = vadd.f32 %v1085_v17, %v5136_v24  ;;  %v1255_v23 = vmax.f32 %v1173_v63, 0.0 }
 0x1ae   :  { %v1001_v30 = vpop.f32.mrf.mxu3 }
 0x1af   :  { %v1002_v55 = vadd.f32 %v1001_v30, %v913_v26  ;;  %v1174_v4 = vpop.f32.mrf.mxu2 }
 0x1b0   :  { %v1175_v3 = vadd.f32 %v1174_v4, %v1086_v11  ;;  %v915_v46 = vpop.f32.mrf.mxu1 }
 0x1b1   :  { %v1266_v2 = vmax.f32 %v1002_v55, 0.0  ;;  %v1088_v53 = vpop.f32.mrf.mxu0  ;;  %v916_v51 = vadd.f32 %v915_v46, %v5117_v47 }
 0x1b2   :  { %v1259_v19 = vmax.f32 %v1175_v3, 0.0  ;;  %v1089_v13 = vadd.f32 %v1088_v53, %v5136_v24 }
 0x1b3   :  { %954 = vmatmul.bf16.gmra.mxu1 %v4705_v14  ;;  %3611 = vmatmul.msk.bf16.gmra.mxu3 %vm478_vm1, %v4672_v32  ;;  %v5158_v41 = vpack.c.bf16 %v1266_v2, %v1262_v42 }
 0x1b4   :  { %v5160_v29 = vpack.c.bf16 %v1259_v19, %v1255_v23  ;;  %1127 = vmatmul.bf16.gmra.mxu0 %v4677_v38  ;;  %3626 = vmatmul.msk.bf16.gmra.mxu2 %vm478_vm1, %v4645_v1 }
 0x1b6   :  { %v1004_v43 = vpop.f32.mrf.mxu3 }
 0x1b7   :  { %v1005_v7 = vadd.f32 %v1004_v43, %v916_v51  ;;  %v1177_v45 = vpop.f32.mrf.mxu2 }
 0x1b8   :  { %v1178_v40 = vadd.f32 %v1177_v45, %v1089_v13  ;;  %v917_v36 = vpop.f32.mrf.mxu1 }
 0x1b9   :  { %v1090_v63 = vpop.f32.mrf.mxu0  ;;  %v918_v37 = vadd.f32 %v917_v36, %v5117_v47  ;;  %v1270_v11 = vmax.f32 %v1005_v7, 0.0 }
 0x1ba   :  { %v1091_v17 = vadd.f32 %v1090_v63, %v5136_v24  ;;  %v1263_v46 = vmax.f32 %v1178_v40, 0.0 }
 0x1be   :  { %v1006_v26 = vpop.f32.mrf.mxu3 }
 0x1bf   :  { %v1007_v30 = vadd.f32 %v1006_v26, %v918_v37  ;;  %v1179_v42 = vpop.f32.mrf.mxu2 }
 0x1c0   :  { %v1180_v55 = vadd.f32 %v1179_v42, %v1091_v17  ;;  %v920_v4 = vpop.f32.mrf.mxu1 }
 0x1c1   :  { %v1274_v38 = vmax.f32 %v1007_v30, 0.0  ;;  %v1093_v3 = vpop.f32.mrf.mxu0  ;;  %v921_v2 = vadd.f32 %v920_v4, %v5117_v47 }
 0x1c2   :  { %v1267_v1 = vmax.f32 %v1180_v55, 0.0  ;;  %v1094_v23 = vadd.f32 %v1093_v3, %v5136_v24  ;;  %v4072_v3 = vld [vmem:[%s6065_s4 + $0x78] sm:$0xff] }
 0x1c3   :  { %959 = vmatmul.bf16.gmra.mxu1 %v4737_v61  ;;  %3612 = vmatmul.msk.bf16.gmra.mxu3 %vm478_vm1, %v4702_v9  ;;  %v5172_v53 = vpack.c.bf16 %v1274_v38, %v1270_v11  ;;  %v4064_v38 = vld [vmem:[%s6065_s4 + $0x38] sm:$0xff] }
 0x1c4   :  { %1132 = vmatmul.bf16.gmra.mxu0 %v4705_v14  ;;  %3627 = vmatmul.msk.bf16.gmra.mxu2 %vm478_vm1, %v4672_v32  ;;  %v5178_v19 = vpack.c.bf16 %v1267_v1, %v1263_v46 }
 0x1c5   :  { %1700 = vmatpush.bf16.msra.mxu1 %v4064_v38  ;;  %1789 = vmatpush.bf16.msra.mxu3 %v4072_v3 }
 0x1c6   :  { %v1009_v51 = vpop.f32.mrf.mxu3 }
 0x1c7   :  { %v1010_v13 = vadd.f32 %v1009_v51, %v921_v2  ;;  %v1182_v43 = vpop.f32.mrf.mxu2 }
 0x1c8   :  { %v1183_v7 = vadd.f32 %v1182_v43, %v1094_v23  ;;  %v922_v45 = vpop.f32.mrf.mxu1  ;;  %v4071_v43 = vld [vmem:[%s6065_s4 + $0x70] sm:$0xff] }
 0x1c9   :  { %v1095_v40 = vpop.f32.mrf.mxu0  ;;  %v923_v36 = vadd.f32 %v922_v45, %v5117_v47  ;;  %v1278_v17 = vmax.f32 %v1010_v13, 0.0  ;;  %v4063_v13 = vld [vmem:[%s6065_s4 + $0x30] sm:$0xff]  ;;  %1790 = vmatpush.bf16.msra.mxu3 %v4071_v43 }
 0x1ca   :  { %v1096_v63 = vadd.f32 %v1095_v40, %v5136_v24  ;;  %v1271_v55 = vmax.f32 %v1183_v7, 0.0  ;;  %1701 = vmatpush.bf16.msra.mxu1 %v4063_v13  ;;  %v4068_v13 = vld [vmem:[%s6065_s4 + $0x58] sm:$0xff] }
 0x1ce   :  { %v1011_v37 = vpop.f32.mrf.mxu3 }
 0x1cf   :  { %v1012_v26 = vadd.f32 %v1011_v37, %v923_v36  ;;  %v1184_v11 = vpop.f32.mrf.mxu2 }
 0x1d0   :  { %v1185_v14 = vadd.f32 %v1184_v11, %v1096_v63  ;;  %v925_v30 = vpop.f32.mrf.mxu1  ;;  %v4070_v63 = vld [vmem:[%s6065_s4 + $0x68] sm:$0xff]  ;;  %v4061_v11 = vld [vmem:[%s6065_s4 + $0x20] sm:$0xff] }
 0x1d1   :  { %v1282_v42 = vmax.f32 %v1012_v26, 0.0  ;;  %v1098_v32 = vpop.f32.mrf.mxu0  ;;  %v926_v46 = vadd.f32 %v925_v30, %v5117_v47  ;;  %1791 = vmatpush.bf16.msra.mxu3 %v4070_v63  ;;  %v4059_v63 = vld [vmem:[%s6065_s4 + $0x10] sm:$0xff] }
 0x1d2   :  { %v1275_v4 = vmax.f32 %v1185_v14, 0.0  ;;  %v1099_v2 = vadd.f32 %v1098_v32, %v5136_v24  ;;  %v4069_v14 = vld [vmem:[%s6065_s4 + $0x60] sm:$0xff] }
 0x1d3   :  { %964 = vmatmul.bf16.gmra.mxu1 %v4799_v6  ;;  %3613 = vmatmul.msk.bf16.gmra.mxu3 %vm478_vm1, %v4732_v58  ;;  %v5192_v1 = vpack.c.bf16 %v1282_v42, %v1278_v17 }
 0x1d4   :  { %1137 = vmatmul.bf16.gmra.mxu0 %v4737_v61  ;;  %3628 = vmatmul.msk.bf16.gmra.mxu2 %vm478_vm1, %v4702_v9  ;;  %v5198_v23 = vpack.c.bf16 %v1275_v4, %v1271_v55  ;;  %v4062_v9 = vld [vmem:[%s6065_s4 + $0x28] sm:$0xff] }
 0x1d5   :  { %1702 = vmatpush.bf16.msra.mxu1 %v4062_v9  ;;  %1792 = vmatpush.bf16.msra.mxu3 %v4069_v14 }
 0x1d6   :  { %v1014_v51 = vpop.f32.mrf.mxu3 }
 0x1d7   :  { %v1015_v7 = vadd.f32 %v1014_v51, %v926_v46  ;;  %v1187_v45 = vpop.f32.mrf.mxu2  ;;  %v4060_v51 = vld [vmem:[%s6065_s4 + $0x18] sm:$0xff] }
 0x1d8   :  { %v1188_v40 = vadd.f32 %v1187_v45, %v1099_v2  ;;  %v927_v61 = vpop.f32.mrf.mxu1  ;;  %v4088_v45 = vld [vmem:[%s6065_s4 + $0xf8] sm:$0xff] }
 0x1d9   :  { %v1100_v36 = vpop.f32.mrf.mxu0  ;;  %v928_v37 = vadd.f32 %v927_v61, %v5117_v47  ;;  %v1286_v30 = vmax.f32 %v1015_v7, 0.0  ;;  %1703 = vmatpush.bf16.msra.mxu1 %v4061_v11  ;;  %v4080_v7 = vld [vmem:[%s6065_s4 + $0xb8] sm:$0xff]  ;;  %1793 = vmatpush.bf16.msra.mxu3 %v4068_v13 }
 0x1da   :  { %v1101_v17 = vadd.f32 %v1100_v36, %v5136_v24  ;;  %v1279_v46 = vmax.f32 %v1188_v40, 0.0  ;;  %1878 = vmatpush.bf16.msra.mxu0 %v4080_v7  ;;  %1967 = vmatpush.bf16.msra.mxu2 %v4088_v45  ;;  %v4077_v45 = vld [vmem:[%s6065_s4 + $0xa0] sm:$0xff] }
 0x1dd   :  { %1704 = vmatpush.bf16.msra.mxu1 %v4060_v51  ;;  %v4065_v51 = vld [vmem:[%s6065_s4 + $0x40] sm:$0xff] }
 0x1de   :  { %v1016_v26 = vpop.f32.mrf.mxu3 }
 0x1df   :  { %v1017_v42 = vadd.f32 %v1016_v26, %v928_v37  ;;  %v1189_v32 = vpop.f32.mrf.mxu2  ;;  %v4067_v37 = vld [vmem:[%s6065_s4 + $0x50] sm:$0xff] }
 0x1e0   :  { %v1190_v55 = vadd.f32 %v1189_v32, %v1101_v17  ;;  %v930_v4 = vpop.f32.mrf.mxu1  ;;  %v4087_v26 = vld [vmem:[%s6065_s4 + $0xf0] sm:$0xff]  ;;  %1794 = vmatpush.bf16.msra.mxu3 %v4067_v37  ;;  %v4066_v32 = vld [vmem:[%s6065_s4 + $0x48] sm:$0xff] }
 0x1e1   :  { %v1290_v38 = vmax.f32 %v1017_v42, 0.0  ;;  %v1103_v3 = vpop.f32.mrf.mxu0  ;;  %v931_v43 = vadd.f32 %v930_v4, %v5117_v47  ;;  %1705 = vmatpush.bf16.msra.mxu1 %v4059_v63  ;;  %1968 = vmatpush.bf16.msra.mxu2 %v4087_v26  ;;  %v4058_v42 = vld [vmem:[%s6065_s4 + $0x8] sm:$0xff] }
 0x1e2   :  { %v1283_v2 = vmax.f32 %v1190_v55, 0.0  ;;  %v1104_v61 = vadd.f32 %v1103_v3, %v5136_v24  ;;  %v4078_v55 = vld [vmem:[%s6065_s4 + $0xa8] sm:$0xff] }
 0x1e3   :  { %969 = vmatmul.bf16.gmra.mxu1 %v4908_v60  ;;  %3614 = vmatmul.msk.bf16.gmra.mxu3 %vm478_vm1, %v4794_v12  ;;  %v5236_v40 = vpack.c.bf16 %v1290_v38, %v1286_v30  ;;  %v4086_v38 = vld [vmem:[%s6065_s4 + $0xe8] sm:$0xff] }
 0x1e4   :  { %1142 = vmatmul.bf16.gmra.mxu0 %v4799_v6  ;;  %3629 = vmatmul.msk.bf16.gmra.mxu2 %vm478_vm1, %v4732_v58  ;;  %v5242_v36 = vpack.c.bf16 %v1283_v2, %v1279_v46  ;;  %v4079_v58 = vld [vmem:[%s6065_s4 + $0xb0] sm:$0xff]  ;;  %v4057_v2 = vld [vmem:[%s6065_s4] sm:$0xff] }
 0x1e5   :  { %1879 = vmatpush.bf16.msra.mxu0 %v4079_v58  ;;  %1706 = vmatpush.bf16.msra.mxu1 %v4058_v42 }
 0x1e6   :  { %v1019_v9 = vpop.f32.mrf.mxu3  ;;  %1795 = vmatpush.bf16.msra.mxu3 %v4066_v32  ;;  %1969 = vmatpush.bf16.msra.mxu2 %v4086_v38 }
 0x1e7   :  { %v1020_v17 = vadd.f32 %v1019_v9, %v931_v43  ;;  %v1192_v6 = vpop.f32.mrf.mxu2 }
 0x1e8   :  { %v1193_v11 = vadd.f32 %v1192_v6, %v1104_v61  ;;  %v932_v14 = vpop.f32.mrf.mxu1  ;;  %v4085_v61 = vld [vmem:[%s6065_s4 + $0xe0] sm:$0xff] }
 0x1e9   :  { %v1105_v30 = vpop.f32.mrf.mxu0  ;;  %v933_v4 = vadd.f32 %v932_v14, %v5117_v47  ;;  %1880 = vmatpush.bf16.msra.mxu0 %v4078_v55  ;;  %v1294_v13 = vmax.f32 %v1020_v17, 0.0  ;;  %1707 = vmatpush.bf16.msra.mxu1 %v4057_v2  ;;  %v4076_v14 = vld [vmem:[%s6065_s4 + $0x98] sm:$0xff] }
 0x1ea   :  { %v1106_v3 = vadd.f32 %v1105_v30, %v5136_v24  ;;  %1796 = vmatpush.bf16.msra.mxu3 %v4065_v51  ;;  %v1287_v58 = vmax.f32 %v1193_v11, 0.0  ;;  %1970 = vmatpush.bf16.msra.mxu2 %v4085_v61  ;;  %v4084_v30 = vld [vmem:[%s6065_s4 + $0xd8] sm:$0xff] }
 0x1ed   :  { %1881 = vmatpush.bf16.msra.mxu0 %v4077_v45 }
 0x1ee   :  { %v1021_v46 = vpop.f32.mrf.mxu3  ;;  %1971 = vmatpush.bf16.msra.mxu2 %v4084_v30 }
 0x1ef   :  { %v1022_v43 = vadd.f32 %v1021_v46, %v933_v4  ;;  %v1194_v7 = vpop.f32.mrf.mxu2  ;;  %v4083_v46 = vld [vmem:[%s6065_s4 + $0xd0] sm:$0xff] }
 0x1f0   :  { %v1195_v9 = vadd.f32 %v1194_v7, %v1106_v3  ;;  %v935_v63 = vpop.f32.mrf.mxu1  ;;  %v4075_v3 = vld [vmem:[%s6065_s4 + $0x90] sm:$0xff] }
 0x1f1   :  { %v1298_v37 = vmax.f32 %v1022_v43, 0.0  ;;  %v1108_v6 = vpop.f32.mrf.mxu0  ;;  %v936_v17 = vadd.f32 %v935_v63, %v5117_v47  ;;  %1882 = vmatpush.bf16.msra.mxu0 %v4076_v14 }
 0x1f2   :  { %v1291_v26 = vmax.f32 %v1195_v9, 0.0  ;;  %v1109_v11 = vadd.f32 %v1108_v6, %v5136_v24  ;;  %1972 = vmatpush.bf16.msra.mxu2 %v4083_v46  ;;  %v4081_v6 = vld [vmem:[%s6065_s4 + $0xc0] sm:$0xff] }
 0x1f3   :  { %974 = vmatmul.bf16.gmra.mxu1 %v4978_v5  ;;  %3615 = vmatmul.msk.bf16.gmra.mxu3 %vm478_vm1, %v4900_v56  ;;  %v5292_v42 = vpack.c.bf16 %v1298_v37, %v1294_v13  ;;  %v4082_v13 = vld [vmem:[%s6065_s4 + $0xc8] sm:$0xff]  ;;  %v4073_v37 = vld [vmem:[%s6065_s4 + $0x80] sm:$0xff] }
 0x1f4   :  { %1147 = vmatmul.bf16.gmra.mxu0 %v4908_v60  ;;  %3630 = vmatmul.msk.bf16.gmra.mxu2 %vm478_vm1, %v4794_v12  ;;  %v5298_v32 = vpack.c.bf16 %v1291_v26, %v1287_v58  ;;  %v4074_v12 = vld [vmem:[%s6065_s4 + $0x88] sm:$0xff] }
 0x1f5   :  { %1883 = vmatpush.bf16.msra.mxu0 %v4075_v3 }
 0x1f6   :  { %v1024_v55 = vpop.f32.mrf.mxu3  ;;  %1973 = vmatpush.bf16.msra.mxu2 %v4082_v13 }
 0x1f7   :  { %v1025_v4 = vadd.f32 %v1024_v55, %v936_v17  ;;  %v1197_v38 = vpop.f32.mrf.mxu2 }
 0x1f8   :  { %v1198_v2 = vadd.f32 %v1197_v38, %v1109_v11  ;;  %v937_v60 = vpop.f32.mrf.mxu1 }
 0x1f9   :  { %v1110_v51 = vpop.f32.mrf.mxu0  ;;  %v938_v43 = vadd.f32 %v937_v60, %v5117_v47  ;;  %1884 = vmatpush.bf16.msra.mxu0 %v4074_v12  ;;  %v1302_v61 = vmax.f32 %v1025_v4, 0.0 }
 0x1fa   :  { %v1111_v7 = vadd.f32 %v1110_v51, %v5136_v24  ;;  %v1295_v30 = vmax.f32 %v1198_v2, 0.0  ;;  %1974 = vmatpush.bf16.msra.mxu2 %v4081_v6 }
 0x1fd   :  { %1885 = vmatpush.bf16.msra.mxu0 %v4073_v37 }
 0x1fe   :  { %v1026_v45 = vpop.f32.mrf.mxu3 }
 0x1ff   :  { %v1027_v9 = vadd.f32 %v1026_v45, %v938_v43  ;;  %v1199_v63 = vpop.f32.mrf.mxu2 }
 0x200   :  { %v1200_v58 = vadd.f32 %v1199_v63, %v1111_v7  ;;  %v940_v26 = vpop.f32.mrf.mxu1 }
 0x201   :  { %v1306_v17 = vmax.f32 %v1027_v9, 0.0  ;;  %v1113_v14 = vpop.f32.mrf.mxu0  ;;  %v941_v55 = vadd.f32 %v940_v26, %v5117_v47 }
 0x202   :  { %v1299_v11 = vmax.f32 %v1200_v58, 0.0  ;;  %v1114_v38 = vadd.f32 %v1113_v14, %v5136_v24 }
 0x203   :  { %979 = vmatmul.bf16.gmra.mxu1 %v5002_v25  ;;  %3616 = vmatmul.msk.bf16.gmra.mxu3 %vm478_vm1, %v4969_v20  ;;  %v5324_v4 = vpack.c.bf16 %v1306_v17, %v1302_v61 }
 0x204   :  { %1152 = vmatmul.bf16.gmra.mxu0 %v4978_v5  ;;  %3631 = vmatmul.msk.bf16.gmra.mxu2 %vm478_vm1, %v4900_v56  ;;  %v5330_v3 = vpack.c.bf16 %v1299_v11, %v1295_v30 }
 0x206   :  { %v1029_v46 = vpop.f32.mrf.mxu3 }
 0x207   :  { %v1030_v2 = vadd.f32 %v1029_v46, %v941_v55  ;;  %v1202_v60 = vpop.f32.mrf.mxu2 }
 0x208   :  { %v1203_v51 = vadd.f32 %v1202_v60, %v1114_v38  ;;  %v942_v12 = vpop.f32.mrf.mxu1 }
 0x209   :  { %v1115_v13 = vpop.f32.mrf.mxu0  ;;  %v943_v43 = vadd.f32 %v942_v12, %v5117_v47  ;;  %v1310_v61 = vmax.f32 %v1030_v2, 0.0 }
 0x20a   :  { %v1116_v7 = vadd.f32 %v1115_v13, %v5136_v24  ;;  %v1303_v58 = vmax.f32 %v1203_v51, 0.0 }
 0x20e   :  { %v1031_v45 = vpop.f32.mrf.mxu3 }
 0x20f   :  { %v1032_v9 = vadd.f32 %v1031_v45, %v943_v43  ;;  %v1204_v63 = vpop.f32.mrf.mxu2 }
 0x210   :  { %v1205_v5 = vadd.f32 %v1204_v63, %v1116_v7  ;;  %v945_v37 = vpop.f32.mrf.mxu1 }
 0x211   :  { %v1314_v6 = vmax.f32 %v1032_v9, 0.0  ;;  %v1118_v56 = vpop.f32.mrf.mxu0  ;;  %v946_v17 = vadd.f32 %v945_v37, %v5117_v47 }
 0x212   :  { %v1307_v26 = vmax.f32 %v1205_v5, 0.0  ;;  %v1119_v30 = vadd.f32 %v1118_v56, %v5136_v24 }
 0x213   :  { %1708 = vmatmul.bf16.vlgmr.msra.gmra.mxu1 %v4674_v33  ;;  %1797 = vmatmul.bf16.vlgmr.msra.gmra.mxu3 %v4686_v50  ;;  %v5337_v14 = vpack.c.bf16 %v1314_v6, %v1310_v61 }
 0x214   :  { %1157 = vmatmul.bf16.gmra.mxu0 %v5002_v25  ;;  %3632 = vmatmul.msk.bf16.gmra.mxu2 %vm478_vm1, %v4969_v20  ;;  %v5343_v11 = vpack.c.bf16 %v1307_v26, %v1303_v58 }
 0x216   :  { %v1034_v55 = vpop.f32.mrf.mxu3 }
 0x217   :  { %v1035_v38 = vadd.f32 %v1034_v55, %v946_v17  ;;  %v1207_v46 = vpop.f32.mrf.mxu2 }
 0x218   :  { %v1208_v2 = vadd.f32 %v1207_v46, %v1119_v30  ;;  %v947_v60 = vpop.f32.mrf.mxu1 }
 0x219   :  { %v1120_v51 = vpop.f32.mrf.mxu0  ;;  %v948_v33 = vadd.f32 %v947_v60, %v5117_v47  ;;  %v1318_v13 = vmax.f32 %v1035_v38, 0.0 }
 0x21a   :  { %v1121_v50 = vadd.f32 %v1120_v51, %v5136_v24  ;;  %v1311_v9 = vmax.f32 %v1208_v2, 0.0 }
 0x21e   :  { %v1036_v12 = vpop.f32.mrf.mxu3 }
 0x21f   :  { %v1037_v43 = vadd.f32 %v1036_v12, %v948_v33  ;;  %v1209_v7 = vpop.f32.mrf.mxu2 }
 0x220   :  { %v1210_v25 = vadd.f32 %v1209_v7, %v1121_v50  ;;  %v950_v45 = vpop.f32.mrf.mxu1 }
 0x221   :  { %v1322_v61 = vmax.f32 %v1037_v43, 0.0  ;;  %v1123_v20 = vpop.f32.mrf.mxu0  ;;  %v951_v5 = vadd.f32 %v950_v45, %v5117_v47 }
 0x222   :  { %v1315_v63 = vmax.f32 %v1210_v25, 0.0  ;;  %v1124_v6 = vadd.f32 %v1123_v20, %v5136_v24 }
 0x223   :  { %1713 = vmatmul.bf16.gmra.mxu1 %v4707_v15  ;;  %1802 = vmatmul.bf16.gmra.mxu3 %v4716_v27  ;;  %v5350_v37 = vpack.c.bf16 %v1322_v61, %v1318_v13 }
 0x224   :  { %1886 = vmatmul.bf16.vlgmr.msra.gmra.mxu0 %v5140_v0  ;;  %1975 = vmatmul.bf16.vlgmr.msra.gmra.mxu2 %v5160_v29  ;;  %v5355_v56 = vpack.c.bf16 %v1315_v63, %v1311_v9 }
 0x226   :  { %v1039_v58 = vpop.f32.mrf.mxu3 }
 0x227   :  { %v1040_v26 = vadd.f32 %v1039_v58, %v951_v5  ;;  %v1212_v17 = vpop.f32.mrf.mxu2 }
 0x228   :  { %v1213_v30 = vadd.f32 %v1212_v17, %v1124_v6  ;;  %v952_v55 = vpop.f32.mrf.mxu1 }
 0x229   :  { %v1125_v38 = vpop.f32.mrf.mxu0  ;;  %v953_v15 = vadd.f32 %v952_v55, %v5117_v47  ;;  %v1326_v2 = vmax.f32 %v1040_v26, 0.0 }
 0x22a   :  { %v1126_v27 = vadd.f32 %v1125_v38, %v5136_v24  ;;  %v1319_v12 = vmax.f32 %v1213_v30, 0.0 }
 0x22e   :  { %v1041_v46 = vpop.f32.mrf.mxu3 }
 0x22f   :  { %v1042_v60 = vadd.f32 %v1041_v46, %v953_v15  ;;  %v1214_v51 = vpop.f32.mrf.mxu2 }
 0x230   :  { %v1215_v33 = vadd.f32 %v1214_v51, %v1126_v27  ;;  %v955_v0 = vpop.f32.mrf.mxu1 }
 0x231   :  { %v1330_v50 = vmax.f32 %v1042_v60, 0.0  ;;  %v1128_v29 = vpop.f32.mrf.mxu0  ;;  %v956_v43 = vadd.f32 %v955_v0, %v5117_v47 }
 0x232   :  { %v1323_v13 = vmax.f32 %v1215_v33, 0.0  ;;  %v1129_v25 = vadd.f32 %v1128_v29, %v5136_v24 }
 0x233   :  { %1718 = vmatmul.bf16.gmra.mxu1 %v4739_v62  ;;  %1807 = vmatmul.bf16.gmra.mxu3 %v4762_v31  ;;  %v5362_v7 = vpack.c.bf16 %v1330_v50, %v1326_v2  ;;  %v6082_v2 = vld [vmem:[#allocation6_spill] sm:$0xff] }
 0x234   :  { %1891 = vmatmul.bf16.gmra.mxu0 %v5158_v41  ;;  %1980 = vmatmul.bf16.gmra.mxu2 %v5178_v19  ;;  %v5367_v45 = vpack.c.bf16 %v1323_v13, %v1319_v12 }
 0x236   :  { %v1044_v61 = vpop.f32.mrf.mxu3 }
 0x237   :  { %v1045_v20 = vadd.f32 %v1044_v61, %v956_v43  ;;  %v1217_v9 = vpop.f32.mrf.mxu2 }
 0x238   :  { %v1218_v63 = vadd.f32 %v1217_v9, %v1129_v25  ;;  %v957_v5 = vpop.f32.mrf.mxu1 }
 0x239   :  { %v1130_v6 = vpop.f32.mrf.mxu0  ;;  %v958_v62 = vadd.f32 %v957_v5, %v5117_v47  ;;  %v1334_v26 = vmax.f32 %v1045_v20, 0.0 }
 0x23a   :  { %v1131_v31 = vadd.f32 %v1130_v6, %v5136_v24  ;;  %v1327_v15 = vmax.f32 %v1218_v63, 0.0 }
 0x23e   :  { %v1046_v58 = vpop.f32.mrf.mxu3 }
 0x23f   :  { %v1047_v17 = vadd.f32 %v1046_v58, %v958_v62  ;;  %v1219_v30 = vpop.f32.mrf.mxu2 }
 0x240   :  { %v1220_v55 = vadd.f32 %v1219_v30, %v1131_v31  ;;  %v960_v41 = vpop.f32.mrf.mxu1 }
 0x241   :  { %v1338_v38 = vmax.f32 %v1047_v17, 0.0  ;;  %v1133_v19 = vpop.f32.mrf.mxu0  ;;  %v961_v46 = vadd.f32 %v960_v41, %v5117_v47  ;;  %v6084_v17 = vld [vmem:[#allocation8_spill] sm:$0xff] }
 0x242   :  { %v1331_v27 = vmax.f32 %v1220_v55, 0.0  ;;  %v1134_v51 = vadd.f32 %v1133_v19, %v5136_v24 }
 0x243   :  { %1723 = vmatmul.bf16.gmra.mxu1 %v4801_v21  ;;  %1812 = vmatmul.bf16.gmra.mxu3 %v6082_v2  ;;  %v5374_v60 = vpack.c.bf16 %v1338_v38, %v1334_v26  ;;  %v6083_v26 = vld [vmem:[#allocation7_spill] sm:$0xff] }
 0x244   :  { %1896 = vmatmul.bf16.gmra.mxu0 %v5172_v53  ;;  %1985 = vmatmul.bf16.gmra.mxu2 %v5198_v23  ;;  %v5379_v33 = vpack.c.bf16 %v1331_v27, %v1327_v15 }
 0x246   :  { %v1049_v0 = vpop.f32.mrf.mxu3 }
 0x247   :  { %v1050_v50 = vadd.f32 %v1049_v0, %v961_v46  ;;  %v1222_v29 = vpop.f32.mrf.mxu2 }
 0x248   :  { %v1223_v12 = vadd.f32 %v1222_v29, %v1134_v51  ;;  %v962_v13 = vpop.f32.mrf.mxu1 }
 0x249   :  { %v1135_v43 = vpop.f32.mrf.mxu0  ;;  %v963_v21 = vadd.f32 %v962_v13, %v5117_v47  ;;  %v1342_v20 = vmax.f32 %v1050_v50, 0.0 }
 0x24a   :  { %v1136_v25 = vadd.f32 %v1135_v43, %v5136_v24  ;;  %v1335_v62 = vmax.f32 %v1223_v12, 0.0 }
 0x24e   :  { %v1051_v61 = vpop.f32.mrf.mxu3 }
 0x24f   :  { %v1052_v9 = vadd.f32 %v1051_v61, %v963_v21  ;;  %v1224_v63 = vpop.f32.mrf.mxu2 }
 0x250   :  { %v1225_v5 = vadd.f32 %v1224_v63, %v1136_v25  ;;  %v965_v53 = vpop.f32.mrf.mxu1  ;;  %v6086_v63 = vld [vmem:[#allocation10_spill] sm:$0xff] }
 0x251   :  { %v1346_v6 = vmax.f32 %v1052_v9, 0.0  ;;  %v1138_v23 = vpop.f32.mrf.mxu0  ;;  %v966_v58 = vadd.f32 %v965_v53, %v5117_v47  ;;  %v6085_v9 = vld [vmem:[#allocation9_spill] sm:$0xff] }
 0x252   :  { %v1339_v31 = vmax.f32 %v1225_v5, 0.0  ;;  %v1139_v55 = vadd.f32 %v1138_v23, %v5136_v24 }
 0x253   :  { %1728 = vmatmul.bf16.gmra.mxu1 %v6083_v26  ;;  %1817 = vmatmul.bf16.gmra.mxu3 %v6084_v17  ;;  %v5386_v30 = vpack.c.bf16 %v1346_v6, %v1342_v20 }
 0x254   :  { %1901 = vmatmul.bf16.gmra.mxu0 %v5192_v1  ;;  %1990 = vmatmul.bf16.gmra.mxu2 %v5242_v36  ;;  %v5391_v41 = vpack.c.bf16 %v1339_v31, %v1335_v62 }
 0x256   :  { %v1054_v38 = vpop.f32.mrf.mxu3 }
 0x257   :  { %v1055_v19 = vadd.f32 %v1054_v38, %v966_v58  ;;  %v1227_v15 = vpop.f32.mrf.mxu2 }
 0x258   :  { %v1228_v27 = vadd.f32 %v1227_v15, %v1139_v55  ;;  %v967_v46 = vpop.f32.mrf.mxu1 }
 0x259   :  { %v1140_v2 = vpop.f32.mrf.mxu0  ;;  %v968_v51 = vadd.f32 %v967_v46, %v5117_v47  ;;  %v1350_v29 = vmax.f32 %v1055_v19, 0.0 }
 0x25a   :  { %v1141_v0 = vadd.f32 %v1140_v2, %v5136_v24  ;;  %v1343_v25 = vmax.f32 %v1228_v27, 0.0 }
 0x25e   :  { %v1056_v50 = vpop.f32.mrf.mxu3 }
 0x25f   :  { %v1057_v12 = vadd.f32 %v1056_v50, %v968_v51  ;;  %v1229_v13 = vpop.f32.mrf.mxu2 }
 0x260   :  { %v1230_v43 = vadd.f32 %v1229_v13, %v1141_v0  ;;  %v970_v1 = vpop.f32.mrf.mxu1  ;;  %v6088_v13 = vld [vmem:[#allocation12_spill] sm:$0xff] }
 0x261   :  { %v1354_v21 = vmax.f32 %v1057_v12, 0.0  ;;  %v1143_v36 = vpop.f32.mrf.mxu0  ;;  %v971_v20 = vadd.f32 %v970_v1, %v5117_v47  ;;  %v6087_v12 = vld [vmem:[#allocation11_spill] sm:$0xff] }
 0x262   :  { %v1347_v61 = vmax.f32 %v1230_v43, 0.0  ;;  %v1144_v53 = vadd.f32 %v1143_v36, %v5136_v24 }
 0x263   :  { %1733 = vmatmul.bf16.gmra.mxu1 %v6085_v9  ;;  %1822 = vmatmul.bf16.gmra.mxu3 %v6086_v63  ;;  %v5398_v5 = vpack.c.bf16 %v1354_v21, %v1350_v29 }
 0x264   :  { %1906 = vmatmul.bf16.gmra.mxu0 %v5236_v40  ;;  %1995 = vmatmul.bf16.gmra.mxu2 %v5298_v32  ;;  %v5403_v6 = vpack.c.bf16 %v1347_v61, %v1343_v25 }
 0x266   :  { %v1059_v23 = vpop.f32.mrf.mxu3 }
 0x267   :  { %v1060_v62 = vadd.f32 %v1059_v23, %v971_v20  ;;  %v1232_v31 = vpop.f32.mrf.mxu2 }
 0x268   :  { %v1233_v58 = vadd.f32 %v1232_v31, %v1144_v53  ;;  %v972_v26 = vpop.f32.mrf.mxu1 }
 0x269   :  { %v1145_v17 = vpop.f32.mrf.mxu0  ;;  %v973_v55 = vadd.f32 %v972_v26, %v5117_v47  ;;  %v1358_v15 = vmax.f32 %v1060_v62, 0.0 }
 0x26a   :  { %v1146_v38 = vadd.f32 %v1145_v17, %v5136_v24  ;;  %v1351_v0 = vmax.f32 %v1233_v58, 0.0 }
 0x26e   :  { %v1061_v19 = vpop.f32.mrf.mxu3 }
 0x26f   :  { %v1062_v27 = vadd.f32 %v1061_v19, %v973_v55  ;;  %v1234_v46 = vpop.f32.mrf.mxu2 }
 0x270   :  { %v1235_v2 = vadd.f32 %v1234_v46, %v1146_v38  ;;  %v975_v40 = vpop.f32.mrf.mxu1 }
 0x271   :  { %v1362_v51 = vmax.f32 %v1062_v27, 0.0  ;;  %v1148_v32 = vpop.f32.mrf.mxu0  ;;  %v976_v29 = vadd.f32 %v975_v40, %v5117_v47 }
 0x272   :  { %v1355_v50 = vmax.f32 %v1235_v2, 0.0  ;;  %v1149_v1 = vadd.f32 %v1148_v32, %v5136_v24 }
 0x273   :  { %1738 = vmatmul.bf16.gmra.mxu1 %v6087_v12  ;;  %1827 = vmatmul.bf16.gmra.mxu3 %v6088_v13  ;;  %v5410_v43 = vpack.c.bf16 %v1362_v51, %v1358_v15 }
 0x274   :  { %1911 = vmatmul.bf16.gmra.mxu0 %v5292_v42  ;;  %2000 = vmatmul.bf16.gmra.mxu2 %v5330_v3  ;;  %v5415_v21 = vpack.c.bf16 %v1355_v50, %v1351_v0 }
 0x276   :  { %v1064_v36 = vpop.f32.mrf.mxu3 }
 0x277   :  { %v1065_v25 = vadd.f32 %v1064_v36, %v976_v29  ;;  %v1237_v61 = vpop.f32.mrf.mxu2 }
 0x278   :  { %v1238_v20 = vadd.f32 %v1237_v61, %v1149_v1  ;;  %v977_v9 = vpop.f32.mrf.mxu1 }
 0x279   :  { %v1150_v63 = vpop.f32.mrf.mxu0  ;;  %v978_v53 = vadd.f32 %v977_v9, %v5117_v47  ;;  %v1366_v31 = vmax.f32 %v1065_v25, 0.0 }
 0x27a   :  { %v1151_v23 = vadd.f32 %v1150_v63, %v5136_v24  ;;  %v1359_v38 = vmax.f32 %v1238_v20, 0.0 }
 0x27e   :  { %v1066_v62 = vpop.f32.mrf.mxu3 }
 0x27f   :  { %v1067_v58 = vadd.f32 %v1066_v62, %v978_v53  ;;  %v1239_v26 = vpop.f32.mrf.mxu2 }
 0x280   :  { %v1240_v17 = vadd.f32 %v1239_v26, %v1151_v23  ;;  %v980_v42 = vpop.f32.mrf.mxu1 }
 0x281   :  { %v1370_v55 = vmax.f32 %v1067_v58, 0.0  ;;  %v1153_v3 = vpop.f32.mrf.mxu0  ;;  %v981_v15 = vadd.f32 %v980_v42, %v5117_v47 }
 0x282   :  { %v1363_v19 = vmax.f32 %v1240_v17, 0.0  ;;  %v1154_v46 = vadd.f32 %v1153_v3, %v5136_v24 }
 0x283   :  { %1743 = vmatmul.bf16.gmra.mxu1 %v5017_v8  ;;  %1832 = vmatmul.bf16.gmra.mxu3 %v5026_v44  ;;  %v5422_v27 = vpack.c.bf16 %v1370_v55, %v1366_v31 }
 0x284   :  { %1916 = vmatmul.bf16.gmra.mxu0 %v5324_v4  ;;  %2005 = vmatmul.bf16.gmra.mxu2 %v5343_v11  ;;  %v5427_v2 = vpack.c.bf16 %v1363_v19, %v1359_v38 }
 0x286   :  { %v1069_v40 = vpop.f32.mrf.mxu3 }
 0x287   :  { %v1070_v51 = vadd.f32 %v1069_v40, %v981_v15  ;;  %v1242_v32 = vpop.f32.mrf.mxu2 }
 0x288   :  { %v1243_v0 = vadd.f32 %v1242_v32, %v1154_v46  ;;  %v982_v50 = vpop.f32.mrf.mxu1 }
 0x289   :  { %v1155_v29 = vpop.f32.mrf.mxu0  ;;  %v983_v8 = vadd.f32 %v982_v50, %v5117_v47  ;;  %v1374_v13 = vmax.f32 %v1070_v51, 0.0 }
 0x28a   :  { %v1156_v44 = vadd.f32 %v1155_v29, %v5136_v24  ;;  %v1367_v20 = vmax.f32 %v1243_v0, 0.0 }
 0x28e   :  { %v1071_v12 = vpop.f32.mrf.mxu3 }
 0x28f   :  { %v1072_v1 = vadd.f32 %v1071_v12, %v983_v8  ;;  %v1244_v36 = vpop.f32.mrf.mxu2 }
 0x290   :  { %v1245_v25 = vadd.f32 %v1244_v36, %v1156_v44  ;;  %v1709_v4 = vpop.f32.mrf.mxu1 }
 0x291   :  { %v1378_v61 = vmax.f32 %v1072_v1, 0.0  ;;  %v1158_v11 = vpop.f32.mrf.mxu0 }
 0x292   :  { %v1371_v9 = vmax.f32 %v1245_v25, 0.0  ;;  %v1159_v47 = vadd.f32 %v1158_v11, %v5136_v24 }
 0x293   :  { %1748 = vmatmul.bf16.gmra.mxu1 %v5031_v49  ;;  %1837 = vmatmul.bf16.gmra.mxu3 %v5040_v18  ;;  %v5433_v63 = vpack.c.bf16 %v1378_v61, %v1374_v13 }
 0x294   :  { %1921 = vmatmul.bf16.gmra.mxu0 %v5337_v14  ;;  %2010 = vmatmul.bf16.gmra.mxu2 %v5355_v56  ;;  %v5438_v53 = vpack.c.bf16 %v1371_v9, %v1367_v20 }
 0x296   :  { %v1798_v23 = vpop.f32.mrf.mxu3 }
 0x297   :  { %v1799_v62 = vadd.f32 %v1798_v23, %v1709_v4  ;;  %v1247_v31 = vpop.f32.mrf.mxu2 }
 0x298   :  { %v1248_v58 = vadd.f32 %v1247_v31, %v1159_v47  ;;  %v1711_v26 = vpop.f32.mrf.mxu1 }
 0x299   :  { %v1160_v17 = vpop.f32.mrf.mxu0 }
 0x29a   :  { %v1161_v49 = vadd.f32 %v1160_v17, %v5136_v24  ;;  %v1375_v15 = vmax.f32 %v1248_v58, 0.0 }
 0x29e   :  { %v1800_v42 = vpop.f32.mrf.mxu3 }
 0x29f   :  { %v1801_v18 = vadd.f32 %v1800_v42, %v1711_v26  ;;  %v1249_v55 = vpop.f32.mrf.mxu2 }
 0x2a0   :  { %v1250_v3 = vadd.f32 %v1249_v55, %v1161_v49  ;;  %v1714_v38 = vpop.f32.mrf.mxu1 }
 0x2a1   :  { %v1887_v19 = vpop.f32.mrf.mxu0 }
 0x2a2   :  { %v1379_v14 = vmax.f32 %v1250_v3, 0.0  ;;  %v1888_v46 = vadd.f32 %v1887_v19, %v1799_v62 }
 0x2a3   :  { %1753 = vmatmul.bf16.gmra.mxu1 %v5045_v10  ;;  %1842 = vmatmul.bf16.gmra.mxu3 %v5054_v48 }
 0x2a4   :  { %1926 = vmatmul.bf16.gmra.mxu0 %v5350_v37  ;;  %2015 = vmatmul.bf16.gmra.mxu2 %v5367_v45  ;;  %v5445_v56 = vpack.c.bf16 %v1379_v14, %v1375_v15 }
 0x2a6   :  { %v1803_v24 = vpop.f32.mrf.mxu3 }
 0x2a7   :  { %v1804_v40 = vadd.f32 %v1803_v24, %v1714_v38  ;;  %v1976_v51 = vpop.f32.mrf.mxu2 }
 0x2a8   :  { %v5447_v32 = vadd.f32 %v1976_v51, %v1888_v46  ;;  %v1716_v0 = vpop.f32.mrf.mxu1 }
 0x2a9   :  { %v1889_v50 = vpop.f32.mrf.mxu0 }
 0x2aa   :  { %v1890_v29 = vadd.f32 %v1889_v50, %v1801_v18 }
 0x2ae   :  { %v1805_v8 = vpop.f32.mrf.mxu3 }
 0x2af   :  { %v1806_v44 = vadd.f32 %v1805_v8, %v1716_v0  ;;  %v1978_v12 = vpop.f32.mrf.mxu2 }
 0x2b0   :  { %v5449_v10 = vadd.f32 %v1978_v12, %v1890_v29  ;;  %v1719_v48 = vpop.f32.mrf.mxu1 }
 0x2b1   :  { %v1892_v13 = vpop.f32.mrf.mxu0 }
 0x2b2   :  { %v2058_v37 = vpack.c.bf16 %v5449_v10, %v5447_v32  ;;  %v1893_v45 = vadd.f32 %v1892_v13, %v1804_v40 }
 0x2b3   :  { %1758 = vmatmul.bf16.gmra.mxu1 %v5059_v16  ;;  %1847 = vmatmul.bf16.gmra.mxu3 %v5068_v54 }
 0x2b4   :  { %1931 = vmatmul.bf16.gmra.mxu0 %v5362_v7  ;;  %2020 = vmatmul.bf16.gmra.mxu2 %v5379_v33 }
 0x2b6   :  { %v1808_v1 = vpop.f32.mrf.mxu3 }
 0x2b7   :  { %v1809_v36 = vadd.f32 %v1808_v1, %v1719_v48  ;;  %v1981_v25 = vpop.f32.mrf.mxu2 }
 0x2b8   :  { %v5457_v4 = vadd.f32 %v1981_v25, %v1893_v45  ;;  %v1721_v61 = vpop.f32.mrf.mxu1 }
 0x2b9   :  { %v1894_v11 = vpop.f32.mrf.mxu0 }
 0x2ba   :  { %v1895_v20 = vadd.f32 %v1894_v11, %v1806_v44  ;;  %v6089_v44 = vld [vmem:[#allocation13_spill] sm:$0xff] }
 0x2be   :  { %v1810_v9 = vpop.f32.mrf.mxu3 }
 0x2bf   :  { %v1811_v47 = vadd.f32 %v1810_v9, %v1721_v61  ;;  %v1983_v23 = vpop.f32.mrf.mxu2 }
 0x2c0   :  { %v5459_v62 = vadd.f32 %v1983_v23, %v1895_v20  ;;  %v1724_v16 = vpop.f32.mrf.mxu1  ;;  %v6090_v20 = vld [vmem:[#allocation14_spill] sm:$0xff] }
 0x2c1   :  { %v1897_v31 = vpop.f32.mrf.mxu0 }
 0x2c2   :  { %v2059_v54 = vpack.c.bf16 %v5459_v62, %v5457_v4  ;;  %v1898_v7 = vadd.f32 %v1897_v31, %v1809_v36 }
 0x2c3   :  { %1763 = vmatmul.bf16.gmra.mxu1 %v5073_v22  ;;  %1852 = vmatmul.bf16.gmra.mxu3 %v5082_v52 }
 0x2c4   :  { %1936 = vmatmul.bf16.gmra.mxu0 %v5374_v60  ;;  %2025 = vmatmul.bf16.gmra.mxu2 %v5391_v41 }
 0x2c6   :  { %v1813_v33 = vpop.f32.mrf.mxu3 }
 0x2c7   :  { %v1814_v58 = vadd.f32 %v1813_v33, %v1724_v16  ;;  %v1986_v26 = vpop.f32.mrf.mxu2 }
 0x2c8   :  { %v5467_v17 = vadd.f32 %v1986_v26, %v1898_v7  ;;  %v1726_v49 = vpop.f32.mrf.mxu1 }
 0x2c9   :  { %v1899_v42 = vpop.f32.mrf.mxu0 }
 0x2ca   :  { %v1900_v18 = vadd.f32 %v1899_v42, %v1811_v47 }
 0x2ce   :  { %v1815_v55 = vpop.f32.mrf.mxu3 }
 0x2cf   :  { %v1816_v3 = vadd.f32 %v1815_v55, %v1726_v49  ;;  %v1988_v38 = vpop.f32.mrf.mxu2 }
 0x2d0   :  { %v5469_v19 = vadd.f32 %v1988_v38, %v1900_v18  ;;  %v1729_v22 = vpop.f32.mrf.mxu1 }
 0x2d1   :  { %v1902_v15 = vpop.f32.mrf.mxu0 }
 0x2d2   :  { %v2060_v52 = vpack.c.bf16 %v5469_v19, %v5467_v17  ;;  %v1903_v60 = vadd.f32 %v1902_v15, %v1814_v58 }
 0x2d3   :  { %1768 = vmatmul.bf16.gmra.mxu1 %v5087_v28  ;;  %1857 = vmatmul.bf16.gmra.mxu3 %v5096_v57 }
 0x2d4   :  { %1941 = vmatmul.bf16.gmra.mxu0 %v5386_v30  ;;  %2030 = vmatmul.bf16.gmra.mxu2 %v5403_v6 }
 0x2d6   :  { %v1818_v41 = vpop.f32.mrf.mxu3 }
 0x2d7   :  { %v1819_v14 = vadd.f32 %v1818_v41, %v1729_v22  ;;  %v1991_v46 = vpop.f32.mrf.mxu2 }
 0x2d8   :  { %v5477_v24 = vadd.f32 %v1991_v46, %v1903_v60  ;;  %v5479_v40 = vpop.f32.mrf.mxu1 }
 0x2d9   :  { %v1904_v51 = vpop.f32.mrf.mxu0 }
 0x2da   :  { %v1905_v0 = vadd.f32 %v1904_v51, %v1816_v3 }
 0x2de   :  { %v5481_v50 = vpop.f32.mrf.mxu3 }
 0x2df   :  { %v1993_v29 = vpop.f32.mrf.mxu2 }
 0x2e0   :  { %v5483_v8 = vadd.f32 %v1993_v29, %v1905_v0  ;;  %v5485_v28 = vpop.f32.mrf.mxu1 }
 0x2e1   :  { %v1907_v57 = vpop.f32.mrf.mxu0 }
 0x2e2   :  { %v2061_v30 = vpack.c.bf16 %v5483_v8, %v5477_v24  ;;  %v1908_v6 = vadd.f32 %v1907_v57, %v1819_v14 }
 0x2e3   :  { %1773 = vmatmul.bf16.gmra.mxu1 %v5101_v34  ;;  %1862 = vmatmul.bf16.gmra.mxu3 %v6089_v44 }
 0x2e4   :  { %1946 = vmatmul.bf16.gmra.mxu0 %v5398_v5  ;;  %2035 = vmatmul.bf16.gmra.mxu2 %v5415_v21 }
 0x2e6   :  { %v1823_v12 = vpop.f32.mrf.mxu3 }
 0x2e7   :  { %v1996_v48 = vpop.f32.mrf.mxu2 }
 0x2e8   :  { %v5493_v13 = vadd.f32 %v1996_v48, %v1908_v6  ;;  %v1736_v45 = vpop.f32.mrf.mxu1  ;;  %v1824_v48 = vadd.f32 %v1823_v12, %v5485_v28 }
 0x2e9   :  { %v5495_v1 = vpop.f32.mrf.mxu0 }
 0x2ee   :  { %v1825_v36 = vpop.f32.mrf.mxu3 }
 0x2ef   :  { %v5497_v25 = vpop.f32.mrf.mxu2 }
 0x2f0   :  { %v1739_v61 = vpop.f32.mrf.mxu1 }
 0x2f1   :  { %v1912_v11 = vpop.f32.mrf.mxu0 }
 0x2f3   :  { %1778 = vmatmul.bf16.gmra.mxu1 %v6090_v20  ;;  %1867 = vmatmul.bf16.gmra.mxu3 %v5130_v59 }
 0x2f4   :  { %1951 = vmatmul.bf16.gmra.mxu0 %v5410_v43  ;;  %2040 = vmatmul.bf16.gmra.mxu2 %v5427_v2 }
 0x2f6   :  { %v1828_v34 = vpop.f32.mrf.mxu3 }
 0x2f7   :  { %v2001_v5 = vpop.f32.mrf.mxu2  ;;  %v1829_v41 = vadd.f32 %v1828_v34, %v1739_v61 }
 0x2f8   :  { %v1741_v21 = vpop.f32.mrf.mxu1 }
 0x2f9   :  { %v1914_v9 = vpop.f32.mrf.mxu0 }
 0x2fe   :  { %v1830_v47 = vpop.f32.mrf.mxu3 }
 0x2ff   :  { %v2003_v23 = vpop.f32.mrf.mxu2 }
 0x300   :  { %v1744_v16 = vpop.f32.mrf.mxu1 }
 0x301   :  { %v1917_v31 = vpop.f32.mrf.mxu0 }
 0x303   :  { %1783 = vmatmul.bf16.gmra.mxu1 %v5138_v35  ;;  %1872 = vmatmul.bf16.gmra.mxu3 %v5150_v39 }
 0x304   :  { %1956 = vmatmul.bf16.gmra.mxu0 %v5422_v27  ;;  %2045 = vmatmul.bf16.gmra.mxu2 %v5438_v53  ;;  %v1831_v53 = vadd.f32 %v1830_v47, %v1741_v21  ;;  %v1821_v21 = vadd.f32 %v5481_v50, %v5479_v40  ;;  %v1913_v47 = vadd.f32 %v1912_v11, %v1824_v48 }
 0x306   :  { %v1833_v59 = vpop.f32.mrf.mxu3 }
 0x307   :  { %v2006_v43 = vpop.f32.mrf.mxu2  ;;  %v1834_v27 = vadd.f32 %v1833_v59, %v1744_v16 }
 0x308   :  { %v1746_v7 = vpop.f32.mrf.mxu1 }
 0x309   :  { %v1919_v2 = vpop.f32.mrf.mxu0 }
 0x30a   :  { %v1920_v14 = vadd.f32 %v1919_v2, %v1831_v53 }
 0x30e   :  { %v1835_v33 = vpop.f32.mrf.mxu3 }
 0x30f   :  { %v2008_v58 = vpop.f32.mrf.mxu2  ;;  %v1836_v3 = vadd.f32 %v1835_v33, %v1746_v7 }
 0x310   :  { %v1749_v26 = vpop.f32.mrf.mxu1  ;;  %v2009_v57 = vadd.f32 %v2008_v58, %v1920_v14 }
 0x311   :  { %v1922_v49 = vpop.f32.mrf.mxu0 }
 0x312   :  { %v1923_v38 = vadd.f32 %v1922_v49, %v1834_v27 }
 0x314   :  { %1961 = vmatmul.bf16.gmra.mxu0 %v5433_v63  ;;  %2050 = vmatmul.bf16.gmra.mxu2 %v5445_v56  ;;  %v1826_v63 = vadd.f32 %v1825_v36, %v1736_v45  ;;  %v1918_v56 = vadd.f32 %v1917_v31, %v1829_v41  ;;  %v1910_v45 = vadd.f32 %v5495_v1, %v1821_v21 }
 0x315   :  { %v2002_v36 = vadd.f32 %v2001_v5, %v1913_v47 }
 0x316   :  { %v1838_v42 = vpop.f32.mrf.mxu3  ;;  %v1915_v20 = vadd.f32 %v1914_v9, %v1826_v63  ;;  %v2007_v16 = vadd.f32 %v2006_v43, %v1918_v56  ;;  %v1999_v12 = vadd.f32 %v5497_v25, %v1910_v45 }
 0x317   :  { %v1839_v35 = vadd.f32 %v1838_v42, %v1749_v26  ;;  %v2011_v18 = vpop.f32.mrf.mxu2 }
 0x318   :  { %v1751_v39 = vpop.f32.mrf.mxu1  ;;  %v2012_v46 = vadd.f32 %v2011_v18, %v1923_v38  ;;  %v2004_v61 = vadd.f32 %v2003_v23, %v1915_v20  ;;  %v2064_v34 = vpack.c.bf16 %v2009_v57, %v2007_v16  ;;  %v2062_v40 = vpack.c.bf16 %v1999_v12, %v5493_v13 }
 0x319   :  { %v1924_v55 = vpop.f32.mrf.mxu0 }
 0x31a   :  { %v1925_v22 = vadd.f32 %v1924_v55, %v1836_v3  ;;  %v2063_v9 = vpack.c.bf16 %v2004_v61, %v2002_v36 }
 0x31e   :  { %v1840_v15 = vpop.f32.mrf.mxu3 }
 0x31f   :  { %v2013_v60 = vpop.f32.mrf.mxu2  ;;  %v1841_v43 = vadd.f32 %v1840_v15, %v1751_v39 }
 0x320   :  { %v2014_v51 = vadd.f32 %v2013_v60, %v1925_v22  ;;  %v1754_v0 = vpop.f32.mrf.mxu1 }
 0x321   :  { %v1927_v29 = vpop.f32.mrf.mxu0 }
 0x322   :  { %v2065_v6 = vpack.c.bf16 %v2014_v51, %v2012_v46  ;;  %v1928_v44 = vadd.f32 %v1927_v29, %v1839_v35 }
 0x324   :  { %2084 = vmatpush.bf16.msrb.mxu1 %v2065_v6 }
 0x326   :  { %v1843_v59 = vpop.f32.mrf.mxu3 }
 0x327   :  { %v1844_v7 = vadd.f32 %v1843_v59, %v1754_v0  ;;  %v2016_v2 = vpop.f32.mrf.mxu2 }
 0x328   :  { %v5513_v31 = vadd.f32 %v2016_v2, %v1928_v44  ;;  %v1756_v33 = vpop.f32.mrf.mxu1  ;;  %2085 = vmatpush.bf16.msrb.mxu1 %v2064_v34 }
 0x329   :  { %v1929_v28 = vpop.f32.mrf.mxu0 }
 0x32a   :  { %v1930_v50 = vadd.f32 %v1929_v28, %v1841_v43 }
 0x32c   :  { %2086 = vmatpush.bf16.msrb.mxu1 %v2063_v9 }
 0x32e   :  { %v1845_v11 = vpop.f32.mrf.mxu3 }
 0x32f   :  { %v1846_v23 = vadd.f32 %v1845_v11, %v1756_v33  ;;  %v2018_v58 = vpop.f32.mrf.mxu2 }
 0x330   :  { %v5517_v26 = vadd.f32 %v2018_v58, %v1930_v50  ;;  %v1759_v1 = vpop.f32.mrf.mxu1  ;;  %2087 = vmatpush.bf16.msrb.mxu1 %v2062_v40 }
 0x331   :  { %v1932_v5 = vpop.f32.mrf.mxu0 }
 0x332   :  { %v2066_v49 = vpack.c.bf16 %v5517_v26, %v5513_v31  ;;  %v1933_v42 = vadd.f32 %v1932_v5, %v1844_v7  ;;  %v4091_v26 = vld [vmem:[%s6066_s5 + $0x4] sm:$0xf] }
 0x334   :  { %2088 = vmatpush.bf16.msrb.mxu1 %v2061_v30 }
 0x336   :  { %v1848_v25 = vpop.f32.mrf.mxu3 }
 0x337   :  { %v1849_v35 = vadd.f32 %v1848_v25, %v1759_v1  ;;  %v2021_v13 = vpop.f32.mrf.mxu2 }
 0x338   :  { %v5524_v18 = vadd.f32 %v2021_v13, %v1933_v42  ;;  %v1761_v39 = vpop.f32.mrf.mxu1  ;;  %2089 = vmatpush.bf16.msrb.mxu1 %v2060_v52 }
 0x339   :  { %v1934_v55 = vpop.f32.mrf.mxu0 }
 0x33a   :  { %v1935_v27 = vadd.f32 %v1934_v55, %v1846_v23 }
 0x33c   :  { %2090 = vmatpush.bf16.msrb.mxu1 %v2059_v54 }
 0x33e   :  { %v1850_v3 = vpop.f32.mrf.mxu3 }
 0x33f   :  { %v1851_v53 = vadd.f32 %v1850_v3, %v1761_v39  ;;  %v2023_v24 = vpop.f32.mrf.mxu2 }
 0x340   :  { %v5532_v8 = vadd.f32 %v2023_v24, %v1935_v27  ;;  %2091 = vmatpush.bf16.msrb.mxu1 %v2058_v37  ;;  %v1764_v30 = vpop.f32.mrf.mxu1 }
 0x341   :  { %v1937_v38 = vpop.f32.mrf.mxu0 }
 0x342   :  { %v2067_v17 = vpack.c.bf16 %v5532_v8, %v5524_v18  ;;  %v1938_v19 = vadd.f32 %v1937_v38, %v1849_v35  ;;  %v3785_v18 = vld [vmem:[%s6066_s5 + $0x24] sm:$0xf0] }
 0x346   :  { %v1853_v52 = vpop.f32.mrf.mxu3 }
 0x347   :  { %v1854_v22 = vadd.f32 %v1853_v52, %v1764_v30  ;;  %v2026_v15 = vpop.f32.mrf.mxu2 }
 0x348   :  { %v5539_v4 = vadd.f32 %v2026_v15, %v1938_v19  ;;  %v1766_v60 = vpop.f32.mrf.mxu1  ;;  %v3763_v15 = vld [vmem:[%s6064_s3] sm:$0xf] }
 0x349   :  { %v1939_v62 = vpop.f32.mrf.mxu0 }
 0x34a   :  { %v1940_v54 = vadd.f32 %v1939_v62, %v1851_v53  ;;  %v4090_v62 = vld [vmem:[%s6064_s3 + $0x4] sm:$0xf0] }
 0x34e   :  { %v1855_v41 = vpop.f32.mrf.mxu3 }
 0x34f   :  { %v1856_v14 = vadd.f32 %v1855_v41, %v1766_v60  ;;  %v2028_v46 = vpop.f32.mrf.mxu2  ;;  %v3764_v60 = vor.u32 %v4090_v62, %v3763_v15 }
 0x350   :  { %v5541_v51 = vadd.f32 %v2028_v46, %v1940_v54  ;;  %v1769_v0 = vpop.f32.mrf.mxu1 }
 0x351   :  { %v1942_v32 = vpop.f32.mrf.mxu0  ;;  %2092 = vmatmul.bf16.vlgmr.msrb.gmra.mxu1 %v3764_v60 }
 0x352   :  { %v2068_v10 = vpack.c.bf16 %v5541_v51, %v5539_v4  ;;  %v1943_v37 = vadd.f32 %v1942_v32, %v1854_v22  ;;  %v4094_v4 = vld [vmem:[%s6066_s5 + $0x1c] sm:$0xf]  ;;  %v4095_v51 = vld [vmem:[%s6066_s5 + $0x20] sm:$0xf0] }
 0x353   :  { %v3788_v8 = vor.u32 %v4094_v4, %v3785_v18 }
 0x356   :  { %v1858_v63 = vpop.f32.mrf.mxu3 }
 0x357   :  { %v1859_v29 = vadd.f32 %v1858_v63, %v1769_v0  ;;  %v2031_v56 = vpop.f32.mrf.mxu2 }
 0x358   :  { %v5545_v57 = vadd.f32 %v2031_v56, %v1943_v37  ;;  %v1771_v20 = vpop.f32.mrf.mxu1  ;;  %v3791_v56 = vld [vmem:[%s6066_s5 + $0x20] sm:$0xf] }
 0x359   :  { %v1944_v6 = vpop.f32.mrf.mxu0 }
 0x35a   :  { %v1945_v44 = vadd.f32 %v1944_v6, %v1856_v14  ;;  %v4096_v6 = vld [vmem:[%s6066_s5 + $0x28] sm:$0xf0] }
 0x35e   :  { %v1860_v48 = vpop.f32.mrf.mxu3 }
 0x35f   :  { %v2033_v16 = vpop.f32.mrf.mxu2 }
 0x360   :  { %v5547_v21 = vadd.f32 %v2033_v16, %v1945_v44  ;;  %v1774_v45 = vpop.f32.mrf.mxu1 }
 0x361   :  { %v1947_v47 = vpop.f32.mrf.mxu0 }
 0x362   :  { %v2069_v61 = vpack.c.bf16 %v5547_v21, %v5545_v57  ;;  %v1948_v34 = vadd.f32 %v1947_v47, %v1859_v29  ;;  %v4093_v21 = vld [vmem:[%s6066_s5 + $0x10] sm:$0xf0] }
 0x366   :  { %v1863_v59 = vpop.f32.mrf.mxu3 }
 0x367   :  { %v2036_v7 = vpop.f32.mrf.mxu2  ;;  %v1864_v44 = vadd.f32 %v1863_v59, %v1774_v45 }
 0x368   :  { %v2037_v2 = vadd.f32 %v2036_v7, %v1948_v34  ;;  %v1776_v9 = vpop.f32.mrf.mxu1  ;;  %v3792_v34 = vor.u32 %v4096_v6, %v3791_v56  ;;  %v1861_v7 = vadd.f32 %v1860_v48, %v1771_v20  ;;  %v4089_v48 = vld [vmem:[%s6064_s3 + $0x4] sm:$0xf]  ;;  %v3765_v20 = vld [vmem:[%s6064_s3 + $0x8] sm:$0xf0] }
 0x369   :  { %v1949_v36 = vpop.f32.mrf.mxu0  ;;  %v3768_v59 = vor.u32 %v4089_v48, %v3765_v20 }
 0x36a   :  { %2199 = vmatpush.bf16.msrb.mxu2 %v3792_v34 }
 0x36e   :  { %v1865_v28 = vpop.f32.mrf.mxu3 }
 0x36f   :  { %v2038_v33 = vpop.f32.mrf.mxu2  ;;  %v1866_v37 = vadd.f32 %v1865_v28, %v1776_v9  ;;  %v1950_v9 = vadd.f32 %v1949_v36, %v1861_v7 }
 0x370   :  { %v1779_v11 = vpop.f32.mrf.mxu1 }
 0x371   :  { %v1952_v12 = vpop.f32.mrf.mxu0 }
 0x376   :  { %v1868_v50 = vpop.f32.mrf.mxu3 }
 0x377   :  { %v2041_v43 = vpop.f32.mrf.mxu2  ;;  %v1869_v41 = vadd.f32 %v1868_v50, %v1779_v11  ;;  %v1953_v50 = vadd.f32 %v1952_v12, %v1864_v44 }
 0x378   :  { %v1781_v5 = vpop.f32.mrf.mxu1 }
 0x379   :  { %v1954_v40 = vpop.f32.mrf.mxu0 }
 0x37a   :  { %v1955_v16 = vadd.f32 %v1954_v40, %v1866_v37 }
 0x37e   :  { %v1870_v1 = vpop.f32.mrf.mxu3 }
 0x37f   :  { %v2043_v23 = vpop.f32.mrf.mxu2  ;;  %v1871_v19 = vadd.f32 %v1870_v1, %v1781_v5  ;;  %v2039_v1 = vadd.f32 %v2038_v33, %v1950_v9 }
 0x380   :  { %v1784_v39 = vpop.f32.mrf.mxu1  ;;  %v2044_v11 = vadd.f32 %v2043_v23, %v1955_v16 }
 0x381   :  { %v1957_v58 = vpop.f32.mrf.mxu0 }
 0x382   :  { %v1958_v0 = vadd.f32 %v1957_v58, %v1869_v41  ;;  %v2042_v58 = vadd.f32 %v2041_v43, %v1953_v50 }
 0x384   :  { %v2071_v5 = vpack.c.bf16 %v2044_v11, %v2042_v58 }
 0x386   :  { %v1873_v35 = vpop.f32.mrf.mxu3 }
 0x387   :  { %v2046_v42 = vpop.f32.mrf.mxu2  ;;  %v1874_v30 = vadd.f32 %v1873_v35, %v1784_v39  ;;  %v5622_v39 = vld [vmem:[%s6069_s8] sm:$0x3f] }
 0x388   :  { %v1786_v53 = vpop.f32.mrf.mxu1  ;;  %v2047_v47 = vadd.f32 %v2046_v42, %v1958_v0  ;;  %v2255_v60 = vperm.slane %v5622_v39, 3  ;;  %v2273_v34 = vperm.slane %v5622_v39, 4 }
 0x389   :  { %v1959_v25 = vpop.f32.mrf.mxu0 }
 0x38a   :  { %v1960_v14 = vadd.f32 %v1959_v25, %v1871_v19  ;;  %v2070_v25 = vpack.c.bf16 %v2039_v1, %v2037_v2  ;;  %v4092_v2 = vld [vmem:[%s6066_s5 + $0x8] sm:$0xf0]  ;;  %v2237_v19 = vperm.slane %v5622_v39, 2 }
 0x38e   :  { %v1875_v3 = vpop.f32.mrf.mxu3 }
 0x38f   :  { %v2048_v13 = vpop.f32.mrf.mxu2  ;;  %v1876_v38 = vadd.f32 %v1875_v3, %v1786_v53  ;;  %v5629_v3 = vld [vmem:[%s6069_s8 + $0x8] sm:$0x3f] }
 0x390   :  { %v2049_v63 = vadd.f32 %v2048_v13, %v1960_v14  ;;  %v5617_v13 = vld [vmem:[%s6067_s6] sm:$0x7]  ;;  %v2211_v15 = vperm.slane %v5629_v3, 0  ;;  %v2220_v62 = vperm.slane %v5629_v3, 1  ;;  %v2238_v41 = vperm.slane %v5629_v3, 2  ;;  %s4251_s6 = smov 64  }
 0x391   :  { %v1962_v55 = vpop.f32.mrf.mxu0  ;;  %v2256_v14 = vperm.slane %v5629_v3, 3  ;;  %v2274_v7 = vperm.slane %v5629_v3, 4  ;;  %v2283_v50 = vperm.slane %v5629_v3, 5 }
 0x392   :  { %v1963_v52 = vadd.f32 %v1962_v55, %v1874_v30  ;;  %v2072_v28 = vpack.c.bf16 %v2049_v63, %v2047_v47  ;;  %v2123_v55 = vperm.slane %v5617_v13, 0 }
 0x397   :  { %v2051_v27 = vpop.f32.mrf.mxu2 }
 0x398   :  { %v2052_v46 = vadd.f32 %v2051_v27, %v1963_v52  ;;  %v2219_v27 = vperm.slane %v5622_v39, 1  ;;  %v2124_v52 = vperm.slane %v5617_v13, 1 }
 0x399   :  { %v1964_v24 = vpop.f32.mrf.mxu0 }
 0x39a   :  { %v1965_v22 = vadd.f32 %v1964_v24, %v1876_v38  ;;  %v5634_v24 = vld [vmem:[%s6069_s8 + $0x10] sm:$0x3f]  ;;  %v2210_v38 = vperm.slane %v5622_v39, 0  ;;  %s4252_s8 = smov 96  }
 0x39b   :  { %v2239_v63 = vperm.slane %v5634_v24, 2  ;;  %v2257_v47 = vperm.slane %v5634_v24, 3  ;;  %v2275_v1 = vperm.slane %v5634_v24, 4 }
 0x39f   :  { %v2053_v54 = vpop.f32.mrf.mxu2 }
 0x3a0   :  { %v2054_v32 = vadd.f32 %v2053_v54, %v1965_v22  ;;  %v2125_v22 = vperm.slane %v5617_v13, 2 }
 0x3a2   :  { %v2073_v29 = vpack.c.bf16 %v2054_v32, %v2052_v46  ;;  %v2212_v46 = vperm.slane %v5634_v24, 0  ;;  %v2221_v32 = vperm.slane %v5634_v24, 1 }
 0x3a4   :  { %2098 = vmatpush.bf16.msrb.mxu3 %v2073_v29 }
 0x3a8   :  { %2099 = vmatpush.bf16.msrb.mxu3 %v2072_v28  ;;  %v2282_v28 = vperm.slane %v5622_v39, 5 }
 0x3ac   :  { %2100 = vmatpush.bf16.msrb.mxu3 %v2071_v5  ;;  %v2284_v5 = vperm.slane %v5634_v24, 5 }
 0x3b0   :  { %2101 = vmatpush.bf16.msrb.mxu3 %v2070_v25 }
 0x3b4   :  { %2102 = vmatpush.bf16.msrb.mxu3 %v2069_v61  ;;  %v3771_v61 = vld [vmem:[%s6066_s5] sm:$0xf] }
 0x3b5   :  { %v3772_v36 = vor.u32 %v4092_v2, %v3771_v61 }
 0x3b8   :  { %2103 = vmatpush.bf16.msrb.mxu3 %v2068_v10  ;;  %v3779_v10 = vld [vmem:[%s6066_s5 + $0x8] sm:$0xf] }
 0x3b9   :  { %v3780_v45 = vor.u32 %v4093_v21, %v3779_v10 }
 0x3bb   :  { %2200 = vmatpush.bf16.msrb.mxu2 %v3780_v45 }
 0x3bc   :  { %2104 = vmatpush.bf16.msrb.mxu3 %v2067_v17  ;;  %v3783_v17 = vld [vmem:[%s6066_s5 + $0x18] sm:$0xf] }
 0x3bd   :  { %v3784_v31 = vor.u32 %v4095_v51, %v3783_v17 }
 0x3bf   :  { %2171 = vmatpush.bf16.msra.mxu1 %v3784_v31 }
 0x3c0   :  { %2105 = vmatpush.bf16.msrb.mxu3 %v2066_v49  ;;  %v3773_v49 = vld [vmem:[%s6066_s5 + $0xc] sm:$0xf0] }
 0x3c1   :  { %v3776_v57 = vor.u32 %v4091_v26, %v3773_v49 }
 0x3c3   :  { %2106 = vmatmul.bf16.vlgmr.msrb.gmra.mxu3 %v3768_v59  ;;  %2172 = vmatpush.bf16.msra.mxu1 %v3772_v36 }
 0x3c4   :  { %2185 = vmatpush.bf16.msra.mxu3 %v3788_v8 }
 0x3c8   :  { %2186 = vmatpush.bf16.msra.mxu3 %v3776_v57 }
 0x3ce   :  { %v2093_v33 = vpop.f32.mrf.mxu1 }
 0x3d6   :  { %v2095_v43 = vpop.f32.mrf.mxu1 }
 0x446   :  { %v2107_v12 = vpop.f32.mrf.mxu3 }
 0x447   :  { %v2108_v23 = vadd.f32 %v2107_v12, %v2093_v33 }
 0x44e   :  { %v2109_v40 = vpop.f32.mrf.mxu3 }
 0x44f   :  { %v2110_v42 = vadd.f32 %v2109_v40, %v2095_v43 }
 0x451   :  { %v2112_v35 = vpack.c.bf16 %v2110_v42, %v2108_v23 }
 0x453   :  { %3794 = vmatmul.msk.bf16.vlgmr.msra.gmra.mxu3 %vm2161_vm2, %v2112_v35  ;;  %3795 = vmatmul.msk.bf16.vlgmr.msrb.gmra.mxu2 %vm2161_vm2, %v2112_v35 }
 0x454   :  { %3793 = vmatmul.msk.bf16.vlgmr.msra.gmra.mxu1 %vm2161_vm2, %v2112_v35 }
 0x4d1   :  { %v2174_v53 = vpop.f32.mrf.mxu1 }
 0x4d2   :  { %v2175_v30 = vadd.f32 %v2174_v53, %v2123_v55 }
 0x4d4   :  { %v5642_v54 = vmul.f32 %v2219_v27, %v2175_v30  ;;  %v5650_v29 = vmul.f32 %v2210_v38, %v2175_v30  ;;  %v5652_v56 = vmul.f32 %v2237_v19, %v2175_v30  ;;  %v5664_v59 = vmul.f32 %v2255_v60, %v2175_v30 }
 0x4d6   :  { %v2188_v37 = vpop.f32.mrf.mxu3  ;;  %v2202_v0 = vpop.f32.mrf.mxu2  ;;  %v2300_v6 = vrot.slane %v5642_v54, 6  ;;  %v2246_v20 = vrot.slane %v5652_v56, 4 }
 0x4d7   :  { %v2189_v44 = vadd.f32 %v2188_v37, %v2124_v52  ;;  %v2203_v16 = vadd.f32 %v2202_v0, %v2125_v22 }
 0x4d8   :  { %v2306_v11 = vadd.f32 %v2300_v6, %v5650_v29 }
 0x4d9   :  { %v2223_v9 = vmul.f32 %v2220_v62, %v2189_v44  ;;  %v2241_v58 = vmul.f32 %v2238_v41, %v2189_v44  ;;  %v2224_v25 = vmul.f32 %v2221_v32, %v2203_v16  ;;  %v2242_v48 = vmul.f32 %v2239_v63, %v2203_v16  ;;  %v2176_v4 = vpop.f32.mrf.mxu1 }
 0x4da   :  { %v2214_v18 = vmul.f32 %v2211_v15, %v2189_v44  ;;  %v2259_v17 = vmul.f32 %v2256_v14, %v2189_v44  ;;  %v2215_v31 = vmul.f32 %v2212_v46, %v2203_v16  ;;  %v2260_v49 = vmul.f32 %v2257_v47, %v2203_v16 }
 0x4db   :  { %v2229_v8 = vrot.slane %v2223_v9, 2  ;;  %v2301_v51 = vrot.slane %v2223_v9, 6  ;;  %v2230_v26 = vrot.slane %v2224_v25, 2  ;;  %v2302_v10 = vrot.slane %v2224_v25, 6 }
 0x4dc   :  { %v2247_v21 = vrot.slane %v2241_v58, 4  ;;  %v2177_v2 = vadd.f32 %v2176_v4, %v2123_v55  ;;  %v2248_v33 = vrot.slane %v2242_v48, 4  ;;  %v2309_v40 = vadd.f32 %v2306_v11, %v2246_v20 }
 0x4dd   :  { %v2235_v57 = vadd.f32 %v2229_v8, %v2214_v18  ;;  %v2307_v61 = vadd.f32 %v2301_v51, %v2214_v18  ;;  %v2236_v36 = vadd.f32 %v2230_v26, %v2215_v31  ;;  %v2308_v12 = vadd.f32 %v2302_v10, %v2215_v31 }
 0x4de   :  { %v2190_v45 = vpop.f32.mrf.mxu3  ;;  %v2204_v43 = vpop.f32.mrf.mxu2  ;;  %v2265_v42 = vrot.slane %v2259_v17, 6  ;;  %v2266_v27 = vrot.slane %v2260_v49, 6  ;;  %v2285_v3 = vmul.f32 %v2282_v28, %v2177_v2  ;;  %v2312_v55 = vrot.slane %v5664_v59, 2 }
 0x4df   :  { %v2253_v23 = vadd.f32 %v2247_v21, %v2235_v57  ;;  %v2191_v35 = vadd.f32 %v2190_v45, %v2124_v52  ;;  %v2205_v13 = vadd.f32 %v2204_v43, %v2125_v22  ;;  %v2254_v39 = vadd.f32 %v2248_v33, %v2236_v36 }
 0x4e0   :  { %v2310_v53 = vadd.f32 %v2307_v61, %v2247_v21  ;;  %v2291_v60 = vrot.slane %v2285_v3, 6  ;;  %v2276_v46 = vmul.f32 %v2273_v34, %v2177_v2  ;;  %v2313_v32 = vrot.slane %v2259_v17, 2 }
 0x4e1   :  { %v2271_v24 = vadd.f32 %v2265_v42, %v2253_v23  ;;  %v2277_v30 = vmul.f32 %v2274_v7, %v2191_v35  ;;  %v2286_v38 = vmul.f32 %v2283_v50, %v2191_v35  ;;  %v2272_v19 = vadd.f32 %v2266_v27, %v2254_v39 }
 0x4e2   :  { %v2278_v15 = vmul.f32 %v2275_v1, %v2205_v13  ;;  %v2287_v62 = vmul.f32 %v2284_v5, %v2205_v13  ;;  %v2324_v22 = vrot.slane %v2285_v3, 2  ;;  %v2319_v63 = vadd.f32 %v2313_v32, %v2310_v53 }
 0x4e3   :  { %v2280_v41 = vadd.f32 %v2277_v30, %v2271_v24  ;;  %v2292_v14 = vrot.slane %v2286_v38, 6  ;;  %v2325_v37 = vrot.slane %v2286_v38, 2  ;;  %v2318_v6 = vadd.f32 %v2312_v55, %v2309_v40 }
 0x4e4   :  { %v2293_v52 = vrot.slane %v2287_v62, 6  ;;  %v2311_v44 = vadd.f32 %v2308_v12, %v2248_v33  ;;  %v2281_v16 = vadd.f32 %v2278_v15, %v2272_v19  ;;  %v2314_v47 = vrot.slane %v2260_v49, 2 }
 0x4e5   :  { %v2298_v0 = vadd.f32 %v2292_v14, %v2280_v41  ;;  %v5669_v7 = vadd.f32 %v2291_v60, %v2276_v46  ;;  %v2326_v50 = vrot.slane %v2287_v62, 2  ;;  %v2322_v11 = vadd.f32 %v2319_v63, %v2277_v30 }
 0x4e6   :  { %v2321_v28 = vadd.f32 %v2318_v6, %v2276_v46  ;;  %v2320_v9 = vadd.f32 %v2314_v47, %v2311_v44  ;;  %v5671_v58 = vadd.f32 %v2293_v52, %v2278_v15  ;;  %v5677_v5 = vadd.f32 %v2292_v14, %v2277_v30 }
 0x4e7   :  { %4144 = vtanh.f32 %v2298_v0  ;;  %v5673_v34 = vadd.f32 %v2325_v37, %v2322_v11  ;;  %v5679_v48 = vadd.f32 %v2325_v37, %v2277_v30  ;;  %v5681_v4 = vadd.f32 %v2324_v22, %v2276_v46  ;;  %v4113_v11 = vld [vmem:[%s6068_s7 + $0x80] sm:$0xf0] }
 0x4e8   :  { %v5675_v1 = vadd.f32 %v2324_v22, %v2321_v28  ;;  %v2323_v25 = vadd.f32 %v2320_v9, %v2278_v15  ;;  %v5683_v18 = vadd.f32 %v2293_v52, %v2281_v16  ;;  %v5685_v8 = vadd.f32 %v2326_v50, %v2278_v15  ;;  %v4112_v28 = vld [vmem:[%s6068_s7 + $0x7c] sm:$0xf] }
 0x4e9   :  { %v2228_v26 = vrot.slane %v5642_v54, 2  ;;  %v2264_v57 = vrot.slane %v5664_v59, 6  ;;  %v3797_v3 = vmul.f32 -1.442695, %v2298_v0 }
 0x4ea   :  { %v5687_v17 = vadd.f32 %v2326_v50, %v2323_v25  ;;  %4146 = vtanh.f32 %v5683_v18  ;;  %v3798_v44 = vmul.f32 -1.442695, %v5683_v18  ;;  %v3861_v50 = vld [vmem:[%s6068_s7 + $0x78] sm:$0xf]  ;;  %v3863_v25 = vld [vmem:[%s6068_s7 + $0x84] sm:$0xf0] }
 0x4eb   :  { %v2234_v49 = vadd.f32 %v2228_v26, %v5650_v29  ;;  %v5720_v9 = vor.u32 %v4113_v11, %v3861_v50  ;;  %v3869_v18 = vld [vmem:[%s6068_s7 + $0x80] sm:$0xf]  ;;  %v3803_v50 = vld [vmem:[%s6068_s7 + $0xc] sm:$0xf0]  ;;  %v3809_v11 = vld [vmem:[%s6068_s7 + $0x8] sm:$0xf] }
 0x4ed   :  { %v4145_v51 = vpop.eup %4144  ;;  %v2252_v10 = vadd.f32 %v2246_v20, %v2234_v49  ;;  %v3849_v49 = vld [vmem:[%s6068_s7 + $0x60] sm:$0xf]  ;;  %2560 = vmatpush.bf16.msra.mxu2 %v5720_v9  ;;  %2712 = vmatpush.bf16.msrb.mxu0 %v5720_v9 }
 0x4ee   :  { %2405 = vrot.lane.b32.xlu0 %v4145_v51, %s4251_s6  ;;  %v4114_v51 = vld [vmem:[%s6068_s7 + $0x88] sm:$0xf0] }
 0x4ef   :  { %v2270_v21 = vadd.f32 %v2264_v57, %v2252_v10  ;;  %v5733_v26 = vor.u32 %v4114_v51, %v3869_v18  ;;  %v4110_v10 = vld [vmem:[%s6068_s7 + $0x68] sm:$0xf0]  ;;  %v4109_v57 = vld [vmem:[%s6068_s7 + $0x64] sm:$0xf] }
 0x4f0   :  { %v4147_v31 = vpop.eup %4146 }
 0x4f1   :  { %v2279_v61 = vadd.f32 %v2276_v46, %v2270_v21  ;;  %v5745_v21 = vor.u32 %v4110_v10, %v3849_v49  ;;  %2586 = vmatpush.bf16.msrb.mxu3 %v5733_v26 }
 0x4f3   :  { %v2297_v2 = vadd.f32 %v2291_v60, %v2279_v61  ;;  %v3851_v61 = vld [vmem:[%s6068_s7 + $0x6c] sm:$0xf0]  ;;  %2561 = vmatpush.bf16.msra.mxu2 %v5745_v21  ;;  %2713 = vmatpush.bf16.msrb.mxu0 %v5745_v21 }
 0x4f5   :  { %v3796_v45 = vmul.f32 -1.442695, %v2297_v2  ;;  %v3857_v2 = vld [vmem:[%s6068_s7 + $0x68] sm:$0xf] }
 0x4f6   :  { %2407 = vrot.lane.b32.xlu0 %v4147_v31, %s4251_s6  ;;  %v5731_v31 = vor.u32 %v4112_v28, %v3863_v25  ;;  %v4099_v28 = vld [vmem:[%s6068_s7 + $0x10] sm:$0xf0] }
 0x4f7   :  { %4148 = vpow2.f32 %v3796_v45  ;;  %v4111_v45 = vld [vmem:[%s6068_s7 + $0x70] sm:$0xf0]  ;;  %v3810_v49 = vor.u32 %v4099_v28, %v3809_v11 }
 0x4f8   :  { %2573 = vmatpush.bf16.msrb.mxu1 %v5731_v31 }
 0x4fd   :  { %v4149_v36 = vpop.eup %4148 }
 0x4fe   :  { %v2345_v33 = vadd.f32 1.0, %v4149_v36 }
 0x500   :  { %4150 = vrcp.f32 %v2345_v33  ;;  %v2357_v29 = vand.u32 2147483648, %v2345_v33  ;;  %vm2351_vm4 = vweird.f32 %v2345_v33  ;;  %v2355_v56 = vand.u32 2147483647, %v2345_v33 }
 0x501   :  { %4152 = vpow2.f32 %v3797_v3  ;;  %v3827_v3 = vld [vmem:[%s6068_s7 + $0x3c] sm:$0xf0] }
 0x502   :  { %v2358_v59 = vor.u32 1.1754944e-38, %v2357_v29  ;;  %vm2356_vm7 = vcmp.eq.f32.partialorder %v2355_v56, 8.507059e+37  ;;  %v4108_v29 = vld [vmem:[%s6068_s7 + $0x58] sm:$0xf0] }
 0x506   :  { %v4151_v12 = vpop.eup %4150 }
 0x507   :  { %v2347_v43 = vmul.f32 %v4151_v12, %v2345_v33  ;;  %vm2352_vm3 = vweird.f32 %v4151_v12  ;;  %v4153_v53 = vpop.eup %4152  ;;  %v5761_v33 = vor.u32 %v4109_v57, %v3851_v61 }
 0x508   :  { %vm2353_vm5 = vmor %vm2351_vm4, %vm2352_vm3  ;;  %v2364_v24 = vadd.f32 1.0, %v4153_v53  ;;  %v3833_v53 = vld [vmem:[%s6068_s7 + $0x38] sm:$0xf] }
 0x509   :  { %v2348_v40 = vsub.f32 1.0, %v2347_v43  ;;  %v3837_v43 = vld [vmem:[%s6068_s7 + $0x48] sm:$0xf]  ;;  %2574 = vmatpush.bf16.msrb.mxu1 %v5761_v33 }
 0x50a   :  { %4154 = vrcp.f32 %v2364_v24  ;;  %v2376_v62 = vand.u32 2147483648, %v2364_v24  ;;  %vm2370_vm9 = vweird.f32 %v2364_v24  ;;  %v2374_v60 = vand.u32 2147483647, %v2364_v24 }
 0x50b   :  { %v2349_v23 = vmul.f32 %v4151_v12, %v2348_v40  ;;  %v4107_v40 = vld [vmem:[%s6068_s7 + $0x50] sm:$0xf0] }
 0x50c   :  { %v2377_v14 = vor.u32 1.1754944e-38, %v2376_v62  ;;  %vm2375_vm11 = vcmp.eq.f32.partialorder %v2374_v60, 8.507059e+37  ;;  %v4101_v62 = vld [vmem:[%s6068_s7 + $0x20] sm:$0xf0]  ;;  %v4100_v60 = vld [vmem:[%s6068_s7 + $0x1c] sm:$0xf] }
 0x50d   :  { %v2350_v42 = vadd.f32 %v4151_v12, %v2349_v23  ;;  %v4106_v23 = vld [vmem:[%s6068_s7 + $0x4c] sm:$0xf] }
 0x50f   :  { %v2354_v20 = vsel %vm2353_vm5, %v4151_v12, %v2350_v42  ;;  %v5763_v12 = vor.u32 %v4111_v45, %v3857_v2  ;;  %v3845_v42 = vld [vmem:[%s6068_s7 + $0x50] sm:$0xf] }
 0x510   :  { %v2359_v39 = vsel %vm2356_vm7, %v2358_v59, %v2354_v20  ;;  %v4155_v30 = vpop.eup %4154  ;;  %v5786_v20 = vor.u32 %v4107_v40, %v3837_v43 }
 0x511   :  { %v2366_v38 = vmul.f32 %v4155_v30, %v2364_v24  ;;  %vm2371_vm8 = vweird.f32 %v4155_v30  ;;  %v2401_v32 = vmul.f32 0.0, %v2359_v39  ;;  %2587 = vmatpush.bf16.msrb.mxu3 %v5763_v12  ;;  %v4105_v24 = vld [vmem:[%s6068_s7 + $0x40] sm:$0xf0] }
 0x512   :  { %vm2372_vm10 = vmor %vm2370_vm9, %vm2371_vm8  ;;  %2562 = vmatpush.bf16.msra.mxu2 %v5786_v20  ;;  %2714 = vmatpush.bf16.msrb.mxu0 %v5786_v20 }
 0x513   :  { %v2367_v55 = vsub.f32 1.0, %v2366_v38 }
 0x515   :  { %v2368_v19 = vmul.f32 %v4155_v30, %v2367_v55 }
 0x517   :  { %v2369_v15 = vadd.f32 %v4155_v30, %v2368_v19  ;;  %v5821_v19 = vor.u32 %v4105_v24, %v3833_v53 }
 0x519   :  { %v2373_v41 = vsel %vm2372_vm10, %v4155_v30, %v2369_v15  ;;  %v3813_v15 = vld [vmem:[%s6068_s7 + $0x18] sm:$0xf] }
 0x51a   :  { %v2378_v46 = vsel %vm2375_vm11, %v2377_v14, %v2373_v41  ;;  %v3815_v41 = vld [vmem:[%s6068_s7 + $0x24] sm:$0xf0]  ;;  %v3821_v14 = vld [vmem:[%s6068_s7 + $0x20] sm:$0xf] }
 0x51b   :  { %v2402_v37 = vmul.f32 0.0, %v2378_v46  ;;  %v4102_v46 = vld [vmem:[%s6068_s7 + $0x28] sm:$0xf0] }
 0x560   :  { %v2406_v54 = vpop.permute.xlu0 %2405 }
 0x568   :  { %v2408_v35 = vpop.permute.xlu0 %2407 }
 0x569   :  { %v2410_v13 = vsel %vm2409_vm6, %v2406_v54, %v2408_v35  ;;  %v3839_v54 = vld [vmem:[%s6068_s7 + $0x54] sm:$0xf0]  ;;  %v5793_v35 = vor.u32 %v4108_v29, %v3845_v42 }
 0x56a   :  { %v2412_v27 = vmul.f32 %v2410_v13, %v2359_v39  ;;  %v5791_v59 = vor.u32 %v4106_v23, %v3839_v54  ;;  %v3825_v13 = vld [vmem:[%s6068_s7 + $0x30] sm:$0xf]  ;;  %v4104_v39 = vld [vmem:[%s6068_s7 + $0x38] sm:$0xf0] }
 0x56b   :  { %v5814_v38 = vor.u32 %v4104_v39, %v3825_v13  ;;  %2588 = vmatpush.bf16.msrb.mxu3 %v5793_v35 }
 0x56c   :  { %2414 = vrot.lane.b32.xlu1 %v2412_v27, %s4252_s8  ;;  %v4103_v27 = vld [vmem:[%s6068_s7 + $0x34] sm:$0xf]  ;;  %2575 = vmatpush.bf16.msrb.mxu1 %v5791_v59 }
 0x56d   :  { %v5819_v55 = vor.u32 %v4103_v27, %v3827_v3  ;;  %2563 = vmatpush.bf16.msra.mxu2 %v5814_v38  ;;  %2715 = vmatpush.bf16.msrb.mxu0 %v5814_v38 }
 0x56f   :  { %2589 = vmatpush.bf16.msrb.mxu3 %v5821_v19 }
 0x570   :  { %2576 = vmatpush.bf16.msrb.mxu1 %v5819_v55 }
 0x5de   :  { %v2415_v52 = vpop.permute.xlu1 %2414 }
 0x5df   :  { %v5699_v22 = vadd.f32 %v2415_v52, %v2401_v32  ;;  %v5701_v0 = vadd.f32 %v2415_v52, %v2402_v37  ;;  %v3814_v32 = vor.u32 %v4101_v62, %v3813_v15  ;;  %v3818_v52 = vor.u32 %v4100_v60, %v3815_v41 }
 0x5e1   :  { %4156 = vtanh.f32 %v5699_v22  ;;  %2564 = vmatpush.bf16.msra.mxu2 %v3814_v32  ;;  %2716 = vmatpush.bf16.msrb.mxu0 %v3814_v32  ;;  %v2671_v15 = vrot.slane %v5701_v0, 6 }
 0x5e2   :  { %4158 = vtanh.f32 %v5701_v0  ;;  %2577 = vmatpush.bf16.msrb.mxu1 %v3818_v52 }
 0x5e3   :  { %4160 = vpow2.f32 %v3798_v44  ;;  %v4098_v44 = vld [vmem:[%s6068_s7 + $0x8] sm:$0xf0] }
 0x5e7   :  { %v4157_v63 = vpop.eup %4156 }
 0x5e8   :  { %v4159_v6 = vpop.eup %4158  ;;  %2423 = vrot.lane.b32.xlu1 %v4157_v63, %s4251_s6  ;;  %v5846_v63 = vor.u32 %v4102_v46, %v3821_v14 }
 0x5e9   :  { %2425 = vrot.lane.b32.xlu2 %v4159_v6, %s4251_s6  ;;  %v4161_v16 = vpop.eup %4160  ;;  %v3801_v6 = vld [vmem:[%s6068_s7] sm:$0xf] }
 0x5ea   :  { %v5708_v47 = vadd.f32 1.0, %v4161_v16  ;;  %v4097_v16 = vld [vmem:[%s6068_s7 + $0x4] sm:$0xf]  ;;  %v3802_v25 = vor.u32 %v4098_v44, %v3801_v6  ;;  %2590 = vmatpush.bf16.msrb.mxu3 %v5846_v63 }
 0x5eb   :  { %v3806_v51 = vor.u32 %v4097_v16, %v3803_v50 }
 0x5ec   :  { %4162 = vrcp.f32 %v5708_v47  ;;  %v2397_v10 = vand.u32 2147483648, %v5708_v47  ;;  %vm2391_vm13 = vweird.f32 %v5708_v47  ;;  %v2395_v57 = vand.u32 2147483647, %v5708_v47  ;;  %2565 = vmatpush.bf16.msra.mxu2 %v3802_v25  ;;  %2717 = vmatpush.bf16.msrb.mxu0 %v3802_v25 }
 0x5ed   :  { %2578 = vmatpush.bf16.msrb.mxu1 %v3806_v51 }
 0x5ee   :  { %2591 = vmatpush.bf16.msrb.mxu3 %v3810_v49  ;;  %v2398_v2 = vor.u32 1.1754944e-38, %v2397_v10  ;;  %vm2396_vm15 = vcmp.eq.f32.partialorder %v2395_v57, 8.507059e+37  ;;  %v2670_v10 = vrot.slane %v5699_v22, 6 }
 0x5f0   :  { %2725 = vmatpush.bf16.msrb.mxu2 %v5731_v31  ;;  %2877 = vmatpush.bf16.msra.mxu0 %v5731_v31 }
 0x5f1   :  { %2738 = vmatpush.bf16.msra.mxu1 %v5733_v26 }
 0x5f2   :  { %v5757_v36 = vpop.eup %4162  ;;  %2864 = vmatpush.bf16.msra.mxu3 %v5720_v9 }
 0x5f3   :  { %v2387_v56 = vmul.f32 %v5757_v36, %v5708_v47  ;;  %vm2392_vm12 = vweird.f32 %v5757_v36 }
 0x5f4   :  { %vm2393_vm14 = vmor %vm2391_vm13, %vm2392_vm12  ;;  %2726 = vmatpush.bf16.msrb.mxu2 %v5761_v33  ;;  %2878 = vmatpush.bf16.msra.mxu0 %v5761_v33 }
 0x5f5   :  { %v2388_v30 = vsub.f32 1.0, %v2387_v56  ;;  %2739 = vmatpush.bf16.msra.mxu1 %v5763_v12 }
 0x5f6   :  { %2865 = vmatpush.bf16.msra.mxu3 %v5745_v21 }
 0x5f7   :  { %v2389_v37 = vmul.f32 %v5757_v36, %v2388_v30 }
 0x5f8   :  { %2727 = vmatpush.bf16.msrb.mxu2 %v5791_v59  ;;  %2879 = vmatpush.bf16.msra.mxu0 %v5791_v59 }
 0x5f9   :  { %v2390_v18 = vadd.f32 %v5757_v36, %v2389_v37  ;;  %2740 = vmatpush.bf16.msra.mxu1 %v5793_v35 }
 0x5fa   :  { %2866 = vmatpush.bf16.msra.mxu3 %v5786_v20 }
 0x5fb   :  { %v2394_v61 = vsel %vm2393_vm14, %v5757_v36, %v2390_v18 }
 0x5fc   :  { %v2399_v47 = vsel %vm2396_vm15, %v2398_v2, %v2394_v61  ;;  %2728 = vmatpush.bf16.msrb.mxu2 %v5819_v55  ;;  %2880 = vmatpush.bf16.msra.mxu0 %v5819_v55 }
 0x5fd   :  { %2741 = vmatpush.bf16.msra.mxu1 %v5821_v19 }
 0x5fe   :  { %2867 = vmatpush.bf16.msra.mxu3 %v5814_v38 }
 0x600   :  { %2729 = vmatpush.bf16.msrb.mxu2 %v3818_v52  ;;  %2881 = vmatpush.bf16.msra.mxu0 %v3818_v52 }
 0x601   :  { %2742 = vmatpush.bf16.msra.mxu1 %v5846_v63 }
 0x602   :  { %2868 = vmatpush.bf16.msra.mxu3 %v3814_v32 }
 0x604   :  { %2730 = vmatpush.bf16.msrb.mxu2 %v3806_v51  ;;  %2882 = vmatpush.bf16.msra.mxu0 %v3806_v51 }
 0x605   :  { %2743 = vmatpush.bf16.msra.mxu1 %v3810_v49 }
 0x606   :  { %2869 = vmatpush.bf16.msra.mxu3 %v3802_v25 }
 0x643   :  { %v2426_v45 = vpop.permute.xlu2 %2425 }
 0x65a   :  { %v2424_v43 = vpop.permute.xlu1 %2423 }
 0x65b   :  { %v2427_v40 = vsel %vm2409_vm6, %v2424_v43, %v2426_v45 }
 0x65c   :  { %v5878_v23 = vmul.f32 %v2427_v40, %v2399_v47 }
 0x65e   :  { %v2430_v36 = vpack.c.bf16 %v5878_v23, %v5878_v23 }
 0x660   :  { %2456 = vrot.lane.b32.xlu2 %v2430_v36, %s4252_s8 }
 0x6ba   :  { %v2457_v9 = vpop.permute.xlu2 %2456 }
 0x6bb   :  { %3871 = vmatmul.msk.bf16.vlgmr.msra.gmra.mxu2 %vm2554_vm0, %v2457_v9  ;;  %3872 = vmatmul.msk.bf16.vlgmr.msrb.gmra.mxu1 %vm2554_vm0, %v2457_v9 }
 0x6bc   :  { %3873 = vmatmul.msk.bf16.vlgmr.msrb.gmra.mxu3 %vm2554_vm0, %v2457_v9  ;;  %2890 = vmatpush.bf16.msra.mxu2 %v5733_v26 }
 0x6c0   :  { %2891 = vmatpush.bf16.msra.mxu2 %v5763_v12 }
 0x6c4   :  { %2892 = vmatpush.bf16.msra.mxu2 %v5793_v35 }
 0x6c8   :  { %2893 = vmatpush.bf16.msra.mxu2 %v5821_v19 }
 0x6cc   :  { %2894 = vmatpush.bf16.msra.mxu2 %v5846_v63 }
 0x6d0   :  { %2895 = vmatpush.bf16.msra.mxu2 %v3810_v49 }
 0x738   :  { %v2580_v31 = vpop.f32.mrf.mxu1 }
 0x739   :  { %v2601_v21 = vrot.slane %v2580_v31, 6 }
 0x73b   :  { %v2607_v33 = vadd.f32 %v2601_v21, %v5673_v34 }
 0x73d   :  { %v3875_v54 = vmul.f32 -1.442695, %v2607_v33  ;;  %4164 = vtanh.f32 %v2607_v33 }
 0x73e   :  { %v2567_v42 = vpop.f32.mrf.mxu2 }
 0x73f   :  { %4166 = vpow2.f32 %v3875_v54  ;;  %v2600_v29 = vrot.slane %v2567_v42, 6  ;;  %v2593_v56 = vpop.f32.mrf.mxu3 }
 0x740   :  { %v2602_v26 = vrot.slane %v2593_v56, 6  ;;  %v2582_v20 = vpop.f32.mrf.mxu1 }
 0x741   :  { %v2606_v12 = vadd.f32 %v2600_v29, %v5675_v1 }
 0x742   :  { %v2608_v59 = vadd.f32 %v2602_v26, %v5687_v17 }
 0x743   :  { %v4165_v35 = vpop.eup %4164  ;;  %v3874_v14 = vmul.f32 -1.442695, %v2606_v12 }
 0x744   :  { %4168 = vtanh.f32 %v2608_v59  ;;  %2678 = vrot.lane.b32.xlu0 %v4165_v35, %s4251_s6  ;;  %v3876_v40 = vmul.f32 -1.442695, %v2608_v59 }
 0x745   :  { %v4167_v13 = vpop.eup %4166 }
 0x746   :  { %v2631_v39 = vadd.f32 1.0, %v4167_v13  ;;  %v2569_v27 = vpop.f32.mrf.mxu2 }
 0x747   :  { %v2595_v34 = vpop.f32.mrf.mxu3 }
 0x748   :  { %4170 = vrcp.f32 %v2631_v39  ;;  %v2643_v38 = vand.u32 2147483648, %v2631_v39  ;;  %v2641_v1 = vand.u32 2147483647, %v2631_v39  ;;  %vm2637_vm3 = vweird.f32 %v2631_v39 }
 0x749   :  { %4172 = vpow2.f32 %v3874_v14 }
 0x74a   :  { %v4169_v3 = vpop.eup %4168  ;;  %v2644_v19 = vor.u32 1.1754944e-38, %v2643_v38  ;;  %vm2642_vm5 = vcmp.eq.f32.partialorder %v2641_v1, 8.507059e+37 }
 0x74b   :  { %2680 = vrot.lane.b32.xlu1 %v4169_v3, %s4251_s6 }
 0x74e   :  { %v4171_v53 = vpop.eup %4170 }
 0x74f   :  { %v2633_v24 = vmul.f32 %v4171_v53, %v2631_v39  ;;  %vm2638_vm1 = vweird.f32 %v4171_v53  ;;  %v4173_v46 = vpop.eup %4172 }
 0x750   :  { %vm2639_vm4 = vmor %vm2637_vm3, %vm2638_vm1  ;;  %v2612_v32 = vadd.f32 1.0, %v4173_v46 }
 0x751   :  { %v2634_v30 = vsub.f32 1.0, %v2633_v24 }
 0x752   :  { %4174 = vrcp.f32 %v2612_v32  ;;  %v2624_v16 = vand.u32 2147483648, %v2612_v32  ;;  %vm2618_vm8 = vweird.f32 %v2612_v32  ;;  %v2622_v50 = vand.u32 2147483647, %v2612_v32 }
 0x753   :  { %v2635_v55 = vmul.f32 %v4171_v53, %v2634_v30 }
 0x754   :  { %v2625_v11 = vor.u32 1.1754944e-38, %v2624_v16  ;;  %vm2623_vm10 = vcmp.eq.f32.partialorder %v2622_v50, 8.507059e+37 }
 0x755   :  { %v2636_v17 = vadd.f32 %v4171_v53, %v2635_v55 }
 0x757   :  { %v2640_v62 = vsel %vm2639_vm4, %v4171_v53, %v2636_v17 }
 0x758   :  { %v2645_v60 = vsel %vm2642_vm5, %v2644_v19, %v2640_v62  ;;  %v4175_v37 = vpop.eup %4174 }
 0x759   :  { %v2675_v41 = vmul.f32 %v2671_v15, %v2645_v60  ;;  %v2614_v52 = vmul.f32 %v4175_v37, %v2612_v32  ;;  %vm2619_vm7 = vweird.f32 %v4175_v37 }
 0x75a   :  { %vm2620_vm9 = vmor %vm2618_vm8, %vm2619_vm7 }
 0x75b   :  { %v2615_v63 = vsub.f32 1.0, %v2614_v52 }
 0x75d   :  { %v2616_v6 = vmul.f32 %v4175_v37, %v2615_v63 }
 0x75f   :  { %v2617_v44 = vadd.f32 %v4175_v37, %v2616_v6 }
 0x761   :  { %v2621_v0 = vsel %vm2620_vm9, %v4175_v37, %v2617_v44 }
 0x762   :  { %v2626_v18 = vsel %vm2623_vm10, %v2625_v11, %v2621_v0 }
 0x763   :  { %v2674_v57 = vmul.f32 %v2670_v10, %v2626_v18 }
 0x7b6   :  { %v2679_v28 = vpop.permute.xlu0 %2678 }
 0x7bd   :  { %v2681_v25 = vpop.permute.xlu1 %2680 }
 0x7be   :  { %v2682_v51 = vsel %vm2409_vm6, %v2679_v28, %v2681_v25 }
 0x7bf   :  { %v2684_v49 = vmul.f32 %v2682_v51, %v2626_v18 }
 0x7c1   :  { %2686 = vrot.lane.b32.xlu2 %v2684_v49, %s4252_s8 }
 0x81b   :  { %v2687_v61 = vpop.permute.xlu2 %2686 }
 0x81c   :  { %v5913_v2 = vadd.f32 %v2687_v61, %v2674_v57  ;;  %v5915_v45 = vadd.f32 %v2687_v61, %v2675_v41 }
 0x81e   :  { %4176 = vtanh.f32 %v5913_v2  ;;  %v2823_v50 = vrot.slane %v5915_v45, 6 }
 0x81f   :  { %4178 = vtanh.f32 %v5915_v45 }
 0x820   :  { %4180 = vpow2.f32 %v3876_v40 }
 0x824   :  { %v4177_v43 = vpop.eup %4176 }
 0x825   :  { %v4179_v47 = vpop.eup %4178  ;;  %2695 = vrot.lane.b32.xlu0 %v4177_v43, %s4251_s6 }
 0x826   :  { %2697 = vrot.lane.b32.xlu1 %v4179_v47, %s4251_s6  ;;  %v4181_v36 = vpop.eup %4180 }
 0x827   :  { %v2652_v22 = vadd.f32 1.0, %v4181_v36 }
 0x829   :  { %4182 = vrcp.f32 %v2652_v22  ;;  %v2664_v42 = vand.u32 2147483648, %v2652_v22  ;;  %vm2658_vm12 = vweird.f32 %v2652_v22  ;;  %v2662_v29 = vand.u32 2147483647, %v2652_v22 }
 0x82b   :  { %v2665_v26 = vor.u32 1.1754944e-38, %v2664_v42  ;;  %vm2663_vm14 = vcmp.eq.f32.partialorder %v2662_v29, 8.507059e+37 }
 0x82f   :  { %v4183_v9 = vpop.eup %4182 }
 0x830   :  { %v2654_v31 = vmul.f32 %v4183_v9, %v2652_v22  ;;  %vm2659_vm11 = vweird.f32 %v4183_v9 }
 0x831   :  { %vm2660_vm13 = vmor %vm2658_vm12, %vm2659_vm11 }
 0x832   :  { %v2655_v21 = vsub.f32 1.0, %v2654_v31 }
 0x834   :  { %v2656_v33 = vmul.f32 %v4183_v9, %v2655_v21 }
 0x836   :  { %v2657_v54 = vadd.f32 %v4183_v9, %v2656_v33 }
 0x838   :  { %v2661_v56 = vsel %vm2660_vm13, %v4183_v9, %v2657_v54  ;;  %v2822_v54 = vrot.slane %v5913_v2, 6 }
 0x839   :  { %v2666_v59 = vsel %vm2663_vm14, %v2665_v26, %v2661_v56 }
 0x897   :  { %v2696_v20 = vpop.permute.xlu0 %2695 }
 0x898   :  { %v2698_v12 = vpop.permute.xlu1 %2697 }
 0x899   :  { %v2699_v35 = vsel %vm2409_vm6, %v2696_v20, %v2698_v12 }
 0x89a   :  { %v5922_v13 = vmul.f32 %v2699_v35, %v2666_v59 }
 0x89c   :  { %v2702_v39 = vpack.c.bf16 %v5922_v13, %v5922_v13 }
 0x89e   :  { %v2704_v27 = vrot.slane %v2702_v39, 1 }
 0x8a0   :  { %2705 = vrot.lane.b32.xlu2 %v2704_v27, %s4252_s8 }
 0x8fa   :  { %v2706_v34 = vpop.permute.xlu2 %2705 }
 0x8fb   :  { %3877 = vmatmul.msk.bf16.vlgmr.msrb.gmra.mxu0 %vm2554_vm0, %v2706_v34  ;;  %3878 = vmatmul.msk.bf16.vlgmr.msrb.gmra.mxu2 %vm2554_vm0, %v2706_v34 }
 0x8fc   :  { %3879 = vmatmul.msk.bf16.vlgmr.msra.gmra.mxu1 %vm2554_vm0, %v2706_v34 }
 0x978   :  { %v2719_v3 = vpop.f32.mrf.mxu0 }
 0x979   :  { %v2752_v53 = vrot.slane %v2719_v3, 4  ;;  %v2745_v24 = vpop.f32.mrf.mxu1 }
 0x97a   :  { %v2754_v30 = vrot.slane %v2745_v24, 4 }
 0x97b   :  { %v2758_v38 = vadd.f32 %v2752_v53, %v5669_v7 }
 0x97c   :  { %v5932_v55 = vadd.f32 %v2754_v30, %v5671_v58 }
 0x97d   :  { %v3880_v25 = vmul.f32 -1.442695, %v2758_v38 }
 0x97e   :  { %4184 = vtanh.f32 %v5932_v55  ;;  %v2732_v1 = vpop.f32.mrf.mxu2  ;;  %v3882_v59 = vmul.f32 -1.442695, %v5932_v55 }
 0x97f   :  { %v2753_v17 = vrot.slane %v2732_v1, 4 }
 0x980   :  { %v2721_v19 = vpop.f32.mrf.mxu0 }
 0x981   :  { %v2759_v15 = vadd.f32 %v2753_v17, %v5677_v5  ;;  %v2747_v62 = vpop.f32.mrf.mxu1 }
 0x983   :  { %v3881_v60 = vmul.f32 -1.442695, %v2759_v15  ;;  %4186 = vtanh.f32 %v2759_v15 }
 0x984   :  { %v4185_v41 = vpop.eup %4184 }
 0x985   :  { %4188 = vpow2.f32 %v3881_v60  ;;  %2832 = vrot.lane.b32.xlu1 %v4185_v41, %s4251_s6 }
 0x986   :  { %v2734_v14 = vpop.f32.mrf.mxu2 }
 0x989   :  { %v4187_v46 = vpop.eup %4186 }
 0x98a   :  { %2830 = vrot.lane.b32.xlu0 %v4187_v46, %s4251_s6 }
 0x98b   :  { %v4189_v7 = vpop.eup %4188 }
 0x98c   :  { %v2783_v58 = vadd.f32 1.0, %v4189_v7 }
 0x98e   :  { %4190 = vrcp.f32 %v2783_v58  ;;  %v2795_v63 = vand.u32 2147483648, %v2783_v58  ;;  %v2793_v5 = vand.u32 2147483647, %v2783_v58  ;;  %vm2789_vm1 = vweird.f32 %v2783_v58 }
 0x98f   :  { %4192 = vpow2.f32 %v3880_v25 }
 0x990   :  { %v2796_v16 = vor.u32 1.1754944e-38, %v2795_v63  ;;  %vm2794_vm4 = vcmp.eq.f32.partialorder %v2793_v5, 8.507059e+37  ;;  %v4129_v63 = vld [vmem:[%s6070_s9 + $0x70] sm:$0xff] }
 0x994   :  { %v4191_v32 = vpop.eup %4190 }
 0x995   :  { %v2785_v37 = vmul.f32 %v4191_v32, %v2783_v58  ;;  %vm2790_vm15 = vweird.f32 %v4191_v32  ;;  %v4193_v18 = vpop.eup %4192 }
 0x996   :  { %vm2791_vm3 = vmor %vm2789_vm1, %vm2790_vm15  ;;  %v2764_v51 = vadd.f32 1.0, %v4193_v18 }
 0x997   :  { %v2786_v52 = vsub.f32 1.0, %v2785_v37  ;;  %v4122_v37 = vld [vmem:[%s6070_s9 + $0x38] sm:$0xff] }
 0x998   :  { %4194 = vrcp.f32 %v2764_v51  ;;  %v2776_v47 = vand.u32 2147483648, %v2764_v51  ;;  %vm2770_vm7 = vweird.f32 %v2764_v51  ;;  %v2774_v40 = vand.u32 2147483647, %v2764_v51  ;;  %3225 = vmatpush.bf16.msrb.mxu1 %v4122_v37 }
 0x999   :  { %v2787_v6 = vmul.f32 %v4191_v32, %v2786_v52 }
 0x99a   :  { %v2777_v36 = vor.u32 1.1754944e-38, %v2776_v47  ;;  %vm2775_vm9 = vcmp.eq.f32.partialorder %v2774_v40, 8.507059e+37 }
 0x99b   :  { %v2788_v44 = vadd.f32 %v4191_v32, %v2787_v6 }
 0x99d   :  { %v2792_v0 = vsel %vm2791_vm3, %v4191_v32, %v2788_v44  ;;  %v4130_v32 = vld [vmem:[%s6070_s9 + $0x78] sm:$0xff] }
 0x99e   :  { %v2797_v11 = vsel %vm2794_vm4, %v2796_v16, %v2792_v0  ;;  %v4195_v49 = vpop.eup %4194  ;;  %3238 = vmatpush.bf16.msrb.mxu3 %v4130_v32 }
 0x99f   :  { %v2827_v28 = vmul.f32 %v2823_v50, %v2797_v11  ;;  %v2766_v10 = vmul.f32 %v4195_v49, %v2764_v51  ;;  %vm2771_vm5 = vweird.f32 %v4195_v49  ;;  %v4128_v11 = vld [vmem:[%s6070_s9 + $0x68] sm:$0xff] }
 0x9a0   :  { %vm2772_vm8 = vmor %vm2770_vm7, %vm2771_vm5 }
 0x9a1   :  { %v2767_v57 = vsub.f32 1.0, %v2766_v10 }
 0x9a2   :  { %3239 = vmatpush.bf16.msrb.mxu3 %v4129_v63 }
 0x9a3   :  { %v2768_v61 = vmul.f32 %v4195_v49, %v2767_v57 }
 0x9a5   :  { %v2769_v43 = vadd.f32 %v4195_v49, %v2768_v61 }
 0x9a6   :  { %3240 = vmatpush.bf16.msrb.mxu3 %v4128_v11 }
 0x9a7   :  { %v2773_v45 = vsel %vm2772_vm8, %v4195_v49, %v2769_v43 }
 0x9a8   :  { %v2778_v31 = vsel %vm2775_vm9, %v2777_v36, %v2773_v45 }
 0x9a9   :  { %v2826_v42 = vmul.f32 %v2822_v54, %v2778_v31 }
 0x9f7   :  { %v2833_v22 = vpop.permute.xlu1 %2832 }
 0x9fc   :  { %v2831_v9 = vpop.permute.xlu0 %2830 }
 0x9fd   :  { %v2834_v21 = vsel %vm2409_vm6, %v2831_v9, %v2833_v22 }
 0x9fe   :  { %v2836_v33 = vmul.f32 %v2834_v21, %v2778_v31 }
 0xa00   :  { %2838 = vrot.lane.b32.xlu2 %v2836_v33, %s4252_s8 }
 0xa5a   :  { %v2839_v29 = vpop.permute.xlu2 %2838 }
 0xa5b   :  { %v5942_v56 = vadd.f32 %v2839_v29, %v2826_v42  ;;  %v5944_v26 = vadd.f32 %v2839_v29, %v2827_v28  ;;  %v4120_v29 = vld [vmem:[%s6070_s9 + $0x28] sm:$0xff] }
 0xa5d   :  { %4196 = vtanh.f32 %v5942_v56 }
 0xa5e   :  { %4198 = vtanh.f32 %v5944_v26 }
 0xa5f   :  { %4200 = vpow2.f32 %v3882_v59  ;;  %v4119_v59 = vld [vmem:[%s6070_s9 + $0x20] sm:$0xff] }
 0xa63   :  { %v4197_v20 = vpop.eup %4196 }
 0xa64   :  { %v4199_v12 = vpop.eup %4198  ;;  %2847 = vrot.lane.b32.xlu0 %v4197_v20, %s4251_s6  ;;  %v4126_v20 = vld [vmem:[%s6070_s9 + $0x58] sm:$0xff] }
 0xa65   :  { %2849 = vrot.lane.b32.xlu1 %v4199_v12, %s4251_s6  ;;  %v4201_v2 = vpop.eup %4200 }
 0xa66   :  { %v2804_v35 = vadd.f32 1.0, %v4201_v2  ;;  %v4118_v2 = vld [vmem:[%s6070_s9 + $0x18] sm:$0xff] }
 0xa68   :  { %4202 = vrcp.f32 %v2804_v35  ;;  %v2816_v24 = vand.u32 2147483648, %v2804_v35  ;;  %vm2810_vm11 = vweird.f32 %v2804_v35  ;;  %v2814_v30 = vand.u32 2147483647, %v2804_v35 }
 0xa6a   :  { %v2817_v17 = vor.u32 1.1754944e-38, %v2816_v24  ;;  %vm2815_vm13 = vcmp.eq.f32.partialorder %v2814_v30, 8.507059e+37  ;;  %v4115_v30 = vld [vmem:[%s6070_s9] sm:$0xff] }
 0xa6e   :  { %v4203_v39 = vpop.eup %4202 }
 0xa6f   :  { %v2806_v27 = vmul.f32 %v4203_v39, %v2804_v35  ;;  %vm2811_vm10 = vweird.f32 %v4203_v39  ;;  %v4124_v35 = vld [vmem:[%s6070_s9 + $0x48] sm:$0xff] }
 0xa70   :  { %vm2812_vm12 = vmor %vm2810_vm11, %vm2811_vm10 }
 0xa71   :  { %v2807_v34 = vsub.f32 1.0, %v2806_v27  ;;  %v4123_v27 = vld [vmem:[%s6070_s9 + $0x40] sm:$0xff] }
 0xa73   :  { %v2808_v3 = vmul.f32 %v4203_v39, %v2807_v34 }
 0xa75   :  { %v2809_v53 = vadd.f32 %v4203_v39, %v2808_v3  ;;  %v4116_v3 = vld [vmem:[%s6070_s9 + $0x8] sm:$0xff] }
 0xa77   :  { %v2813_v38 = vsel %vm2812_vm12, %v4203_v39, %v2809_v53  ;;  %v4117_v39 = vld [vmem:[%s6070_s9 + $0x10] sm:$0xff] }
 0xa78   :  { %v2818_v55 = vsel %vm2815_vm13, %v2817_v17, %v2813_v38 }
 0xad6   :  { %v2848_v1 = vpop.permute.xlu0 %2847 }
 0xad7   :  { %v2850_v19 = vpop.permute.xlu1 %2849 }
 0xad8   :  { %v2851_v15 = vsel %vm2409_vm6, %v2848_v1, %v2850_v19 }
 0xad9   :  { %v2853_v62 = vmul.f32 %v2851_v15, %v2818_v55 }
 0xadb   :  { %v2854_v60 = vpack.c.bf16 %v2853_v62, %v2853_v62  ;;  %v3016_v47 = vrot.slane %v2853_v62, 4 }
 0xadd   :  { %v2856_v41 = vrot.slane %v2854_v60, 2 }
 0xadf   :  { %2857 = vrot.lane.b32.xlu2 %v2856_v41, %s4252_s8 }
 0xb39   :  { %v2858_v14 = vpop.permute.xlu2 %2857 }
 0xb3a   :  { %3883 = vmatmul.msk.bf16.vlgmr.msra.gmra.mxu3 %vm2554_vm0, %v2858_v14  ;;  %3884 = vmatmul.msk.bf16.vlgmr.msra.gmra.mxu0 %vm2554_vm0, %v2858_v14 }
 0xb3b   :  { %3885 = vmatmul.msk.bf16.vlgmr.msra.gmra.mxu2 %vm2554_vm0, %v2858_v14 }
 0xbb7   :  { %v2884_v46 = vpop.f32.mrf.mxu0 }
 0xbb8   :  { %v2905_v7 = vrot.slane %v2884_v46, 2 }
 0xbba   :  { %v2911_v58 = vadd.f32 %v2905_v7, %v5679_v48  ;;  %v4121_v48 = vld [vmem:[%s6070_s9 + $0x30] sm:$0xff] }
 0xbbb   :  { %3226 = vmatpush.bf16.msrb.mxu1 %v4121_v48 }
 0xbbc   :  { %v3887_v52 = vmul.f32 -1.442695, %v2911_v58  ;;  %4204 = vtanh.f32 %v2911_v58 }
 0xbbd   :  { %v2871_v6 = vpop.f32.mrf.mxu3 }
 0xbbe   :  { %4206 = vpow2.f32 %v3887_v52  ;;  %v2904_v5 = vrot.slane %v2871_v6, 2  ;;  %v2897_v44 = vpop.f32.mrf.mxu2  ;;  %v2974_v6 = vrot.slane %v5942_v56, 6 }
 0xbbf   :  { %v2906_v16 = vrot.slane %v2897_v44, 2  ;;  %v2886_v50 = vpop.f32.mrf.mxu0  ;;  %3227 = vmatpush.bf16.msrb.mxu1 %v4120_v29 }
 0xbc0   :  { %v2910_v0 = vadd.f32 %v2904_v5, %v5681_v4  ;;  %v4127_v4 = vld [vmem:[%s6070_s9 + $0x60] sm:$0xff] }
 0xbc1   :  { %v5974_v28 = vadd.f32 %v2906_v16, %v5685_v8  ;;  %3241 = vmatpush.bf16.msrb.mxu3 %v4127_v4  ;;  %v3011_v8 = vrot.slane %v5922_v13, 2  ;;  %v2975_v13 = vrot.slane %v5944_v26, 6 }
 0xbc2   :  { %v4205_v25 = vpop.eup %4204  ;;  %v3886_v42 = vmul.f32 -1.442695, %v2910_v0 }
 0xbc3   :  { %4208 = vtanh.f32 %v5974_v28  ;;  %2982 = vrot.lane.b32.xlu0 %v4205_v25, %s4251_s6  ;;  %3228 = vmatpush.bf16.msrb.mxu1 %v4119_v59  ;;  %v4143_v25 = vld [vmem:[%s6071_s10] ss:$0 sm:$0xff] }
 0xbc4   :  { %v4207_v18 = vpop.eup %4206 }
 0xbc5   :  { %v2935_v51 = vadd.f32 1.0, %v4207_v18  ;;  %v2873_v49 = vpop.f32.mrf.mxu3  ;;  %3242 = vmatpush.bf16.msrb.mxu3 %v4126_v20 }
 0xbc6   :  { %v2899_v10 = vpop.f32.mrf.mxu2 }
 0xbc7   :  { %4210 = vrcp.f32 %v2935_v51  ;;  %v2947_v45 = vand.u32 2147483648, %v2935_v51  ;;  %v2945_v22 = vand.u32 2147483647, %v2935_v51  ;;  %vm2941_vm15 = vweird.f32 %v2935_v51  ;;  %3229 = vmatpush.bf16.msrb.mxu1 %v4118_v2 }
 0xbc8   :  { %4212 = vpow2.f32 %v3886_v42 }
 0xbc9   :  { %v4209_v57 = vpop.eup %4208  ;;  %v2948_v31 = vor.u32 1.1754944e-38, %v2947_v45  ;;  %vm2946_vm3 = vcmp.eq.f32.partialorder %v2945_v22, 8.507059e+37  ;;  %v4133_v45 = vld [vmem:[%s6070_s9 + $0x90] sm:$0xff] }
 0xbca   :  { %2984 = vrot.lane.b32.xlu1 %v4209_v57, %s4251_s6  ;;  %v4138_v57 = vld [vmem:[%s6070_s9 + $0xb8] sm:$0xff] }
 0xbcb   :  { %3012 = vrot.lane.b32.xlu0 %v3011_v8, %s4251_s6  ;;  %3230 = vmatpush.bf16.msrb.mxu1 %v4117_v39  ;;  %v4137_v8 = vld [vmem:[%s6070_s9 + $0xb0] sm:$0xff] }
 0xbcc   :  { %3251 = vmatpush.bf16.msrb.mxu0 %v4138_v57 }
 0xbcd   :  { %v4211_v61 = vpop.eup %4210 }
 0xbce   :  { %v2937_v43 = vmul.f32 %v4211_v61, %v2935_v51  ;;  %vm2942_vm14 = vweird.f32 %v4211_v61  ;;  %v4213_v26 = vpop.eup %4212 }
 0xbcf   :  { %vm2943_vm1 = vmor %vm2941_vm15, %vm2942_vm14  ;;  %v2916_v12 = vadd.f32 1.0, %v4213_v26  ;;  %3231 = vmatpush.bf16.msrb.mxu1 %v4116_v3 }
 0xbd0   :  { %v2938_v40 = vsub.f32 1.0, %v2937_v43  ;;  %3252 = vmatpush.bf16.msrb.mxu0 %v4137_v8  ;;  %v4135_v43 = vld [vmem:[%s6070_s9 + $0xa0] sm:$0xff] }
 0xbd1   :  { %4214 = vrcp.f32 %v2916_v12  ;;  %v2928_v17 = vand.u32 2147483648, %v2916_v12  ;;  %vm2922_vm5 = vweird.f32 %v2916_v12  ;;  %v2926_v19 = vand.u32 2147483647, %v2916_v12 }
 0xbd2   :  { %3017 = vrot.lane.b32.xlu1 %v3016_v47, %s4253_s24  ;;  %v2939_v36 = vmul.f32 %v4211_v61, %v2938_v40  ;;  %v3888_v47 = vmul.f32 -1.442695, %v5974_v28  ;;  %v4134_v40 = vld [vmem:[%s6070_s9 + $0x98] sm:$0xff]  ;;  %v4131_v28 = vld [vmem:[%s6070_s9 + $0x80] sm:$0xff] }
 0xbd3   :  { %3232 = vmatpush.bf16.msrb.mxu1 %v4115_v30  ;;  %v2929_v62 = vor.u32 1.1754944e-38, %v2928_v17  ;;  %vm2927_vm8 = vcmp.eq.f32.partialorder %v2926_v19, 8.507059e+37 }
 0xbd4   :  { %v2940_v9 = vadd.f32 %v4211_v61, %v2939_v36 }
 0xbd6   :  { %v2944_v21 = vsel %vm2943_vm1, %v4211_v61, %v2940_v9  ;;  %v4136_v61 = vld [vmem:[%s6070_s9 + $0xa8] sm:$0xff] }
 0xbd7   :  { %v2949_v33 = vsel %vm2946_vm3, %v2948_v31, %v2944_v21  ;;  %v4215_v34 = vpop.eup %4214  ;;  %3253 = vmatpush.bf16.msrb.mxu0 %v4136_v61  ;;  %v4132_v9 = vld [vmem:[%s6070_s9 + $0x88] sm:$0xff] }
 0xbd8   :  { %v2979_v54 = vmul.f32 %v2975_v13, %v2949_v33  ;;  %v2918_v53 = vmul.f32 %v4215_v34, %v2916_v12  ;;  %vm2923_vm4 = vweird.f32 %v4215_v34 }
 0xbd9   :  { %vm2924_vm7 = vmor %vm2922_vm5, %vm2923_vm4 }
 0xbda   :  { %3007 = vrot.lane.b32.xlu1 %v5878_v23, %s4252_s8  ;;  %v4125_v23 = vld [vmem:[%s6070_s9 + $0x50] sm:$0xff]  ;;  %v2919_v24 = vsub.f32 1.0, %v2918_v53  ;;  %s4254_s9 = smov [#allocation3]  }
 0xbdb   :  { %3243 = vmatpush.bf16.msrb.mxu3 %v4125_v23  ;;  %3254 = vmatpush.bf16.msrb.mxu0 %v4135_v43  ;;  %s3270_s30 = sshll.u32 %s4254_s9, 4  ;;  %s3271_s30 = int_to_ptr.vmem [resolvable:$true] %s3270_s30 }
 0xbdc   :  { %v2920_v38 = vmul.f32 %v4215_v34, %v2919_v24 }
 0xbde   :  { %v2921_v1 = vadd.f32 %v4215_v34, %v2920_v38 }
 0xbdf   :  { %3244 = vmatpush.bf16.msrb.mxu3 %v4124_v35  ;;  %3255 = vmatpush.bf16.msrb.mxu0 %v4134_v40 }
 0xbe0   :  { %v2925_v15 = vsel %vm2924_vm7, %v4215_v34, %v2921_v1 }
 0xbe1   :  { %v2930_v41 = vsel %vm2927_vm8, %v2929_v62, %v2925_v15 }
 0xbe2   :  { %v2978_v5 = vmul.f32 %v2974_v6, %v2930_v41 }
 0xbe3   :  { %3245 = vmatpush.bf16.msrb.mxu3 %v4123_v27  ;;  %3256 = vmatpush.bf16.msrb.mxu0 %v4133_v45 }
 0xbe7   :  { %3257 = vmatpush.bf16.msrb.mxu0 %v4132_v9 }
 0xbeb   :  { %3258 = vmatpush.bf16.msrb.mxu0 %v4131_v28 }
 0xc35   :  { %v2983_v55 = vpop.permute.xlu0 %2982 }
 0xc3c   :  { %v2985_v60 = vpop.permute.xlu1 %2984 }
 0xc3d   :  { %v2986_v14 = vsel %vm2409_vm6, %v2983_v55, %v2985_v60  ;;  %v3013_v7 = vpop.permute.xlu0 %3012 }
 0xc3e   :  { %v2988_v46 = vmul.f32 %v2986_v14, %v2930_v41 }
 0xc40   :  { %2990 = vrot.lane.b32.xlu2 %v2988_v46, %s4252_s8 }
 0xc44   :  { %v6019_v58 = vpop.permute.xlu1 %3017 }
 0xc45   :  { %v3024_v32 = vsel %vm2409_vm6, %v3013_v7, %v6019_v58 }
 0xc46   :  { %v3027_v37 = vpack.c.bf16 %v3024_v32, %v3024_v32 }
 0xc48   :  { %3246 = vmatmul.bf16.vlgmr.msrb.gmra.mxu3 %v3027_v37 }
 0xc4c   :  { %v3008_v52 = vpop.permute.xlu1 %3007 }
 0xc4d   :  { %v3023_v63 = vsel %vm2554_vm0, %v3008_v52, %v3013_v7 }
 0xc4e   :  { %v3026_v48 = vpack.c.bf16 %v3023_v63, %v3023_v63 }
 0xc50   :  { %3233 = vmatmul.bf16.vlgmr.msrb.gmra.mxu1 %v3026_v48 }
 0xc9a   :  { %v2991_v44 = vpop.permute.xlu2 %2990 }
 0xc9b   :  { %v2993_v16 = vadd.f32 %v2991_v44, %v2978_v5  ;;  %v2994_v50 = vadd.f32 %v2991_v44, %v2979_v54 }
 0xc9d   :  { %4216 = vtanh.f32 %v2993_v16 }
 0xc9e   :  { %4218 = vtanh.f32 %v2994_v50 }
 0xc9f   :  { %4220 = vpow2.f32 %v3888_v47 }
 0xca3   :  { %v4217_v0 = vpop.eup %4216 }
 0xca4   :  { %v4219_v11 = vpop.eup %4218  ;;  %2999 = vrot.lane.b32.xlu2 %v4217_v0, %s4251_s6 }
 0xca5   :  { %3001 = vrot.lane.b32.xlu0 %v4219_v11, %s4251_s6  ;;  %v4221_v36 = vpop.eup %4220 }
 0xca6   :  { %v2956_v22 = vadd.f32 1.0, %v4221_v36 }
 0xca8   :  { %4222 = vrcp.f32 %v2956_v22  ;;  %v2968_v42 = vand.u32 2147483648, %v2956_v22  ;;  %vm2962_vm9 = vweird.f32 %v2956_v22  ;;  %v2966_v29 = vand.u32 2147483647, %v2956_v22 }
 0xcaa   :  { %v2969_v26 = vor.u32 1.1754944e-38, %v2968_v42  ;;  %vm2967_vm11 = vcmp.eq.f32.partialorder %v2966_v29, 8.507059e+37 }
 0xcae   :  { %v4223_v31 = vpop.eup %4222 }
 0xcaf   :  { %v2958_v13 = vmul.f32 %v4223_v31, %v2956_v22  ;;  %vm2963_vm0 = vweird.f32 %v4223_v31 }
 0xcb0   :  { %vm2964_vm10 = vmor %vm2962_vm9, %vm2963_vm0 }
 0xcb1   :  { %v2959_v21 = vsub.f32 1.0, %v2958_v13 }
 0xcb3   :  { %v2960_v33 = vmul.f32 %v4223_v31, %v2959_v21 }
 0xcb5   :  { %v2961_v54 = vadd.f32 %v4223_v31, %v2960_v33 }
 0xcb7   :  { %v2965_v20 = vsel %vm2964_vm10, %v4223_v31, %v2961_v54 }
 0xcb8   :  { %v2970_v23 = vsel %vm2967_vm11, %v2969_v26, %v2965_v20 }
 0xccb   :  { %v3247_v18 = vpop.f32.mrf.mxu3 }
 0xccd   :  { %v3234_v4 = vpop.f32.mrf.mxu1 }
 0xcce   :  { %v3235_v51 = vadd.f32 %v4143_v25, %v3234_v4 }
 0xcd0   :  { %v3248_v56 = vadd.f32 %v3247_v18, %v3235_v51 }
 0xcd3   :  { %v3249_v49 = vpop.f32.mrf.mxu3 }
 0xcd5   :  { %v3236_v10 = vpop.f32.mrf.mxu1 }
 0xcfe   :  { %v3000_v12 = vpop.permute.xlu2 %2999 }
 0xd17   :  { %v3002_v59 = vpop.permute.xlu0 %3001 }
 0xd18   :  { %v3003_v2 = vsel %vm2409_vm6, %v3000_v12, %v3002_v59 }
 0xd19   :  { %v3005_v35 = vmul.f32 %v3003_v2, %v2970_v23 }
 0xd1b   :  { %v3021_v39 = vrot.slane %v3005_v35, 6 }
 0xd1d   :  { %v3025_v27 = vsel %vm2161_vm2, %v6019_v58, %v3021_v39 }
 0xd1e   :  { %v3028_v34 = vpack.c.bf16 %v3025_v27, %v3025_v27 }
 0xd20   :  { %3259 = vmatmul.bf16.vlgmr.msrb.gmra.mxu0 %v3028_v34 }
 0xd9d   :  { %v3260_v3 = vpop.f32.mrf.mxu0 }
 0xd9e   :  { %v3261_v53 = vadd.f32 %v3260_v3, %v3248_v56 }
 0xda0   :  { %3264 = vst [vmem:[#allocation3] sm:$0x3] %v3261_v53 }
 0xda1   :  { %3275 = dma.vmem_to_hbm [thread:$0]  %s3271_s30, 32, %s3273_s14, [#allocation4]  }
 0xda5   :  { %v3262_v24 = vpop.f32.mrf.mxu0 }
 0xda6   :  { %4249 = dma.done.wait [#allocation4], 32  }
 0xda7   :  { %4250 = vsyncadd [#allocation4], 4294967264 }
 0xda8   :  { %3280 = vsyncpa [#allocation4], 1 }

</bundles_post_ra>
